<compile_context>
chip_gen: v7x
topology: tpu7x:2x2x1
jax: 0.10.0
libtpu: 0.0.40
codegen_flags: <defaults>
</compile_context>

<pallas_src>
import math
import jax
import jax.numpy as jnp
from jax import lax
from jax.experimental import pallas as pl
from jax.experimental.pallas import tpu as pltpu

# ----------------------------- config --------------------------------------
B          = 2                 # batch
S          = 8                 # sequence length
HIDDEN     = 32                # args.hidden_size
HEADS      = 4                 # args.heads
HEAD_DIM   = HIDDEN // HEADS
N_LAYERS   = 2                 # args.n_layers
NUM_VIS    = 3                 # args.num_vis
FF_DIM     = 4 * HIDDEN
VOCAB      = 64
TYPE_VOCAB = 2
MAX_POS    = 64
EPS        = 1e-12

# synthetic (scaled-down) backbone stage shapes (C_in, H', W') for conv2/conv3/conv4
STAGE_SHAPES = [(32, 2, 2), (16, 4, 4), (8, 8, 8)]
STAGE_P      = [h * w for (_, h, w) in STAGE_SHAPES]          # [4, 16, 64]
STAGE_ORDER  = (2, 1, 0)       # order inside the fused conv input: largest P first
P_TOTAL      = sum(STAGE_P)                                   # 84
C_TOTAL      = sum(c for (c, _, _) in STAGE_SHAPES)           # 56

# stage row offsets inside x_all (all multiples of 8 -> aligned sublane slices)
P_V4, P_V3, P_V2    = STAGE_P[2], STAGE_P[1], STAGE_P[0]      # 64, 16, 4
OFF_V4, OFF_V3, OFF_V2 = 0, P_V4, P_V4 + P_V3                 # 0, 64, 80

SLAB_W = N_LAYERS * (HIDDEN + HEADS * S)   # 128 -> single unmasked 128-lane store
IM_W   = 128                               # intermediate maps, zero-padded to 128 lanes

VMEM = pl.BlockSpec(memory_space=pltpu.MemorySpace.VMEM)


# ----------------------- fully-fused forward kernel -------------------------
def _fused_forward_kernel(
        emb_ref, mask_ref, ln_ref,
        wqkv_ref, bqkv_ref, wp_ref, w1_ref, w2_ref, bias_ref,
        x_ref, cw_ref,
        slab_ref, im_ref):

    # ---- Transfer (num_vis == 3): ONE block-diagonal 1x1-conv matmul ---------
    x = x_ref[...]                                            # [B, P_TOTAL, C_TOTAL]
    inter = jnp.dot(x.reshape(B * P_TOTAL, C_TOTAL), cw_ref[...],
                    preferred_element_type=jnp.float32)       # [B*P_TOTAL, HIDDEN]
    inter3 = inter.reshape(B, P_TOTAL, HIDDEN)

    # intermediate = channel-mean of the PRE-ReLU conv output, packed lane-dense
    im_means = jnp.mean(inter3, axis=2)                       # [B, P_TOTAL]
    im_ref[...] = jnp.concatenate(
        [im_means, jnp.zeros((B, IM_W - P_TOTAL), jnp.float32)], axis=-1)

    # v_k = GAP(ReLU(inter_k)); per-stage row ranges are 8-aligned (0, 64, 80)
    relu3 = jnp.maximum(inter3, 0.0)
    v4 = jnp.mean(relu3[:, OFF_V4:OFF_V4 + P_V4, :], axis=1)  # [B, HIDDEN]
    v3 = jnp.mean(relu3[:, OFF_V3:OFF_V3 + P_V3, :], axis=1)
    v2 = jnp.mean(relu3[:, OFF_V2:OFF_V2 + P_V2, :], axis=1)

    # ---- packed LayerNorm params: [emb_g; emb_b; norm1_g; norm1_b] -----------
    eg = ln_ref[pl.ds(0, 1), :]
    eb = ln_ref[pl.ds(1, 1), :]
    g1 = ln_ref[pl.ds(2, 1), :]
    b1 = ln_ref[pl.ds(3, 1), :]

    def layer_norm(z, g, b):                 # z: [R, HIDDEN], biased var, eps=1e-12
        mu = jnp.mean(z, axis=-1, keepdims=True)
        var = jnp.mean(jnp.square(z - mu), axis=-1, keepdims=True)
        return (z - mu) * lax.rsqrt(var + EPS) * g + b

    # ---- BERT embedding LN, then overwrite visual-token slots 1..3 -----------
    h = layer_norm(emb_ref[...].reshape(B * S, HIDDEN), eg, eb).reshape(B, S, HIDDEN)
    h = jnp.concatenate(
        [h[:, 0:1, :], v2[:, None, :], v3[:, None, :], v4[:, None, :],
         h[:, 1 + NUM_VIS:, :]], axis=1)
    h2d = h.reshape(B * S, HIDDEN)           # hidden state stays 2-D for all matmuls

    neg = (10000.0 * (1.0 - mask_ref[...]))[:, None, :]       # [B, 1, S]
    inv_sqrt2 = 1.0 / math.sqrt(2.0)

    # ---- N_LAYERS pre-norm BertLayers (share='none'), statically unrolled ----
    # TODO(synk): at real BERT sizes switch to a grid=(N_LAYERS,) 'arbitrary' axis that
    # streams per-layer (bf16) weights with an explicit vmem_limit (v7x has 64 MiB VMEM)
    # and expose a 'parallel' batch axis for the second v7x TensorCore.
    chunks = []                              # lane-dense slab columns, stored once
    for li in range(N_LAYERS):
        h1 = layer_norm(h2d, g1, b1)

        bb1 = bias_ref[pl.ds(li, 1), pl.ds(0, FF_DIM)]                    # [1, FF]
        bp  = bias_ref[pl.ds(li, 1), pl.ds(FF_DIM, HIDDEN)]               # [1, H]
        bb2 = bias_ref[pl.ds(li, 1), pl.ds(FF_DIM + HIDDEN, HIDDEN)]      # [1, H]

        attn = bp                           # proj bias; per-head partials added below
        p_chunks = []
        for hh in range(HEADS):             # static unroll; no lane slicing/concats
            qi = (li * 3 + 0) * HEADS + hh
            ki = (li * 3 + 1) * HEADS + hh
            vi = (li * 3 + 2) * HEADS + hh
            q = (jnp.dot(h1, wqkv_ref[qi], preferred_element_type=jnp.float32)
                 + bqkv_ref[qi]).reshape(B, S, HEAD_DIM)      # 1/sqrt(d) folded in
            k = (jnp.dot(h1, wqkv_ref[ki], preferred_element_type=jnp.float32)
                 + bqkv_ref[ki]).reshape(B, S, HEAD_DIM)
            v = (jnp.dot(h1, wqkv_ref[vi], preferred_element_type=jnp.float32)
                 + bqkv_ref[vi]).reshape(B, S, HEAD_DIM)

            s = jnp.einsum('bqd,bkd->bqk', q, k,
                           preferred_element_type=jnp.float32) - neg
            s = s - jnp.max(s, axis=-1, keepdims=True)
            e = jnp.exp(s)
            p = e * pl.reciprocal(jnp.sum(e, axis=-1, keepdims=True), approx=True)
            p_chunks.append(p.reshape(B * S, S))              # softmax (dropout = id)

            ctx = jnp.einsum('bqk,bkd->bqd', p, v,
                             preferred_element_type=jnp.float32).reshape(B * S, HEAD_DIM)
            # per-head partial of the output projection (wp rows pre-split per head)
            attn = attn + jnp.dot(ctx, wp_ref[li * HEADS + hh],
                                  preferred_element_type=jnp.float32)

        out1 = h2d + attn                                     # residual (drop1 = id)

        # FFN -- norm1 is reused before the FFN, exactly as in the reference
        h2 = layer_norm(out1, g1, b1)
        f = jnp.dot(h2, w1_ref[li], preferred_element_type=jnp.float32) + bb1
        f = f * 0.5 * (1.0 + lax.erf(f * inv_sqrt2))          # exact gelu (erf form)
        f = jnp.dot(f, w2_ref[li], preferred_element_type=jnp.float32) + bb2
        h2d = out1 + f                                        # residual (drop2 = id)

        chunks.append(h2d)                  # per-layer hidden chunk   [B*S, HIDDEN]
        chunks.extend(p_chunks)             # per-layer score chunks   HEADS x [B*S, S]

    # one concatenate, one unmasked 128-lane store:
    # columns per layer li: [li*64, li*64+32) hidden, [li*64+32, li*64+64) scores (h,k)
    slab_ref[...] = jnp.concatenate(chunks, axis=-1)


# ----------------------------- glue -----------------------------------------
def backbone_stub(img, stage_projs):
    # TODO(synk): pretrained ResNet-152 backbone is not reproducible in-script;
    # replaced by deterministic average-pool downsampling + a fixed channel projection.
    b, c, H, W = img.shape
    feats = []
    for (c_out, hs_, ws_), proj in zip(STAGE_SHAPES, stage_projs):
        xx = img.reshape(b, c, hs_, H // hs_, ws_, W // ws_).mean(axis=(3, 5))
        f = jnp.einsum('bchw,co->bohw', xx, proj)
        feats.append(jax.nn.relu(f))
    return feats


def transformer_forward(img, input_ids, token_type_ids, mask, params):
    # --- frozen-backbone stand-in (XLA ops; outside the Pallas kernel) ---
    feats = backbone_stub(img, params['stage_projs'])

    # fuse the three 1x1 convs into one block-diagonal matmul input
    blocks, cws, col = [], [], 0
    for idx in STAGE_ORDER:
        c, hh_, ww_ = STAGE_SHAPES[idx]
        xcl = jnp.transpose(feats[idx], (0, 2, 3, 1)).reshape(B, hh_ * ww_, c)
        blocks.append(jnp.pad(xcl, ((0, 0), (0, 0), (col, C_TOTAL - col - c))))
        cws.append(jnp.transpose(params['conv_ws'][idx]))     # [C_in, HIDDEN]
        col += c
    x_all = jnp.concatenate(blocks, axis=1)                   # [B, P_TOTAL, C_TOTAL]
    cw_all = jnp.concatenate(cws, axis=0)                     # [C_TOTAL, HIDDEN]

    # --- BERT embedding table lookups (gathers stay in XLA; LN is in-kernel) ---
    word_e, pos_e, type_e = params['emb_tables']
    pos_ids = jnp.arange(S)[None, :]
    emb_sum = word_e[input_ids] + pos_e[pos_ids] + type_e[token_type_ids]

    slab, im_slab = pl.pallas_call(
        _fused_forward_kernel,
        out_shape=(jax.ShapeDtypeStruct((B * S, SLAB_W), jnp.float32),
                   jax.ShapeDtypeStruct((B, IM_W), jnp.float32)),
        in_specs=[VMEM] * 11,
        out_specs=(VMEM, VMEM),
    )(emb_sum, mask, params['ln_pack'],
      params['wqkv_h'], params['bqkv_h'], params['wp_h'],
      params['w1'], params['w2'], params['bias_pack'],
      x_all, cw_all)

    # unpack the lane-dense slab -> per-layer hidden states + PyTorch-layout scores
    hs_list, sc_list = [], []
    stride = HIDDEN + HEADS * S
    for li in range(N_LAYERS):
        base = li * stride
        hs_list.append(slab[:, base:base + HIDDEN].reshape(B, S, HIDDEN))
        sc = slab[:, base + HIDDEN:base + stride].reshape(B, S, HEADS, S)
        sc_list.append(jnp.transpose(sc, (0, 2, 1, 3)))       # [B, HEADS, S, S]
    hs = jnp.stack(hs_list, axis=0)
    scores = jnp.stack(sc_list, axis=0)

    inter_4 = im_slab[:, OFF_V4:OFF_V4 + P_V4].reshape(B, STAGE_SHAPES[2][1], STAGE_SHAPES[2][2])
    inter_3 = im_slab[:, OFF_V3:OFF_V3 + P_V3].reshape(B, STAGE_SHAPES[1][1], STAGE_SHAPES[1][2])
    inter_2 = im_slab[:, OFF_V2:OFF_V2 + P_V2].reshape(B, STAGE_SHAPES[0][1], STAGE_SHAPES[0][2])
    return hs, scores, [inter_2, inter_3, inter_4]


# --------------------------- parameter init ---------------------------------
def init_params(key):
    keys = iter(jax.random.split(key, 64))

    def nrm(shape, scale=0.02):
        return (scale * jax.random.normal(next(keys), shape)).astype(jnp.float32)

    L, D = N_LAYERS, HEAD_DIM
    params = {}
    params['stage_projs'] = [nrm((4, c)) for (c, _, _) in STAGE_SHAPES]
    # 1x1 conv weights stored as [out=HIDDEN, in=C] (kernel dims squeezed), bias=False
    params['conv_ws'] = [nrm((HIDDEN, c)) for (c, _, _) in STAGE_SHAPES]
    params['emb_tables'] = (nrm((VOCAB, HIDDEN)), nrm((MAX_POS, HIDDEN)),
                            nrm((TYPE_VOCAB, HIDDEN)))

    # packed LayerNorm params: [emb_gamma; emb_beta; norm1_gamma; norm1_beta]
    # (norm1 is a single shared nn.LayerNorm in BertLayer, reused for attn & FFN pre-norm)
    params['ln_pack'] = jnp.stack([jnp.ones((HIDDEN,), jnp.float32),
                                   jnp.zeros((HIDDEN,), jnp.float32),
                                   jnp.ones((HIDDEN,), jnp.float32),
                                   jnp.zeros((HIDDEN,), jnp.float32)], axis=0)

    # linears stored pre-transposed as [in, out]; 1/sqrt(HEAD_DIM) folded into Q proj
    scale = 1.0 / math.sqrt(D)
    wq = nrm((L, HIDDEN, HIDDEN)) * scale; bq = nrm((L, HIDDEN)) * scale
    wk = nrm((L, HIDDEN, HIDDEN)); bk = nrm((L, HIDDEN))
    wv = nrm((L, HIDDEN, HIDDEN)); bv = nrm((L, HIDDEN))

    def per_head_w(w):   # [L, in, out] -> [L, HEADS, in, D]  (head-major output split)
        return w.reshape(L, HIDDEN, HEADS, D).transpose(0, 2, 1, 3)

    def per_head_b(b):   # [L, out] -> [L, HEADS, 1, D]
        return b.reshape(L, HEADS, 1, D)

    wqkv_h = jnp.stack([per_head_w(wq), per_head_w(wk), per_head_w(wv)], axis=1)
    bqkv_h = jnp.stack([per_head_b(bq), per_head_b(bk), per_head_b(bv)], axis=1)
    params['wqkv_h'] = wqkv_h.reshape(L * 3 * HEADS, HIDDEN, D)   # leading-axis indexed
    params['bqkv_h'] = bqkv_h.reshape(L * 3 * HEADS, 1, D)

    wp = nrm((L, HIDDEN, HIDDEN)); bp = nrm((L, HIDDEN))          # output proj, [in,out]
    params['wp_h'] = wp.reshape(L * HEADS, D, HIDDEN)             # per-head row groups

    params['w1'] = nrm((L, HIDDEN, FF_DIM)); bb1 = nrm((L, FF_DIM))
    params['w2'] = nrm((L, FF_DIM, HIDDEN)); bb2 = nrm((L, HIDDEN))
    # bias pack ordered [bb1 | bp | bb2] so in-kernel slices start at 0 / 128 / 160
    params['bias_pack'] = jnp.concatenate([bb1, bp, bb2], axis=-1)
    return params


# ------------------------------- main ----------------------------------------
if __name__ == "__main__":
    key = jax.random.PRNGKey(0)
    kp, kimg, kids = jax.random.split(key, 3)
    params = init_params(kp)

    img            = jax.random.normal(kimg, (B, 4, 16, 16), jnp.float32)   # NCHW
    input_ids      = jax.random.randint(kids, (B, S), 0, VOCAB)
    token_type_ids = jnp.zeros((B, S), jnp.int32)
    mask           = jnp.ones((B, S), jnp.float32)

    fwd = jax.jit(transformer_forward)
    hs, scores, inter = fwd(img, input_ids, token_type_ids, mask, params)
    jax.block_until_ready(hs)
    jax.block_until_ready(scores)
    for t in inter:
        jax.block_until_ready(t)

    assert hs.shape == (N_LAYERS, B, S, HIDDEN)
    assert scores.shape == (N_LAYERS, B, HEADS, S, S)
    assert [t.shape for t in inter] == [(B, h, w) for (_, h, w) in STAGE_SHAPES]
    print("KERNEL_OK")
</pallas_src>

<mosaic_0001>
module attributes {stable_mosaic.version = 11 : i64} {
  func.func @_fused_forward_kernel(%arg0: memref<2x8x32xf32, #tpu.memory_space<vmem>>, %arg1: memref<2x8xf32, #tpu.memory_space<vmem>>, %arg2: memref<4x32xf32, #tpu.memory_space<vmem>>, %arg3: memref<24x32x8xf32, #tpu.memory_space<vmem>>, %arg4: memref<24x1x8xf32, #tpu.memory_space<vmem>>, %arg5: memref<8x8x32xf32, #tpu.memory_space<vmem>>, %arg6: memref<2x32x128xf32, #tpu.memory_space<vmem>>, %arg7: memref<2x128x32xf32, #tpu.memory_space<vmem>>, %arg8: memref<2x192xf32, #tpu.memory_space<vmem>>, %arg9: memref<2x84x56xf32, #tpu.memory_space<vmem>>, %arg10: memref<56x32xf32, #tpu.memory_space<vmem>>, %arg11: memref<16x128xf32, #tpu.memory_space<vmem>>, %arg12: memref<2x128xf32, #tpu.memory_space<vmem>>) attributes {dimension_semantics = [], scalar_prefetch = 0 : i64, scratch_operands = 0 : i64, tpu.core_type = #tpu.core_type<tc>} {
    %c0 = arith.constant 0 : index
    %c0_0 = arith.constant 0 : index
    %c0_1 = arith.constant 0 : index
    %0 = vector.load %arg9[%c0, %c0_0, %c0_1] : memref<2x84x56xf32, #tpu.memory_space<vmem>>, vector<2x84x56xf32>
    %1 = vector.shape_cast %0 : vector<2x84x56xf32> to vector<168x56xf32>
    %c0_2 = arith.constant 0 : index
    %c0_3 = arith.constant 0 : index
    %2 = vector.load %arg10[%c0_2, %c0_3] : memref<56x32xf32, #tpu.memory_space<vmem>>, vector<56x32xf32>
    %cst = arith.constant dense<0.000000e+00> : vector<168x32xf32>
    %3 = tpu.matmul %1, %2, %cst {dimension_numbers = #tpu.dot_dimension_numbers<[1], [0], [0], [1], [0, 0, 1, 1], [], []>} : vector<168x56xf32>, vector<56x32xf32>, vector<168x32xf32> -> vector<168x32xf32>
    %4 = vector.shape_cast %3 : vector<168x32xf32> to vector<2x84x32xf32>
    %cst_4 = arith.constant dense<0.000000e+00> : vector<2x84xf32>
    %5 = vector.multi_reduction <add>, %4, %cst_4 [2] : vector<2x84x32xf32> to vector<2x84xf32>
    %cst_5 = arith.constant 3.200000e+01 : f32
    %6 = vector.broadcast %cst_5 : f32 to vector<2x84xf32>
    %7 = arith.divf %5, %6 : vector<2x84xf32>
    %cst_6 = arith.constant 0.000000e+00 : f32
    %8 = vector.broadcast %cst_6 : f32 to vector<2x44xf32>
    %9 = tpu.concatenate %7, %8 in 1 : vector<2x84xf32>, vector<2x44xf32> -> vector<2x128xf32>
    %c0_7 = arith.constant 0 : index
    %c0_8 = arith.constant 0 : index
    %10 = vector.load %arg12[%c0_7, %c0_8] : memref<2x128xf32, #tpu.memory_space<vmem>>, vector<2x128xf32>
    tpu.vector_store %arg12[%c0_7, %c0_8], %9 {strides = array<i32>} : memref<2x128xf32, #tpu.memory_space<vmem>>, vector<2x128xf32>,
    %cst_9 = arith.constant 0.000000e+00 : f32
    %11 = vector.broadcast %cst_9 : f32 to vector<2x84x32xf32>
    %12 = arith.maximumf %4, %11 : vector<2x84x32xf32>
    %13 = vector.extract_strided_slice %12 {offsets = [0, 0, 0], sizes = [2, 64, 32], strides = [1, 1, 1]} : vector<2x84x32xf32> to vector<2x64x32xf32>
    %cst_10 = arith.constant dense<0.000000e+00> : vector<2x32xf32>
    %14 = vector.multi_reduction <add>, %13, %cst_10 [1] : vector<2x64x32xf32> to vector<2x32xf32>
    %cst_11 = arith.constant 6.400000e+01 : f32
    %15 = vector.broadcast %cst_11 : f32 to vector<2x32xf32>
    %16 = arith.divf %14, %15 : vector<2x32xf32>
    %17 = vector.extract_strided_slice %12 {offsets = [0, 64, 0], sizes = [2, 16, 32], strides = [1, 1, 1]} : vector<2x84x32xf32> to vector<2x16x32xf32>
    %cst_12 = arith.constant dense<0.000000e+00> : vector<2x32xf32>
    %18 = vector.multi_reduction <add>, %17, %cst_12 [1] : vector<2x16x32xf32> to vector<2x32xf32>
    %cst_13 = arith.constant 1.600000e+01 : f32
    %19 = vector.broadcast %cst_13 : f32 to vector<2x32xf32>
    %20 = arith.divf %18, %19 : vector<2x32xf32>
    %21 = vector.extract_strided_slice %12 {offsets = [0, 80, 0], sizes = [2, 4, 32], strides = [1, 1, 1]} : vector<2x84x32xf32> to vector<2x4x32xf32>
    %cst_14 = arith.constant dense<0.000000e+00> : vector<2x32xf32>
    %22 = vector.multi_reduction <add>, %21, %cst_14 [1] : vector<2x4x32xf32> to vector<2x32xf32>
    %cst_15 = arith.constant 4.000000e+00 : f32
    %23 = vector.broadcast %cst_15 : f32 to vector<2x32xf32>
    %24 = arith.divf %22, %23 : vector<2x32xf32>
    %c0_16 = arith.constant 0 : index
    %c0_17 = arith.constant 0 : index
    %25 = vector.load %arg2[%c0_16, %c0_17] : memref<4x32xf32, #tpu.memory_space<vmem>>, vector<1x32xf32>
    %c1 = arith.constant 1 : index
    %c0_18 = arith.constant 0 : index
    %26 = vector.load %arg2[%c1, %c0_18] : memref<4x32xf32, #tpu.memory_space<vmem>>, vector<1x32xf32>
    %c2 = arith.constant 2 : index
    %c0_19 = arith.constant 0 : index
    %27 = vector.load %arg2[%c2, %c0_19] : memref<4x32xf32, #tpu.memory_space<vmem>>, vector<1x32xf32>
    %c3 = arith.constant 3 : index
    %c0_20 = arith.constant 0 : index
    %28 = vector.load %arg2[%c3, %c0_20] : memref<4x32xf32, #tpu.memory_space<vmem>>, vector<1x32xf32>
    %c0_21 = arith.constant 0 : index
    %c0_22 = arith.constant 0 : index
    %c0_23 = arith.constant 0 : index
    %29 = vector.load %arg0[%c0_21, %c0_22, %c0_23] : memref<2x8x32xf32, #tpu.memory_space<vmem>>, vector<2x8x32xf32>
    %30 = vector.shape_cast %29 : vector<2x8x32xf32> to vector<16x32xf32>
    %cst_24 = arith.constant dense<0.000000e+00> : vector<16xf32>
    %31 = vector.multi_reduction <add>, %30, %cst_24 [1] : vector<16x32xf32> to vector<16xf32>
    %32 = vector.shape_cast %31 : vector<16xf32> to vector<16x1xf32>
    %cst_25 = arith.constant 3.200000e+01 : f32
    %33 = vector.broadcast %cst_25 : f32 to vector<16x1xf32>
    %34 = arith.divf %32, %33 : vector<16x1xf32>
    %35 = vector.broadcast %34 : vector<16x1xf32> to vector<16x32xf32>
    %36 = arith.subf %30, %35 : vector<16x32xf32>
    %37 = arith.mulf %36, %36 : vector<16x32xf32>
    %cst_26 = arith.constant dense<0.000000e+00> : vector<16xf32>
    %38 = vector.multi_reduction <add>, %37, %cst_26 [1] : vector<16x32xf32> to vector<16xf32>
    %39 = vector.shape_cast %38 : vector<16xf32> to vector<16x1xf32>
    %cst_27 = arith.constant 3.200000e+01 : f32
    %40 = vector.broadcast %cst_27 : f32 to vector<16x1xf32>
    %41 = arith.divf %39, %40 : vector<16x1xf32>
    %42 = vector.broadcast %34 : vector<16x1xf32> to vector<16x32xf32>
    %43 = arith.subf %30, %42 : vector<16x32xf32>
    %cst_28 = arith.constant 9.99999996E-13 : f32
    %44 = vector.broadcast %cst_28 : f32 to vector<16x1xf32>
    %45 = arith.addf %41, %44 : vector<16x1xf32>
    %46 = math.rsqrt %45 : vector<16x1xf32>
    %47 = vector.broadcast %46 : vector<16x1xf32> to vector<16x32xf32>
    %48 = arith.mulf %43, %47 : vector<16x32xf32>
    %49 = vector.broadcast %25 : vector<1x32xf32> to vector<16x32xf32>
    %50 = arith.mulf %48, %49 : vector<16x32xf32>
    %51 = vector.broadcast %26 : vector<1x32xf32> to vector<16x32xf32>
    %52 = arith.addf %50, %51 : vector<16x32xf32>
    %53 = vector.shape_cast %52 : vector<16x32xf32> to vector<2x8x32xf32>
    %54 = vector.extract_strided_slice %53 {offsets = [0, 0, 0], sizes = [2, 1, 32], strides = [1, 1, 1]} : vector<2x8x32xf32> to vector<2x1x32xf32>
    %55 = vector.shape_cast %24 : vector<2x32xf32> to vector<2x1x32xf32>
    %56 = vector.shape_cast %20 : vector<2x32xf32> to vector<2x1x32xf32>
    %57 = vector.shape_cast %16 : vector<2x32xf32> to vector<2x1x32xf32>
    %58 = vector.extract_strided_slice %53 {offsets = [0, 4, 0], sizes = [2, 4, 32], strides = [1, 1, 1]} : vector<2x8x32xf32> to vector<2x4x32xf32>
    %59 = tpu.concatenate %54, %55, %56, %57, %58 in 1 : vector<2x1x32xf32>, vector<2x1x32xf32>, vector<2x1x32xf32>, vector<2x1x32xf32>, vector<2x4x32xf32> -> vector<2x8x32xf32>
    %60 = vector.shape_cast %59 : vector<2x8x32xf32> to vector<16x32xf32>
    %c0_29 = arith.constant 0 : index
    %c0_30 = arith.constant 0 : index
    %61 = vector.load %arg1[%c0_29, %c0_30] : memref<2x8xf32, #tpu.memory_space<vmem>>, vector<2x8xf32>
    %cst_31 = arith.constant 1.000000e+00 : f32
    %62 = vector.broadcast %cst_31 : f32 to vector<2x8xf32>
    %63 = arith.subf %62, %61 : vector<2x8xf32>
    %cst_32 = arith.constant 1.000000e+04 : f32
    %64 = vector.broadcast %cst_32 : f32 to vector<2x8xf32>
    %65 = arith.mulf %64, %63 : vector<2x8xf32>
    %66 = vector.shape_cast %65 : vector<2x8xf32> to vector<2x1x8xf32>
    %cst_33 = arith.constant dense<0.000000e+00> : vector<16xf32>
    %67 = vector.multi_reduction <add>, %60, %cst_33 [1] : vector<16x32xf32> to vector<16xf32>
    %68 = vector.shape_cast %67 : vector<16xf32> to vector<16x1xf32>
    %cst_34 = arith.constant 3.200000e+01 : f32
    %69 = vector.broadcast %cst_34 : f32 to vector<16x1xf32>
    %70 = arith.divf %68, %69 : vector<16x1xf32>
    %71 = vector.broadcast %70 : vector<16x1xf32> to vector<16x32xf32>
    %72 = arith.subf %60, %71 : vector<16x32xf32>
    %73 = arith.mulf %72, %72 : vector<16x32xf32>
    %cst_35 = arith.constant dense<0.000000e+00> : vector<16xf32>
    %74 = vector.multi_reduction <add>, %73, %cst_35 [1] : vector<16x32xf32> to vector<16xf32>
    %75 = vector.shape_cast %74 : vector<16xf32> to vector<16x1xf32>
    %cst_36 = arith.constant 3.200000e+01 : f32
    %76 = vector.broadcast %cst_36 : f32 to vector<16x1xf32>
    %77 = arith.divf %75, %76 : vector<16x1xf32>
    %78 = vector.broadcast %70 : vector<16x1xf32> to vector<16x32xf32>
    %79 = arith.subf %60, %78 : vector<16x32xf32>
    %cst_37 = arith.constant 9.99999996E-13 : f32
    %80 = vector.broadcast %cst_37 : f32 to vector<16x1xf32>
    %81 = arith.addf %77, %80 : vector<16x1xf32>
    %82 = math.rsqrt %81 : vector<16x1xf32>
    %83 = vector.broadcast %82 : vector<16x1xf32> to vector<16x32xf32>
    %84 = arith.mulf %79, %83 : vector<16x32xf32>
    %85 = vector.broadcast %27 : vector<1x32xf32> to vector<16x32xf32>
    %86 = arith.mulf %84, %85 : vector<16x32xf32>
    %87 = vector.broadcast %28 : vector<1x32xf32> to vector<16x32xf32>
    %88 = arith.addf %86, %87 : vector<16x32xf32>
    %c0_38 = arith.constant 0 : index
    %c0_39 = arith.constant 0 : index
    %89 = vector.load %arg8[%c0_38, %c0_39] : memref<2x192xf32, #tpu.memory_space<vmem>>, vector<1x128xf32>
    %c0_40 = arith.constant 0 : index
    %c128 = arith.constant 128 : index
    %90 = vector.load %arg8[%c0_40, %c128] : memref<2x192xf32, #tpu.memory_space<vmem>>, vector<1x32xf32>
    %c0_41 = arith.constant 0 : index
    %c160 = arith.constant 160 : index
    %91 = vector.load %arg8[%c0_41, %c160] : memref<2x192xf32, #tpu.memory_space<vmem>>, vector<1x32xf32>
    %c0_42 = arith.constant 0 : index
    %c0_43 = arith.constant 0 : index
    %c0_44 = arith.constant 0 : index
    %92 = vector.load %arg3[%c0_42, %c0_43, %c0_44] : memref<24x32x8xf32, #tpu.memory_space<vmem>>, vector<1x32x8xf32>
    %93 = vector.shape_cast %92 : vector<1x32x8xf32> to vector<32x8xf32>
    %cst_45 = arith.constant dense<0.000000e+00> : vector<16x8xf32>
    %94 = tpu.matmul %88, %93, %cst_45 {dimension_numbers = #tpu.dot_dimension_numbers<[1], [0], [0], [1], [0, 0, 1, 1], [], []>} : vector<16x32xf32>, vector<32x8xf32>, vector<16x8xf32> -> vector<16x8xf32>
    %c0_46 = arith.constant 0 : index
    %c0_47 = arith.constant 0 : index
    %c0_48 = arith.constant 0 : index
    %95 = vector.load %arg4[%c0_46, %c0_47, %c0_48] : memref<24x1x8xf32, #tpu.memory_space<vmem>>, vector<1x1x8xf32>
    %96 = vector.shape_cast %95 : vector<1x1x8xf32> to vector<1x8xf32>
    %97 = vector.broadcast %96 : vector<1x8xf32> to vector<16x8xf32>
    %98 = arith.addf %94, %97 : vector<16x8xf32>
    %99 = vector.shape_cast %98 : vector<16x8xf32> to vector<2x8x8xf32>
    %c4 = arith.constant 4 : index
    %c0_49 = arith.constant 0 : index
    %c0_50 = arith.constant 0 : index
    %100 = vector.load %arg3[%c4, %c0_49, %c0_50] : memref<24x32x8xf32, #tpu.memory_space<vmem>>, vector<1x32x8xf32>
    %101 = vector.shape_cast %100 : vector<1x32x8xf32> to vector<32x8xf32>
    %cst_51 = arith.constant dense<0.000000e+00> : vector<16x8xf32>
    %102 = tpu.matmul %88, %101, %cst_51 {dimension_numbers = #tpu.dot_dimension_numbers<[1], [0], [0], [1], [0, 0, 1, 1], [], []>} : vector<16x32xf32>, vector<32x8xf32>, vector<16x8xf32> -> vector<16x8xf32>
    %c4_52 = arith.constant 4 : index
    %c0_53 = arith.constant 0 : index
    %c0_54 = arith.constant 0 : index
    %103 = vector.load %arg4[%c4_52, %c0_53, %c0_54] : memref<24x1x8xf32, #tpu.memory_space<vmem>>, vector<1x1x8xf32>
    %104 = vector.shape_cast %103 : vector<1x1x8xf32> to vector<1x8xf32>
    %105 = vector.broadcast %104 : vector<1x8xf32> to vector<16x8xf32>
    %106 = arith.addf %102, %105 : vector<16x8xf32>
    %107 = vector.shape_cast %106 : vector<16x8xf32> to vector<2x8x8xf32>
    %c8 = arith.constant 8 : index
    %c0_55 = arith.constant 0 : index
    %c0_56 = arith.constant 0 : index
    %108 = vector.load %arg3[%c8, %c0_55, %c0_56] : memref<24x32x8xf32, #tpu.memory_space<vmem>>, vector<1x32x8xf32>
    %109 = vector.shape_cast %108 : vector<1x32x8xf32> to vector<32x8xf32>
    %cst_57 = arith.constant dense<0.000000e+00> : vector<16x8xf32>
    %110 = tpu.matmul %88, %109, %cst_57 {dimension_numbers = #tpu.dot_dimension_numbers<[1], [0], [0], [1], [0, 0, 1, 1], [], []>} : vector<16x32xf32>, vector<32x8xf32>, vector<16x8xf32> -> vector<16x8xf32>
    %c8_58 = arith.constant 8 : index
    %c0_59 = arith.constant 0 : index
    %c0_60 = arith.constant 0 : index
    %111 = vector.load %arg4[%c8_58, %c0_59, %c0_60] : memref<24x1x8xf32, #tpu.memory_space<vmem>>, vector<1x1x8xf32>
    %112 = vector.shape_cast %111 : vector<1x1x8xf32> to vector<1x8xf32>
    %113 = vector.broadcast %112 : vector<1x8xf32> to vector<16x8xf32>
    %114 = arith.addf %110, %113 : vector<16x8xf32>
    %115 = vector.shape_cast %114 : vector<16x8xf32> to vector<2x8x8xf32>
    "tpu.trace_start"() <{level = 10 : i32, message = "bqd,bkd->bqk"}> : () -> ()
    %cst_61 = arith.constant dense<0.000000e+00> : vector<2x8x8xf32>
    %116 = tpu.matmul %99, %107, %cst_61 {dimension_numbers = #tpu.dot_dimension_numbers<[2], [2], [1], [1], [0, 0, 0, 1, 1, 1], [0], [0]>} : vector<2x8x8xf32>, vector<2x8x8xf32>, vector<2x8x8xf32> -> vector<2x8x8xf32>
    "tpu.trace_stop"() : () -> ()
    %117 = vector.broadcast %66 : vector<2x1x8xf32> to vector<2x8x8xf32>
    %118 = arith.subf %116, %117 : vector<2x8x8xf32>
    %cst_62 = arith.constant dense<0xFF800000> : vector<2x8xf32>
    %119 = vector.multi_reduction <maximumf>, %118, %cst_62 [2] : vector<2x8x8xf32> to vector<2x8xf32>
    %120 = vector.shape_cast %119 : vector<2x8xf32> to vector<2x8x1xf32>
    %121 = vector.broadcast %120 : vector<2x8x1xf32> to vector<2x8x8xf32>
    %122 = arith.subf %118, %121 : vector<2x8x8xf32>
    %123 = math.exp %122 : vector<2x8x8xf32>
    %cst_63 = arith.constant dense<0.000000e+00> : vector<2x8xf32>
    %124 = vector.multi_reduction <add>, %123, %cst_63 [2] : vector<2x8x8xf32> to vector<2x8xf32>
    %125 = vector.shape_cast %124 : vector<2x8xf32> to vector<2x8x1xf32>
    %126 = tpu.reciprocal %125 {approx = true} : vector<2x8x1xf32> -> vector<2x8x1xf32>
    %127 = vector.broadcast %126 : vector<2x8x1xf32> to vector<2x8x8xf32>
    %128 = arith.mulf %123, %127 : vector<2x8x8xf32>
    %129 = vector.shape_cast %128 : vector<2x8x8xf32> to vector<16x8xf32>
    "tpu.trace_start"() <{level = 10 : i32, message = "bqk,bkd->bqd"}> : () -> ()
    %cst_64 = arith.constant dense<0.000000e+00> : vector<2x8x8xf32>
    %130 = tpu.matmul %128, %115, %cst_64 {dimension_numbers = #tpu.dot_dimension_numbers<[2], [1], [1], [2], [0, 0, 0, 1, 1, 2], [0], [0]>} : vector<2x8x8xf32>, vector<2x8x8xf32>, vector<2x8x8xf32> -> vector<2x8x8xf32>
    "tpu.trace_stop"() : () -> ()
    %131 = vector.shape_cast %130 : vector<2x8x8xf32> to vector<16x8xf32>
    %c0_65 = arith.constant 0 : index
    %c0_66 = arith.constant 0 : index
    %c0_67 = arith.constant 0 : index
    %132 = vector.load %arg5[%c0_65, %c0_66, %c0_67] : memref<8x8x32xf32, #tpu.memory_space<vmem>>, vector<1x8x32xf32>
    %133 = vector.shape_cast %132 : vector<1x8x32xf32> to vector<8x32xf32>
    %cst_68 = arith.constant dense<0.000000e+00> : vector<16x32xf32>
    %134 = tpu.matmul %131, %133, %cst_68 {dimension_numbers = #tpu.dot_dimension_numbers<[1], [0], [0], [1], [0, 0, 1, 1], [], []>} : vector<16x8xf32>, vector<8x32xf32>, vector<16x32xf32> -> vector<16x32xf32>
    %135 = vector.broadcast %90 : vector<1x32xf32> to vector<16x32xf32>
    %136 = arith.addf %135, %134 : vector<16x32xf32>
    %c1_69 = arith.constant 1 : index
    %c0_70 = arith.constant 0 : index
    %c0_71 = arith.constant 0 : index
    %137 = vector.load %arg3[%c1_69, %c0_70, %c0_71] : memref<24x32x8xf32, #tpu.memory_space<vmem>>, vector<1x32x8xf32>
    %138 = vector.shape_cast %137 : vector<1x32x8xf32> to vector<32x8xf32>
    %cst_72 = arith.constant dense<0.000000e+00> : vector<16x8xf32>
    %139 = tpu.matmul %88, %138, %cst_72 {dimension_numbers = #tpu.dot_dimension_numbers<[1], [0], [0], [1], [0, 0, 1, 1], [], []>} : vector<16x32xf32>, vector<32x8xf32>, vector<16x8xf32> -> vector<16x8xf32>
    %c1_73 = arith.constant 1 : index
    %c0_74 = arith.constant 0 : index
    %c0_75 = arith.constant 0 : index
    %140 = vector.load %arg4[%c1_73, %c0_74, %c0_75] : memref<24x1x8xf32, #tpu.memory_space<vmem>>, vector<1x1x8xf32>
    %141 = vector.shape_cast %140 : vector<1x1x8xf32> to vector<1x8xf32>
    %142 = vector.broadcast %141 : vector<1x8xf32> to vector<16x8xf32>
    %143 = arith.addf %139, %142 : vector<16x8xf32>
    %144 = vector.shape_cast %143 : vector<16x8xf32> to vector<2x8x8xf32>
    %c5 = arith.constant 5 : index
    %c0_76 = arith.constant 0 : index
    %c0_77 = arith.constant 0 : index
    %145 = vector.load %arg3[%c5, %c0_76, %c0_77] : memref<24x32x8xf32, #tpu.memory_space<vmem>>, vector<1x32x8xf32>
    %146 = vector.shape_cast %145 : vector<1x32x8xf32> to vector<32x8xf32>
    %cst_78 = arith.constant dense<0.000000e+00> : vector<16x8xf32>
    %147 = tpu.matmul %88, %146, %cst_78 {dimension_numbers = #tpu.dot_dimension_numbers<[1], [0], [0], [1], [0, 0, 1, 1], [], []>} : vector<16x32xf32>, vector<32x8xf32>, vector<16x8xf32> -> vector<16x8xf32>
    %c5_79 = arith.constant 5 : index
    %c0_80 = arith.constant 0 : index
    %c0_81 = arith.constant 0 : index
    %148 = vector.load %arg4[%c5_79, %c0_80, %c0_81] : memref<24x1x8xf32, #tpu.memory_space<vmem>>, vector<1x1x8xf32>
    %149 = vector.shape_cast %148 : vector<1x1x8xf32> to vector<1x8xf32>
    %150 = vector.broadcast %149 : vector<1x8xf32> to vector<16x8xf32>
    %151 = arith.addf %147, %150 : vector<16x8xf32>
    %152 = vector.shape_cast %151 : vector<16x8xf32> to vector<2x8x8xf32>
    %c9 = arith.constant 9 : index
    %c0_82 = arith.constant 0 : index
    %c0_83 = arith.constant 0 : index
    %153 = vector.load %arg3[%c9, %c0_82, %c0_83] : memref<24x32x8xf32, #tpu.memory_space<vmem>>, vector<1x32x8xf32>
    %154 = vector.shape_cast %153 : vector<1x32x8xf32> to vector<32x8xf32>
    %cst_84 = arith.constant dense<0.000000e+00> : vector<16x8xf32>
    %155 = tpu.matmul %88, %154, %cst_84 {dimension_numbers = #tpu.dot_dimension_numbers<[1], [0], [0], [1], [0, 0, 1, 1], [], []>} : vector<16x32xf32>, vector<32x8xf32>, vector<16x8xf32> -> vector<16x8xf32>
    %c9_85 = arith.constant 9 : index
    %c0_86 = arith.constant 0 : index
    %c0_87 = arith.constant 0 : index
    %156 = vector.load %arg4[%c9_85, %c0_86, %c0_87] : memref<24x1x8xf32, #tpu.memory_space<vmem>>, vector<1x1x8xf32>
    %157 = vector.shape_cast %156 : vector<1x1x8xf32> to vector<1x8xf32>
    %158 = vector.broadcast %157 : vector<1x8xf32> to vector<16x8xf32>
    %159 = arith.addf %155, %158 : vector<16x8xf32>
    %160 = vector.shape_cast %159 : vector<16x8xf32> to vector<2x8x8xf32>
    "tpu.trace_start"() <{level = 10 : i32, message = "bqd,bkd->bqk"}> : () -> ()
    %cst_88 = arith.constant dense<0.000000e+00> : vector<2x8x8xf32>
    %161 = tpu.matmul %144, %152, %cst_88 {dimension_numbers = #tpu.dot_dimension_numbers<[2], [2], [1], [1], [0, 0, 0, 1, 1, 1], [0], [0]>} : vector<2x8x8xf32>, vector<2x8x8xf32>, vector<2x8x8xf32> -> vector<2x8x8xf32>
    "tpu.trace_stop"() : () -> ()
    %162 = vector.broadcast %66 : vector<2x1x8xf32> to vector<2x8x8xf32>
    %163 = arith.subf %161, %162 : vector<2x8x8xf32>
    %cst_89 = arith.constant dense<0xFF800000> : vector<2x8xf32>
    %164 = vector.multi_reduction <maximumf>, %163, %cst_89 [2] : vector<2x8x8xf32> to vector<2x8xf32>
    %165 = vector.shape_cast %164 : vector<2x8xf32> to vector<2x8x1xf32>
    %166 = vector.broadcast %165 : vector<2x8x1xf32> to vector<2x8x8xf32>
    %167 = arith.subf %163, %166 : vector<2x8x8xf32>
    %168 = math.exp %167 : vector<2x8x8xf32>
    %cst_90 = arith.constant dense<0.000000e+00> : vector<2x8xf32>
    %169 = vector.multi_reduction <add>, %168, %cst_90 [2] : vector<2x8x8xf32> to vector<2x8xf32>
    %170 = vector.shape_cast %169 : vector<2x8xf32> to vector<2x8x1xf32>
    %171 = tpu.reciprocal %170 {approx = true} : vector<2x8x1xf32> -> vector<2x8x1xf32>
    %172 = vector.broadcast %171 : vector<2x8x1xf32> to vector<2x8x8xf32>
    %173 = arith.mulf %168, %172 : vector<2x8x8xf32>
    %174 = vector.shape_cast %173 : vector<2x8x8xf32> to vector<16x8xf32>
    "tpu.trace_start"() <{level = 10 : i32, message = "bqk,bkd->bqd"}> : () -> ()
    %cst_91 = arith.constant dense<0.000000e+00> : vector<2x8x8xf32>
    %175 = tpu.matmul %173, %160, %cst_91 {dimension_numbers = #tpu.dot_dimension_numbers<[2], [1], [1], [2], [0, 0, 0, 1, 1, 2], [0], [0]>} : vector<2x8x8xf32>, vector<2x8x8xf32>, vector<2x8x8xf32> -> vector<2x8x8xf32>
    "tpu.trace_stop"() : () -> ()
    %176 = vector.shape_cast %175 : vector<2x8x8xf32> to vector<16x8xf32>
    %c1_92 = arith.constant 1 : index
    %c0_93 = arith.constant 0 : index
    %c0_94 = arith.constant 0 : index
    %177 = vector.load %arg5[%c1_92, %c0_93, %c0_94] : memref<8x8x32xf32, #tpu.memory_space<vmem>>, vector<1x8x32xf32>
    %178 = vector.shape_cast %177 : vector<1x8x32xf32> to vector<8x32xf32>
    %cst_95 = arith.constant dense<0.000000e+00> : vector<16x32xf32>
    %179 = tpu.matmul %176, %178, %cst_95 {dimension_numbers = #tpu.dot_dimension_numbers<[1], [0], [0], [1], [0, 0, 1, 1], [], []>} : vector<16x8xf32>, vector<8x32xf32>, vector<16x32xf32> -> vector<16x32xf32>
    %180 = arith.addf %136, %179 : vector<16x32xf32>
    %c2_96 = arith.constant 2 : index
    %c0_97 = arith.constant 0 : index
    %c0_98 = arith.constant 0 : index
    %181 = vector.load %arg3[%c2_96, %c0_97, %c0_98] : memref<24x32x8xf32, #tpu.memory_space<vmem>>, vector<1x32x8xf32>
    %182 = vector.shape_cast %181 : vector<1x32x8xf32> to vector<32x8xf32>
    %cst_99 = arith.constant dense<0.000000e+00> : vector<16x8xf32>
    %183 = tpu.matmul %88, %182, %cst_99 {dimension_numbers = #tpu.dot_dimension_numbers<[1], [0], [0], [1], [0, 0, 1, 1], [], []>} : vector<16x32xf32>, vector<32x8xf32>, vector<16x8xf32> -> vector<16x8xf32>
    %c2_100 = arith.constant 2 : index
    %c0_101 = arith.constant 0 : index
    %c0_102 = arith.constant 0 : index
    %184 = vector.load %arg4[%c2_100, %c0_101, %c0_102] : memref<24x1x8xf32, #tpu.memory_space<vmem>>, vector<1x1x8xf32>
    %185 = vector.shape_cast %184 : vector<1x1x8xf32> to vector<1x8xf32>
    %186 = vector.broadcast %185 : vector<1x8xf32> to vector<16x8xf32>
    %187 = arith.addf %183, %186 : vector<16x8xf32>
    %188 = vector.shape_cast %187 : vector<16x8xf32> to vector<2x8x8xf32>
    %c6 = arith.constant 6 : index
    %c0_103 = arith.constant 0 : index
    %c0_104 = arith.constant 0 : index
    %189 = vector.load %arg3[%c6, %c0_103, %c0_104] : memref<24x32x8xf32, #tpu.memory_space<vmem>>, vector<1x32x8xf32>
    %190 = vector.shape_cast %189 : vector<1x32x8xf32> to vector<32x8xf32>
    %cst_105 = arith.constant dense<0.000000e+00> : vector<16x8xf32>
    %191 = tpu.matmul %88, %190, %cst_105 {dimension_numbers = #tpu.dot_dimension_numbers<[1], [0], [0], [1], [0, 0, 1, 1], [], []>} : vector<16x32xf32>, vector<32x8xf32>, vector<16x8xf32> -> vector<16x8xf32>
    %c6_106 = arith.constant 6 : index
    %c0_107 = arith.constant 0 : index
    %c0_108 = arith.constant 0 : index
    %192 = vector.load %arg4[%c6_106, %c0_107, %c0_108] : memref<24x1x8xf32, #tpu.memory_space<vmem>>, vector<1x1x8xf32>
    %193 = vector.shape_cast %192 : vector<1x1x8xf32> to vector<1x8xf32>
    %194 = vector.broadcast %193 : vector<1x8xf32> to vector<16x8xf32>
    %195 = arith.addf %191, %194 : vector<16x8xf32>
    %196 = vector.shape_cast %195 : vector<16x8xf32> to vector<2x8x8xf32>
    %c10 = arith.constant 10 : index
    %c0_109 = arith.constant 0 : index
    %c0_110 = arith.constant 0 : index
    %197 = vector.load %arg3[%c10, %c0_109, %c0_110] : memref<24x32x8xf32, #tpu.memory_space<vmem>>, vector<1x32x8xf32>
    %198 = vector.shape_cast %197 : vector<1x32x8xf32> to vector<32x8xf32>
    %cst_111 = arith.constant dense<0.000000e+00> : vector<16x8xf32>
    %199 = tpu.matmul %88, %198, %cst_111 {dimension_numbers = #tpu.dot_dimension_numbers<[1], [0], [0], [1], [0, 0, 1, 1], [], []>} : vector<16x32xf32>, vector<32x8xf32>, vector<16x8xf32> -> vector<16x8xf32>
    %c10_112 = arith.constant 10 : index
    %c0_113 = arith.constant 0 : index
    %c0_114 = arith.constant 0 : index
    %200 = vector.load %arg4[%c10_112, %c0_113, %c0_114] : memref<24x1x8xf32, #tpu.memory_space<vmem>>, vector<1x1x8xf32>
    %201 = vector.shape_cast %200 : vector<1x1x8xf32> to vector<1x8xf32>
    %202 = vector.broadcast %201 : vector<1x8xf32> to vector<16x8xf32>
    %203 = arith.addf %199, %202 : vector<16x8xf32>
    %204 = vector.shape_cast %203 : vector<16x8xf32> to vector<2x8x8xf32>
    "tpu.trace_start"() <{level = 10 : i32, message = "bqd,bkd->bqk"}> : () -> ()
    %cst_115 = arith.constant dense<0.000000e+00> : vector<2x8x8xf32>
    %205 = tpu.matmul %188, %196, %cst_115 {dimension_numbers = #tpu.dot_dimension_numbers<[2], [2], [1], [1], [0, 0, 0, 1, 1, 1], [0], [0]>} : vector<2x8x8xf32>, vector<2x8x8xf32>, vector<2x8x8xf32> -> vector<2x8x8xf32>
    "tpu.trace_stop"() : () -> ()
    %206 = vector.broadcast %66 : vector<2x1x8xf32> to vector<2x8x8xf32>
    %207 = arith.subf %205, %206 : vector<2x8x8xf32>
    %cst_116 = arith.constant dense<0xFF800000> : vector<2x8xf32>
    %208 = vector.multi_reduction <maximumf>, %207, %cst_116 [2] : vector<2x8x8xf32> to vector<2x8xf32>
    %209 = vector.shape_cast %208 : vector<2x8xf32> to vector<2x8x1xf32>
    %210 = vector.broadcast %209 : vector<2x8x1xf32> to vector<2x8x8xf32>
    %211 = arith.subf %207, %210 : vector<2x8x8xf32>
    %212 = math.exp %211 : vector<2x8x8xf32>
    %cst_117 = arith.constant dense<0.000000e+00> : vector<2x8xf32>
    %213 = vector.multi_reduction <add>, %212, %cst_117 [2] : vector<2x8x8xf32> to vector<2x8xf32>
    %214 = vector.shape_cast %213 : vector<2x8xf32> to vector<2x8x1xf32>
    %215 = tpu.reciprocal %214 {approx = true} : vector<2x8x1xf32> -> vector<2x8x1xf32>
    %216 = vector.broadcast %215 : vector<2x8x1xf32> to vector<2x8x8xf32>
    %217 = arith.mulf %212, %216 : vector<2x8x8xf32>
    %218 = vector.shape_cast %217 : vector<2x8x8xf32> to vector<16x8xf32>
    "tpu.trace_start"() <{level = 10 : i32, message = "bqk,bkd->bqd"}> : () -> ()
    %cst_118 = arith.constant dense<0.000000e+00> : vector<2x8x8xf32>
    %219 = tpu.matmul %217, %204, %cst_118 {dimension_numbers = #tpu.dot_dimension_numbers<[2], [1], [1], [2], [0, 0, 0, 1, 1, 2], [0], [0]>} : vector<2x8x8xf32>, vector<2x8x8xf32>, vector<2x8x8xf32> -> vector<2x8x8xf32>
    "tpu.trace_stop"() : () -> ()
    %220 = vector.shape_cast %219 : vector<2x8x8xf32> to vector<16x8xf32>
    %c2_119 = arith.constant 2 : index
    %c0_120 = arith.constant 0 : index
    %c0_121 = arith.constant 0 : index
    %221 = vector.load %arg5[%c2_119, %c0_120, %c0_121] : memref<8x8x32xf32, #tpu.memory_space<vmem>>, vector<1x8x32xf32>
    %222 = vector.shape_cast %221 : vector<1x8x32xf32> to vector<8x32xf32>
    %cst_122 = arith.constant dense<0.000000e+00> : vector<16x32xf32>
    %223 = tpu.matmul %220, %222, %cst_122 {dimension_numbers = #tpu.dot_dimension_numbers<[1], [0], [0], [1], [0, 0, 1, 1], [], []>} : vector<16x8xf32>, vector<8x32xf32>, vector<16x32xf32> -> vector<16x32xf32>
    %224 = arith.addf %180, %223 : vector<16x32xf32>
    %c3_123 = arith.constant 3 : index
    %c0_124 = arith.constant 0 : index
    %c0_125 = arith.constant 0 : index
    %225 = vector.load %arg3[%c3_123, %c0_124, %c0_125] : memref<24x32x8xf32, #tpu.memory_space<vmem>>, vector<1x32x8xf32>
    %226 = vector.shape_cast %225 : vector<1x32x8xf32> to vector<32x8xf32>
    %cst_126 = arith.constant dense<0.000000e+00> : vector<16x8xf32>
    %227 = tpu.matmul %88, %226, %cst_126 {dimension_numbers = #tpu.dot_dimension_numbers<[1], [0], [0], [1], [0, 0, 1, 1], [], []>} : vector<16x32xf32>, vector<32x8xf32>, vector<16x8xf32> -> vector<16x8xf32>
    %c3_127 = arith.constant 3 : index
    %c0_128 = arith.constant 0 : index
    %c0_129 = arith.constant 0 : index
    %228 = vector.load %arg4[%c3_127, %c0_128, %c0_129] : memref<24x1x8xf32, #tpu.memory_space<vmem>>, vector<1x1x8xf32>
    %229 = vector.shape_cast %228 : vector<1x1x8xf32> to vector<1x8xf32>
    %230 = vector.broadcast %229 : vector<1x8xf32> to vector<16x8xf32>
    %231 = arith.addf %227, %230 : vector<16x8xf32>
    %232 = vector.shape_cast %231 : vector<16x8xf32> to vector<2x8x8xf32>
    %c7 = arith.constant 7 : index
    %c0_130 = arith.constant 0 : index
    %c0_131 = arith.constant 0 : index
    %233 = vector.load %arg3[%c7, %c0_130, %c0_131] : memref<24x32x8xf32, #tpu.memory_space<vmem>>, vector<1x32x8xf32>
    %234 = vector.shape_cast %233 : vector<1x32x8xf32> to vector<32x8xf32>
    %cst_132 = arith.constant dense<0.000000e+00> : vector<16x8xf32>
    %235 = tpu.matmul %88, %234, %cst_132 {dimension_numbers = #tpu.dot_dimension_numbers<[1], [0], [0], [1], [0, 0, 1, 1], [], []>} : vector<16x32xf32>, vector<32x8xf32>, vector<16x8xf32> -> vector<16x8xf32>
    %c7_133 = arith.constant 7 : index
    %c0_134 = arith.constant 0 : index
    %c0_135 = arith.constant 0 : index
    %236 = vector.load %arg4[%c7_133, %c0_134, %c0_135] : memref<24x1x8xf32, #tpu.memory_space<vmem>>, vector<1x1x8xf32>
    %237 = vector.shape_cast %236 : vector<1x1x8xf32> to vector<1x8xf32>
    %238 = vector.broadcast %237 : vector<1x8xf32> to vector<16x8xf32>
    %239 = arith.addf %235, %238 : vector<16x8xf32>
    %240 = vector.shape_cast %239 : vector<16x8xf32> to vector<2x8x8xf32>
    %c11 = arith.constant 11 : index
    %c0_136 = arith.constant 0 : index
    %c0_137 = arith.constant 0 : index
    %241 = vector.load %arg3[%c11, %c0_136, %c0_137] : memref<24x32x8xf32, #tpu.memory_space<vmem>>, vector<1x32x8xf32>
    %242 = vector.shape_cast %241 : vector<1x32x8xf32> to vector<32x8xf32>
    %cst_138 = arith.constant dense<0.000000e+00> : vector<16x8xf32>
    %243 = tpu.matmul %88, %242, %cst_138 {dimension_numbers = #tpu.dot_dimension_numbers<[1], [0], [0], [1], [0, 0, 1, 1], [], []>} : vector<16x32xf32>, vector<32x8xf32>, vector<16x8xf32> -> vector<16x8xf32>
    %c11_139 = arith.constant 11 : index
    %c0_140 = arith.constant 0 : index
    %c0_141 = arith.constant 0 : index
    %244 = vector.load %arg4[%c11_139, %c0_140, %c0_141] : memref<24x1x8xf32, #tpu.memory_space<vmem>>, vector<1x1x8xf32>
    %245 = vector.shape_cast %244 : vector<1x1x8xf32> to vector<1x8xf32>
    %246 = vector.broadcast %245 : vector<1x8xf32> to vector<16x8xf32>
    %247 = arith.addf %243, %246 : vector<16x8xf32>
    %248 = vector.shape_cast %247 : vector<16x8xf32> to vector<2x8x8xf32>
    "tpu.trace_start"() <{level = 10 : i32, message = "bqd,bkd->bqk"}> : () -> ()
    %cst_142 = arith.constant dense<0.000000e+00> : vector<2x8x8xf32>
    %249 = tpu.matmul %232, %240, %cst_142 {dimension_numbers = #tpu.dot_dimension_numbers<[2], [2], [1], [1], [0, 0, 0, 1, 1, 1], [0], [0]>} : vector<2x8x8xf32>, vector<2x8x8xf32>, vector<2x8x8xf32> -> vector<2x8x8xf32>
    "tpu.trace_stop"() : () -> ()
    %250 = vector.broadcast %66 : vector<2x1x8xf32> to vector<2x8x8xf32>
    %251 = arith.subf %249, %250 : vector<2x8x8xf32>
    %cst_143 = arith.constant dense<0xFF800000> : vector<2x8xf32>
    %252 = vector.multi_reduction <maximumf>, %251, %cst_143 [2] : vector<2x8x8xf32> to vector<2x8xf32>
    %253 = vector.shape_cast %252 : vector<2x8xf32> to vector<2x8x1xf32>
    %254 = vector.broadcast %253 : vector<2x8x1xf32> to vector<2x8x8xf32>
    %255 = arith.subf %251, %254 : vector<2x8x8xf32>
    %256 = math.exp %255 : vector<2x8x8xf32>
    %cst_144 = arith.constant dense<0.000000e+00> : vector<2x8xf32>
    %257 = vector.multi_reduction <add>, %256, %cst_144 [2] : vector<2x8x8xf32> to vector<2x8xf32>
    %258 = vector.shape_cast %257 : vector<2x8xf32> to vector<2x8x1xf32>
    %259 = tpu.reciprocal %258 {approx = true} : vector<2x8x1xf32> -> vector<2x8x1xf32>
    %260 = vector.broadcast %259 : vector<2x8x1xf32> to vector<2x8x8xf32>
    %261 = arith.mulf %256, %260 : vector<2x8x8xf32>
    %262 = vector.shape_cast %261 : vector<2x8x8xf32> to vector<16x8xf32>
    "tpu.trace_start"() <{level = 10 : i32, message = "bqk,bkd->bqd"}> : () -> ()
    %cst_145 = arith.constant dense<0.000000e+00> : vector<2x8x8xf32>
    %263 = tpu.matmul %261, %248, %cst_145 {dimension_numbers = #tpu.dot_dimension_numbers<[2], [1], [1], [2], [0, 0, 0, 1, 1, 2], [0], [0]>} : vector<2x8x8xf32>, vector<2x8x8xf32>, vector<2x8x8xf32> -> vector<2x8x8xf32>
    "tpu.trace_stop"() : () -> ()
    %264 = vector.shape_cast %263 : vector<2x8x8xf32> to vector<16x8xf32>
    %c3_146 = arith.constant 3 : index
    %c0_147 = arith.constant 0 : index
    %c0_148 = arith.constant 0 : index
    %265 = vector.load %arg5[%c3_146, %c0_147, %c0_148] : memref<8x8x32xf32, #tpu.memory_space<vmem>>, vector<1x8x32xf32>
    %266 = vector.shape_cast %265 : vector<1x8x32xf32> to vector<8x32xf32>
    %cst_149 = arith.constant dense<0.000000e+00> : vector<16x32xf32>
    %267 = tpu.matmul %264, %266, %cst_149 {dimension_numbers = #tpu.dot_dimension_numbers<[1], [0], [0], [1], [0, 0, 1, 1], [], []>} : vector<16x8xf32>, vector<8x32xf32>, vector<16x32xf32> -> vector<16x32xf32>
    %268 = arith.addf %224, %267 : vector<16x32xf32>
    %269 = arith.addf %60, %268 : vector<16x32xf32>
    %cst_150 = arith.constant dense<0.000000e+00> : vector<16xf32>
    %270 = vector.multi_reduction <add>, %269, %cst_150 [1] : vector<16x32xf32> to vector<16xf32>
    %271 = vector.shape_cast %270 : vector<16xf32> to vector<16x1xf32>
    %cst_151 = arith.constant 3.200000e+01 : f32
    %272 = vector.broadcast %cst_151 : f32 to vector<16x1xf32>
    %273 = arith.divf %271, %272 : vector<16x1xf32>
    %274 = vector.broadcast %273 : vector<16x1xf32> to vector<16x32xf32>
    %275 = arith.subf %269, %274 : vector<16x32xf32>
    %276 = arith.mulf %275, %275 : vector<16x32xf32>
    %cst_152 = arith.constant dense<0.000000e+00> : vector<16xf32>
    %277 = vector.multi_reduction <add>, %276, %cst_152 [1] : vector<16x32xf32> to vector<16xf32>
    %278 = vector.shape_cast %277 : vector<16xf32> to vector<16x1xf32>
    %cst_153 = arith.constant 3.200000e+01 : f32
    %279 = vector.broadcast %cst_153 : f32 to vector<16x1xf32>
    %280 = arith.divf %278, %279 : vector<16x1xf32>
    %281 = vector.broadcast %273 : vector<16x1xf32> to vector<16x32xf32>
    %282 = arith.subf %269, %281 : vector<16x32xf32>
    %cst_154 = arith.constant 9.99999996E-13 : f32
    %283 = vector.broadcast %cst_154 : f32 to vector<16x1xf32>
    %284 = arith.addf %280, %283 : vector<16x1xf32>
    %285 = math.rsqrt %284 : vector<16x1xf32>
    %286 = vector.broadcast %285 : vector<16x1xf32> to vector<16x32xf32>
    %287 = arith.mulf %282, %286 : vector<16x32xf32>
    %288 = vector.broadcast %27 : vector<1x32xf32> to vector<16x32xf32>
    %289 = arith.mulf %287, %288 : vector<16x32xf32>
    %290 = vector.broadcast %28 : vector<1x32xf32> to vector<16x32xf32>
    %291 = arith.addf %289, %290 : vector<16x32xf32>
    %c0_155 = arith.constant 0 : index
    %c0_156 = arith.constant 0 : index
    %c0_157 = arith.constant 0 : index
    %292 = vector.load %arg6[%c0_155, %c0_156, %c0_157] : memref<2x32x128xf32, #tpu.memory_space<vmem>>, vector<1x32x128xf32>
    %293 = vector.shape_cast %292 : vector<1x32x128xf32> to vector<32x128xf32>
    %cst_158 = arith.constant dense<0.000000e+00> : vector<16x128xf32>
    %294 = tpu.matmul %291, %293, %cst_158 {dimension_numbers = #tpu.dot_dimension_numbers<[1], [0], [0], [1], [0, 0, 1, 1], [], []>} : vector<16x32xf32>, vector<32x128xf32>, vector<16x128xf32> -> vector<16x128xf32>
    %295 = vector.broadcast %89 : vector<1x128xf32> to vector<16x128xf32>
    %296 = arith.addf %294, %295 : vector<16x128xf32>
    %cst_159 = arith.constant 5.000000e-01 : f32
    %297 = vector.broadcast %cst_159 : f32 to vector<16x128xf32>
    %298 = arith.mulf %296, %297 : vector<16x128xf32>
    %cst_160 = arith.constant 0.707106769 : f32
    %299 = vector.broadcast %cst_160 : f32 to vector<16x128xf32>
    %300 = arith.mulf %296, %299 : vector<16x128xf32>
    %301 = math.erf %300 : vector<16x128xf32>
    %cst_161 = arith.constant 1.000000e+00 : f32
    %302 = vector.broadcast %cst_161 : f32 to vector<16x128xf32>
    %303 = arith.addf %302, %301 : vector<16x128xf32>
    %304 = arith.mulf %298, %303 : vector<16x128xf32>
    %c0_162 = arith.constant 0 : index
    %c0_163 = arith.constant 0 : index
    %c0_164 = arith.constant 0 : index
    %305 = vector.load %arg7[%c0_162, %c0_163, %c0_164] : memref<2x128x32xf32, #tpu.memory_space<vmem>>, vector<1x128x32xf32>
    %306 = vector.shape_cast %305 : vector<1x128x32xf32> to vector<128x32xf32>
    %cst_165 = arith.constant dense<0.000000e+00> : vector<16x32xf32>
    %307 = tpu.matmul %304, %306, %cst_165 {dimension_numbers = #tpu.dot_dimension_numbers<[1], [0], [0], [1], [0, 0, 1, 1], [], []>} : vector<16x128xf32>, vector<128x32xf32>, vector<16x32xf32> -> vector<16x32xf32>
    %308 = vector.broadcast %91 : vector<1x32xf32> to vector<16x32xf32>
    %309 = arith.addf %307, %308 : vector<16x32xf32>
    %310 = arith.addf %269, %309 : vector<16x32xf32>
    %cst_166 = arith.constant dense<0.000000e+00> : vector<16xf32>
    %311 = vector.multi_reduction <add>, %310, %cst_166 [1] : vector<16x32xf32> to vector<16xf32>
    %312 = vector.shape_cast %311 : vector<16xf32> to vector<16x1xf32>
    %cst_167 = arith.constant 3.200000e+01 : f32
    %313 = vector.broadcast %cst_167 : f32 to vector<16x1xf32>
    %314 = arith.divf %312, %313 : vector<16x1xf32>
    %315 = vector.broadcast %314 : vector<16x1xf32> to vector<16x32xf32>
    %316 = arith.subf %310, %315 : vector<16x32xf32>
    %317 = arith.mulf %316, %316 : vector<16x32xf32>
    %cst_168 = arith.constant dense<0.000000e+00> : vector<16xf32>
    %318 = vector.multi_reduction <add>, %317, %cst_168 [1] : vector<16x32xf32> to vector<16xf32>
    %319 = vector.shape_cast %318 : vector<16xf32> to vector<16x1xf32>
    %cst_169 = arith.constant 3.200000e+01 : f32
    %320 = vector.broadcast %cst_169 : f32 to vector<16x1xf32>
    %321 = arith.divf %319, %320 : vector<16x1xf32>
    %322 = vector.broadcast %314 : vector<16x1xf32> to vector<16x32xf32>
    %323 = arith.subf %310, %322 : vector<16x32xf32>
    %cst_170 = arith.constant 9.99999996E-13 : f32
    %324 = vector.broadcast %cst_170 : f32 to vector<16x1xf32>
    %325 = arith.addf %321, %324 : vector<16x1xf32>
    %326 = math.rsqrt %325 : vector<16x1xf32>
    %327 = vector.broadcast %326 : vector<16x1xf32> to vector<16x32xf32>
    %328 = arith.mulf %323, %327 : vector<16x32xf32>
    %329 = vector.broadcast %27 : vector<1x32xf32> to vector<16x32xf32>
    %330 = arith.mulf %328, %329 : vector<16x32xf32>
    %331 = vector.broadcast %28 : vector<1x32xf32> to vector<16x32xf32>
    %332 = arith.addf %330, %331 : vector<16x32xf32>
    %c1_171 = arith.constant 1 : index
    %c0_172 = arith.constant 0 : index
    %333 = vector.load %arg8[%c1_171, %c0_172] : memref<2x192xf32, #tpu.memory_space<vmem>>, vector<1x128xf32>
    %c1_173 = arith.constant 1 : index
    %c128_174 = arith.constant 128 : index
    %334 = vector.load %arg8[%c1_173, %c128_174] : memref<2x192xf32, #tpu.memory_space<vmem>>, vector<1x32xf32>
    %c1_175 = arith.constant 1 : index
    %c160_176 = arith.constant 160 : index
    %335 = vector.load %arg8[%c1_175, %c160_176] : memref<2x192xf32, #tpu.memory_space<vmem>>, vector<1x32xf32>
    %c12 = arith.constant 12 : index
    %c0_177 = arith.constant 0 : index
    %c0_178 = arith.constant 0 : index
    %336 = vector.load %arg3[%c12, %c0_177, %c0_178] : memref<24x32x8xf32, #tpu.memory_space<vmem>>, vector<1x32x8xf32>
    %337 = vector.shape_cast %336 : vector<1x32x8xf32> to vector<32x8xf32>
    %cst_179 = arith.constant dense<0.000000e+00> : vector<16x8xf32>
    %338 = tpu.matmul %332, %337, %cst_179 {dimension_numbers = #tpu.dot_dimension_numbers<[1], [0], [0], [1], [0, 0, 1, 1], [], []>} : vector<16x32xf32>, vector<32x8xf32>, vector<16x8xf32> -> vector<16x8xf32>
    %c12_180 = arith.constant 12 : index
    %c0_181 = arith.constant 0 : index
    %c0_182 = arith.constant 0 : index
    %339 = vector.load %arg4[%c12_180, %c0_181, %c0_182] : memref<24x1x8xf32, #tpu.memory_space<vmem>>, vector<1x1x8xf32>
    %340 = vector.shape_cast %339 : vector<1x1x8xf32> to vector<1x8xf32>
    %341 = vector.broadcast %340 : vector<1x8xf32> to vector<16x8xf32>
    %342 = arith.addf %338, %341 : vector<16x8xf32>
    %343 = vector.shape_cast %342 : vector<16x8xf32> to vector<2x8x8xf32>
    %c16 = arith.constant 16 : index
    %c0_183 = arith.constant 0 : index
    %c0_184 = arith.constant 0 : index
    %344 = vector.load %arg3[%c16, %c0_183, %c0_184] : memref<24x32x8xf32, #tpu.memory_space<vmem>>, vector<1x32x8xf32>
    %345 = vector.shape_cast %344 : vector<1x32x8xf32> to vector<32x8xf32>
    %cst_185 = arith.constant dense<0.000000e+00> : vector<16x8xf32>
    %346 = tpu.matmul %332, %345, %cst_185 {dimension_numbers = #tpu.dot_dimension_numbers<[1], [0], [0], [1], [0, 0, 1, 1], [], []>} : vector<16x32xf32>, vector<32x8xf32>, vector<16x8xf32> -> vector<16x8xf32>
    %c16_186 = arith.constant 16 : index
    %c0_187 = arith.constant 0 : index
    %c0_188 = arith.constant 0 : index
    %347 = vector.load %arg4[%c16_186, %c0_187, %c0_188] : memref<24x1x8xf32, #tpu.memory_space<vmem>>, vector<1x1x8xf32>
    %348 = vector.shape_cast %347 : vector<1x1x8xf32> to vector<1x8xf32>
    %349 = vector.broadcast %348 : vector<1x8xf32> to vector<16x8xf32>
    %350 = arith.addf %346, %349 : vector<16x8xf32>
    %351 = vector.shape_cast %350 : vector<16x8xf32> to vector<2x8x8xf32>
    %c20 = arith.constant 20 : index
    %c0_189 = arith.constant 0 : index
    %c0_190 = arith.constant 0 : index
    %352 = vector.load %arg3[%c20, %c0_189, %c0_190] : memref<24x32x8xf32, #tpu.memory_space<vmem>>, vector<1x32x8xf32>
    %353 = vector.shape_cast %352 : vector<1x32x8xf32> to vector<32x8xf32>
    %cst_191 = arith.constant dense<0.000000e+00> : vector<16x8xf32>
    %354 = tpu.matmul %332, %353, %cst_191 {dimension_numbers = #tpu.dot_dimension_numbers<[1], [0], [0], [1], [0, 0, 1, 1], [], []>} : vector<16x32xf32>, vector<32x8xf32>, vector<16x8xf32> -> vector<16x8xf32>
    %c20_192 = arith.constant 20 : index
    %c0_193 = arith.constant 0 : index
    %c0_194 = arith.constant 0 : index
    %355 = vector.load %arg4[%c20_192, %c0_193, %c0_194] : memref<24x1x8xf32, #tpu.memory_space<vmem>>, vector<1x1x8xf32>
    %356 = vector.shape_cast %355 : vector<1x1x8xf32> to vector<1x8xf32>
    %357 = vector.broadcast %356 : vector<1x8xf32> to vector<16x8xf32>
    %358 = arith.addf %354, %357 : vector<16x8xf32>
    %359 = vector.shape_cast %358 : vector<16x8xf32> to vector<2x8x8xf32>
    "tpu.trace_start"() <{level = 10 : i32, message = "bqd,bkd->bqk"}> : () -> ()
    %cst_195 = arith.constant dense<0.000000e+00> : vector<2x8x8xf32>
    %360 = tpu.matmul %343, %351, %cst_195 {dimension_numbers = #tpu.dot_dimension_numbers<[2], [2], [1], [1], [0, 0, 0, 1, 1, 1], [0], [0]>} : vector<2x8x8xf32>, vector<2x8x8xf32>, vector<2x8x8xf32> -> vector<2x8x8xf32>
    "tpu.trace_stop"() : () -> ()
    %361 = vector.broadcast %66 : vector<2x1x8xf32> to vector<2x8x8xf32>
    %362 = arith.subf %360, %361 : vector<2x8x8xf32>
    %cst_196 = arith.constant dense<0xFF800000> : vector<2x8xf32>
    %363 = vector.multi_reduction <maximumf>, %362, %cst_196 [2] : vector<2x8x8xf32> to vector<2x8xf32>
    %364 = vector.shape_cast %363 : vector<2x8xf32> to vector<2x8x1xf32>
    %365 = vector.broadcast %364 : vector<2x8x1xf32> to vector<2x8x8xf32>
    %366 = arith.subf %362, %365 : vector<2x8x8xf32>
    %367 = math.exp %366 : vector<2x8x8xf32>
    %cst_197 = arith.constant dense<0.000000e+00> : vector<2x8xf32>
    %368 = vector.multi_reduction <add>, %367, %cst_197 [2] : vector<2x8x8xf32> to vector<2x8xf32>
    %369 = vector.shape_cast %368 : vector<2x8xf32> to vector<2x8x1xf32>
    %370 = tpu.reciprocal %369 {approx = true} : vector<2x8x1xf32> -> vector<2x8x1xf32>
    %371 = vector.broadcast %370 : vector<2x8x1xf32> to vector<2x8x8xf32>
    %372 = arith.mulf %367, %371 : vector<2x8x8xf32>
    %373 = vector.shape_cast %372 : vector<2x8x8xf32> to vector<16x8xf32>
    "tpu.trace_start"() <{level = 10 : i32, message = "bqk,bkd->bqd"}> : () -> ()
    %cst_198 = arith.constant dense<0.000000e+00> : vector<2x8x8xf32>
    %374 = tpu.matmul %372, %359, %cst_198 {dimension_numbers = #tpu.dot_dimension_numbers<[2], [1], [1], [2], [0, 0, 0, 1, 1, 2], [0], [0]>} : vector<2x8x8xf32>, vector<2x8x8xf32>, vector<2x8x8xf32> -> vector<2x8x8xf32>
    "tpu.trace_stop"() : () -> ()
    %375 = vector.shape_cast %374 : vector<2x8x8xf32> to vector<16x8xf32>
    %c4_199 = arith.constant 4 : index
    %c0_200 = arith.constant 0 : index
    %c0_201 = arith.constant 0 : index
    %376 = vector.load %arg5[%c4_199, %c0_200, %c0_201] : memref<8x8x32xf32, #tpu.memory_space<vmem>>, vector<1x8x32xf32>
    %377 = vector.shape_cast %376 : vector<1x8x32xf32> to vector<8x32xf32>
    %cst_202 = arith.constant dense<0.000000e+00> : vector<16x32xf32>
    %378 = tpu.matmul %375, %377, %cst_202 {dimension_numbers = #tpu.dot_dimension_numbers<[1], [0], [0], [1], [0, 0, 1, 1], [], []>} : vector<16x8xf32>, vector<8x32xf32>, vector<16x32xf32> -> vector<16x32xf32>
    %379 = vector.broadcast %334 : vector<1x32xf32> to vector<16x32xf32>
    %380 = arith.addf %379, %378 : vector<16x32xf32>
    %c13 = arith.constant 13 : index
    %c0_203 = arith.constant 0 : index
    %c0_204 = arith.constant 0 : index
    %381 = vector.load %arg3[%c13, %c0_203, %c0_204] : memref<24x32x8xf32, #tpu.memory_space<vmem>>, vector<1x32x8xf32>
    %382 = vector.shape_cast %381 : vector<1x32x8xf32> to vector<32x8xf32>
    %cst_205 = arith.constant dense<0.000000e+00> : vector<16x8xf32>
    %383 = tpu.matmul %332, %382, %cst_205 {dimension_numbers = #tpu.dot_dimension_numbers<[1], [0], [0], [1], [0, 0, 1, 1], [], []>} : vector<16x32xf32>, vector<32x8xf32>, vector<16x8xf32> -> vector<16x8xf32>
    %c13_206 = arith.constant 13 : index
    %c0_207 = arith.constant 0 : index
    %c0_208 = arith.constant 0 : index
    %384 = vector.load %arg4[%c13_206, %c0_207, %c0_208] : memref<24x1x8xf32, #tpu.memory_space<vmem>>, vector<1x1x8xf32>
    %385 = vector.shape_cast %384 : vector<1x1x8xf32> to vector<1x8xf32>
    %386 = vector.broadcast %385 : vector<1x8xf32> to vector<16x8xf32>
    %387 = arith.addf %383, %386 : vector<16x8xf32>
    %388 = vector.shape_cast %387 : vector<16x8xf32> to vector<2x8x8xf32>
    %c17 = arith.constant 17 : index
    %c0_209 = arith.constant 0 : index
    %c0_210 = arith.constant 0 : index
    %389 = vector.load %arg3[%c17, %c0_209, %c0_210] : memref<24x32x8xf32, #tpu.memory_space<vmem>>, vector<1x32x8xf32>
    %390 = vector.shape_cast %389 : vector<1x32x8xf32> to vector<32x8xf32>
    %cst_211 = arith.constant dense<0.000000e+00> : vector<16x8xf32>
    %391 = tpu.matmul %332, %390, %cst_211 {dimension_numbers = #tpu.dot_dimension_numbers<[1], [0], [0], [1], [0, 0, 1, 1], [], []>} : vector<16x32xf32>, vector<32x8xf32>, vector<16x8xf32> -> vector<16x8xf32>
    %c17_212 = arith.constant 17 : index
    %c0_213 = arith.constant 0 : index
    %c0_214 = arith.constant 0 : index
    %392 = vector.load %arg4[%c17_212, %c0_213, %c0_214] : memref<24x1x8xf32, #tpu.memory_space<vmem>>, vector<1x1x8xf32>
    %393 = vector.shape_cast %392 : vector<1x1x8xf32> to vector<1x8xf32>
    %394 = vector.broadcast %393 : vector<1x8xf32> to vector<16x8xf32>
    %395 = arith.addf %391, %394 : vector<16x8xf32>
    %396 = vector.shape_cast %395 : vector<16x8xf32> to vector<2x8x8xf32>
    %c21 = arith.constant 21 : index
    %c0_215 = arith.constant 0 : index
    %c0_216 = arith.constant 0 : index
    %397 = vector.load %arg3[%c21, %c0_215, %c0_216] : memref<24x32x8xf32, #tpu.memory_space<vmem>>, vector<1x32x8xf32>
    %398 = vector.shape_cast %397 : vector<1x32x8xf32> to vector<32x8xf32>
    %cst_217 = arith.constant dense<0.000000e+00> : vector<16x8xf32>
    %399 = tpu.matmul %332, %398, %cst_217 {dimension_numbers = #tpu.dot_dimension_numbers<[1], [0], [0], [1], [0, 0, 1, 1], [], []>} : vector<16x32xf32>, vector<32x8xf32>, vector<16x8xf32> -> vector<16x8xf32>
    %c21_218 = arith.constant 21 : index
    %c0_219 = arith.constant 0 : index
    %c0_220 = arith.constant 0 : index
    %400 = vector.load %arg4[%c21_218, %c0_219, %c0_220] : memref<24x1x8xf32, #tpu.memory_space<vmem>>, vector<1x1x8xf32>
    %401 = vector.shape_cast %400 : vector<1x1x8xf32> to vector<1x8xf32>
    %402 = vector.broadcast %401 : vector<1x8xf32> to vector<16x8xf32>
    %403 = arith.addf %399, %402 : vector<16x8xf32>
    %404 = vector.shape_cast %403 : vector<16x8xf32> to vector<2x8x8xf32>
    "tpu.trace_start"() <{level = 10 : i32, message = "bqd,bkd->bqk"}> : () -> ()
    %cst_221 = arith.constant dense<0.000000e+00> : vector<2x8x8xf32>
    %405 = tpu.matmul %388, %396, %cst_221 {dimension_numbers = #tpu.dot_dimension_numbers<[2], [2], [1], [1], [0, 0, 0, 1, 1, 1], [0], [0]>} : vector<2x8x8xf32>, vector<2x8x8xf32>, vector<2x8x8xf32> -> vector<2x8x8xf32>
    "tpu.trace_stop"() : () -> ()
    %406 = vector.broadcast %66 : vector<2x1x8xf32> to vector<2x8x8xf32>
    %407 = arith.subf %405, %406 : vector<2x8x8xf32>
    %cst_222 = arith.constant dense<0xFF800000> : vector<2x8xf32>
    %408 = vector.multi_reduction <maximumf>, %407, %cst_222 [2] : vector<2x8x8xf32> to vector<2x8xf32>
    %409 = vector.shape_cast %408 : vector<2x8xf32> to vector<2x8x1xf32>
    %410 = vector.broadcast %409 : vector<2x8x1xf32> to vector<2x8x8xf32>
    %411 = arith.subf %407, %410 : vector<2x8x8xf32>
    %412 = math.exp %411 : vector<2x8x8xf32>
    %cst_223 = arith.constant dense<0.000000e+00> : vector<2x8xf32>
    %413 = vector.multi_reduction <add>, %412, %cst_223 [2] : vector<2x8x8xf32> to vector<2x8xf32>
    %414 = vector.shape_cast %413 : vector<2x8xf32> to vector<2x8x1xf32>
    %415 = tpu.reciprocal %414 {approx = true} : vector<2x8x1xf32> -> vector<2x8x1xf32>
    %416 = vector.broadcast %415 : vector<2x8x1xf32> to vector<2x8x8xf32>
    %417 = arith.mulf %412, %416 : vector<2x8x8xf32>
    %418 = vector.shape_cast %417 : vector<2x8x8xf32> to vector<16x8xf32>
    "tpu.trace_start"() <{level = 10 : i32, message = "bqk,bkd->bqd"}> : () -> ()
    %cst_224 = arith.constant dense<0.000000e+00> : vector<2x8x8xf32>
    %419 = tpu.matmul %417, %404, %cst_224 {dimension_numbers = #tpu.dot_dimension_numbers<[2], [1], [1], [2], [0, 0, 0, 1, 1, 2], [0], [0]>} : vector<2x8x8xf32>, vector<2x8x8xf32>, vector<2x8x8xf32> -> vector<2x8x8xf32>
    "tpu.trace_stop"() : () -> ()
    %420 = vector.shape_cast %419 : vector<2x8x8xf32> to vector<16x8xf32>
    %c5_225 = arith.constant 5 : index
    %c0_226 = arith.constant 0 : index
    %c0_227 = arith.constant 0 : index
    %421 = vector.load %arg5[%c5_225, %c0_226, %c0_227] : memref<8x8x32xf32, #tpu.memory_space<vmem>>, vector<1x8x32xf32>
    %422 = vector.shape_cast %421 : vector<1x8x32xf32> to vector<8x32xf32>
    %cst_228 = arith.constant dense<0.000000e+00> : vector<16x32xf32>
    %423 = tpu.matmul %420, %422, %cst_228 {dimension_numbers = #tpu.dot_dimension_numbers<[1], [0], [0], [1], [0, 0, 1, 1], [], []>} : vector<16x8xf32>, vector<8x32xf32>, vector<16x32xf32> -> vector<16x32xf32>
    %424 = arith.addf %380, %423 : vector<16x32xf32>
    %c14 = arith.constant 14 : index
    %c0_229 = arith.constant 0 : index
    %c0_230 = arith.constant 0 : index
    %425 = vector.load %arg3[%c14, %c0_229, %c0_230] : memref<24x32x8xf32, #tpu.memory_space<vmem>>, vector<1x32x8xf32>
    %426 = vector.shape_cast %425 : vector<1x32x8xf32> to vector<32x8xf32>
    %cst_231 = arith.constant dense<0.000000e+00> : vector<16x8xf32>
    %427 = tpu.matmul %332, %426, %cst_231 {dimension_numbers = #tpu.dot_dimension_numbers<[1], [0], [0], [1], [0, 0, 1, 1], [], []>} : vector<16x32xf32>, vector<32x8xf32>, vector<16x8xf32> -> vector<16x8xf32>
    %c14_232 = arith.constant 14 : index
    %c0_233 = arith.constant 0 : index
    %c0_234 = arith.constant 0 : index
    %428 = vector.load %arg4[%c14_232, %c0_233, %c0_234] : memref<24x1x8xf32, #tpu.memory_space<vmem>>, vector<1x1x8xf32>
    %429 = vector.shape_cast %428 : vector<1x1x8xf32> to vector<1x8xf32>
    %430 = vector.broadcast %429 : vector<1x8xf32> to vector<16x8xf32>
    %431 = arith.addf %427, %430 : vector<16x8xf32>
    %432 = vector.shape_cast %431 : vector<16x8xf32> to vector<2x8x8xf32>
    %c18 = arith.constant 18 : index
    %c0_235 = arith.constant 0 : index
    %c0_236 = arith.constant 0 : index
    %433 = vector.load %arg3[%c18, %c0_235, %c0_236] : memref<24x32x8xf32, #tpu.memory_space<vmem>>, vector<1x32x8xf32>
    %434 = vector.shape_cast %433 : vector<1x32x8xf32> to vector<32x8xf32>
    %cst_237 = arith.constant dense<0.000000e+00> : vector<16x8xf32>
    %435 = tpu.matmul %332, %434, %cst_237 {dimension_numbers = #tpu.dot_dimension_numbers<[1], [0], [0], [1], [0, 0, 1, 1], [], []>} : vector<16x32xf32>, vector<32x8xf32>, vector<16x8xf32> -> vector<16x8xf32>
    %c18_238 = arith.constant 18 : index
    %c0_239 = arith.constant 0 : index
    %c0_240 = arith.constant 0 : index
    %436 = vector.load %arg4[%c18_238, %c0_239, %c0_240] : memref<24x1x8xf32, #tpu.memory_space<vmem>>, vector<1x1x8xf32>
    %437 = vector.shape_cast %436 : vector<1x1x8xf32> to vector<1x8xf32>
    %438 = vector.broadcast %437 : vector<1x8xf32> to vector<16x8xf32>
    %439 = arith.addf %435, %438 : vector<16x8xf32>
    %440 = vector.shape_cast %439 : vector<16x8xf32> to vector<2x8x8xf32>
    %c22 = arith.constant 22 : index
    %c0_241 = arith.constant 0 : index
    %c0_242 = arith.constant 0 : index
    %441 = vector.load %arg3[%c22, %c0_241, %c0_242] : memref<24x32x8xf32, #tpu.memory_space<vmem>>, vector<1x32x8xf32>
    %442 = vector.shape_cast %441 : vector<1x32x8xf32> to vector<32x8xf32>
    %cst_243 = arith.constant dense<0.000000e+00> : vector<16x8xf32>
    %443 = tpu.matmul %332, %442, %cst_243 {dimension_numbers = #tpu.dot_dimension_numbers<[1], [0], [0], [1], [0, 0, 1, 1], [], []>} : vector<16x32xf32>, vector<32x8xf32>, vector<16x8xf32> -> vector<16x8xf32>
    %c22_244 = arith.constant 22 : index
    %c0_245 = arith.constant 0 : index
    %c0_246 = arith.constant 0 : index
    %444 = vector.load %arg4[%c22_244, %c0_245, %c0_246] : memref<24x1x8xf32, #tpu.memory_space<vmem>>, vector<1x1x8xf32>
    %445 = vector.shape_cast %444 : vector<1x1x8xf32> to vector<1x8xf32>
    %446 = vector.broadcast %445 : vector<1x8xf32> to vector<16x8xf32>
    %447 = arith.addf %443, %446 : vector<16x8xf32>
    %448 = vector.shape_cast %447 : vector<16x8xf32> to vector<2x8x8xf32>
    "tpu.trace_start"() <{level = 10 : i32, message = "bqd,bkd->bqk"}> : () -> ()
    %cst_247 = arith.constant dense<0.000000e+00> : vector<2x8x8xf32>
    %449 = tpu.matmul %432, %440, %cst_247 {dimension_numbers = #tpu.dot_dimension_numbers<[2], [2], [1], [1], [0, 0, 0, 1, 1, 1], [0], [0]>} : vector<2x8x8xf32>, vector<2x8x8xf32>, vector<2x8x8xf32> -> vector<2x8x8xf32>
    "tpu.trace_stop"() : () -> ()
    %450 = vector.broadcast %66 : vector<2x1x8xf32> to vector<2x8x8xf32>
    %451 = arith.subf %449, %450 : vector<2x8x8xf32>
    %cst_248 = arith.constant dense<0xFF800000> : vector<2x8xf32>
    %452 = vector.multi_reduction <maximumf>, %451, %cst_248 [2] : vector<2x8x8xf32> to vector<2x8xf32>
    %453 = vector.shape_cast %452 : vector<2x8xf32> to vector<2x8x1xf32>
    %454 = vector.broadcast %453 : vector<2x8x1xf32> to vector<2x8x8xf32>
    %455 = arith.subf %451, %454 : vector<2x8x8xf32>
    %456 = math.exp %455 : vector<2x8x8xf32>
    %cst_249 = arith.constant dense<0.000000e+00> : vector<2x8xf32>
    %457 = vector.multi_reduction <add>, %456, %cst_249 [2] : vector<2x8x8xf32> to vector<2x8xf32>
    %458 = vector.shape_cast %457 : vector<2x8xf32> to vector<2x8x1xf32>
    %459 = tpu.reciprocal %458 {approx = true} : vector<2x8x1xf32> -> vector<2x8x1xf32>
    %460 = vector.broadcast %459 : vector<2x8x1xf32> to vector<2x8x8xf32>
    %461 = arith.mulf %456, %460 : vector<2x8x8xf32>
    %462 = vector.shape_cast %461 : vector<2x8x8xf32> to vector<16x8xf32>
    "tpu.trace_start"() <{level = 10 : i32, message = "bqk,bkd->bqd"}> : () -> ()
    %cst_250 = arith.constant dense<0.000000e+00> : vector<2x8x8xf32>
    %463 = tpu.matmul %461, %448, %cst_250 {dimension_numbers = #tpu.dot_dimension_numbers<[2], [1], [1], [2], [0, 0, 0, 1, 1, 2], [0], [0]>} : vector<2x8x8xf32>, vector<2x8x8xf32>, vector<2x8x8xf32> -> vector<2x8x8xf32>
    "tpu.trace_stop"() : () -> ()
    %464 = vector.shape_cast %463 : vector<2x8x8xf32> to vector<16x8xf32>
    %c6_251 = arith.constant 6 : index
    %c0_252 = arith.constant 0 : index
    %c0_253 = arith.constant 0 : index
    %465 = vector.load %arg5[%c6_251, %c0_252, %c0_253] : memref<8x8x32xf32, #tpu.memory_space<vmem>>, vector<1x8x32xf32>
    %466 = vector.shape_cast %465 : vector<1x8x32xf32> to vector<8x32xf32>
    %cst_254 = arith.constant dense<0.000000e+00> : vector<16x32xf32>
    %467 = tpu.matmul %464, %466, %cst_254 {dimension_numbers = #tpu.dot_dimension_numbers<[1], [0], [0], [1], [0, 0, 1, 1], [], []>} : vector<16x8xf32>, vector<8x32xf32>, vector<16x32xf32> -> vector<16x32xf32>
    %468 = arith.addf %424, %467 : vector<16x32xf32>
    %c15 = arith.constant 15 : index
    %c0_255 = arith.constant 0 : index
    %c0_256 = arith.constant 0 : index
    %469 = vector.load %arg3[%c15, %c0_255, %c0_256] : memref<24x32x8xf32, #tpu.memory_space<vmem>>, vector<1x32x8xf32>
    %470 = vector.shape_cast %469 : vector<1x32x8xf32> to vector<32x8xf32>
    %cst_257 = arith.constant dense<0.000000e+00> : vector<16x8xf32>
    %471 = tpu.matmul %332, %470, %cst_257 {dimension_numbers = #tpu.dot_dimension_numbers<[1], [0], [0], [1], [0, 0, 1, 1], [], []>} : vector<16x32xf32>, vector<32x8xf32>, vector<16x8xf32> -> vector<16x8xf32>
    %c15_258 = arith.constant 15 : index
    %c0_259 = arith.constant 0 : index
    %c0_260 = arith.constant 0 : index
    %472 = vector.load %arg4[%c15_258, %c0_259, %c0_260] : memref<24x1x8xf32, #tpu.memory_space<vmem>>, vector<1x1x8xf32>
    %473 = vector.shape_cast %472 : vector<1x1x8xf32> to vector<1x8xf32>
    %474 = vector.broadcast %473 : vector<1x8xf32> to vector<16x8xf32>
    %475 = arith.addf %471, %474 : vector<16x8xf32>
    %476 = vector.shape_cast %475 : vector<16x8xf32> to vector<2x8x8xf32>
    %c19 = arith.constant 19 : index
    %c0_261 = arith.constant 0 : index
    %c0_262 = arith.constant 0 : index
    %477 = vector.load %arg3[%c19, %c0_261, %c0_262] : memref<24x32x8xf32, #tpu.memory_space<vmem>>, vector<1x32x8xf32>
    %478 = vector.shape_cast %477 : vector<1x32x8xf32> to vector<32x8xf32>
    %cst_263 = arith.constant dense<0.000000e+00> : vector<16x8xf32>
    %479 = tpu.matmul %332, %478, %cst_263 {dimension_numbers = #tpu.dot_dimension_numbers<[1], [0], [0], [1], [0, 0, 1, 1], [], []>} : vector<16x32xf32>, vector<32x8xf32>, vector<16x8xf32> -> vector<16x8xf32>
    %c19_264 = arith.constant 19 : index
    %c0_265 = arith.constant 0 : index
    %c0_266 = arith.constant 0 : index
    %480 = vector.load %arg4[%c19_264, %c0_265, %c0_266] : memref<24x1x8xf32, #tpu.memory_space<vmem>>, vector<1x1x8xf32>
    %481 = vector.shape_cast %480 : vector<1x1x8xf32> to vector<1x8xf32>
    %482 = vector.broadcast %481 : vector<1x8xf32> to vector<16x8xf32>
    %483 = arith.addf %479, %482 : vector<16x8xf32>
    %484 = vector.shape_cast %483 : vector<16x8xf32> to vector<2x8x8xf32>
    %c23 = arith.constant 23 : index
    %c0_267 = arith.constant 0 : index
    %c0_268 = arith.constant 0 : index
    %485 = vector.load %arg3[%c23, %c0_267, %c0_268] : memref<24x32x8xf32, #tpu.memory_space<vmem>>, vector<1x32x8xf32>
    %486 = vector.shape_cast %485 : vector<1x32x8xf32> to vector<32x8xf32>
    %cst_269 = arith.constant dense<0.000000e+00> : vector<16x8xf32>
    %487 = tpu.matmul %332, %486, %cst_269 {dimension_numbers = #tpu.dot_dimension_numbers<[1], [0], [0], [1], [0, 0, 1, 1], [], []>} : vector<16x32xf32>, vector<32x8xf32>, vector<16x8xf32> -> vector<16x8xf32>
    %c23_270 = arith.constant 23 : index
    %c0_271 = arith.constant 0 : index
    %c0_272 = arith.constant 0 : index
    %488 = vector.load %arg4[%c23_270, %c0_271, %c0_272] : memref<24x1x8xf32, #tpu.memory_space<vmem>>, vector<1x1x8xf32>
    %489 = vector.shape_cast %488 : vector<1x1x8xf32> to vector<1x8xf32>
    %490 = vector.broadcast %489 : vector<1x8xf32> to vector<16x8xf32>
    %491 = arith.addf %487, %490 : vector<16x8xf32>
    %492 = vector.shape_cast %491 : vector<16x8xf32> to vector<2x8x8xf32>
    "tpu.trace_start"() <{level = 10 : i32, message = "bqd,bkd->bqk"}> : () -> ()
    %cst_273 = arith.constant dense<0.000000e+00> : vector<2x8x8xf32>
    %493 = tpu.matmul %476, %484, %cst_273 {dimension_numbers = #tpu.dot_dimension_numbers<[2], [2], [1], [1], [0, 0, 0, 1, 1, 1], [0], [0]>} : vector<2x8x8xf32>, vector<2x8x8xf32>, vector<2x8x8xf32> -> vector<2x8x8xf32>
    "tpu.trace_stop"() : () -> ()
    %494 = vector.broadcast %66 : vector<2x1x8xf32> to vector<2x8x8xf32>
    %495 = arith.subf %493, %494 : vector<2x8x8xf32>
    %cst_274 = arith.constant dense<0xFF800000> : vector<2x8xf32>
    %496 = vector.multi_reduction <maximumf>, %495, %cst_274 [2] : vector<2x8x8xf32> to vector<2x8xf32>
    %497 = vector.shape_cast %496 : vector<2x8xf32> to vector<2x8x1xf32>
    %498 = vector.broadcast %497 : vector<2x8x1xf32> to vector<2x8x8xf32>
    %499 = arith.subf %495, %498 : vector<2x8x8xf32>
    %500 = math.exp %499 : vector<2x8x8xf32>
    %cst_275 = arith.constant dense<0.000000e+00> : vector<2x8xf32>
    %501 = vector.multi_reduction <add>, %500, %cst_275 [2] : vector<2x8x8xf32> to vector<2x8xf32>
    %502 = vector.shape_cast %501 : vector<2x8xf32> to vector<2x8x1xf32>
    %503 = tpu.reciprocal %502 {approx = true} : vector<2x8x1xf32> -> vector<2x8x1xf32>
    %504 = vector.broadcast %503 : vector<2x8x1xf32> to vector<2x8x8xf32>
    %505 = arith.mulf %500, %504 : vector<2x8x8xf32>
    %506 = vector.shape_cast %505 : vector<2x8x8xf32> to vector<16x8xf32>
    "tpu.trace_start"() <{level = 10 : i32, message = "bqk,bkd->bqd"}> : () -> ()
    %cst_276 = arith.constant dense<0.000000e+00> : vector<2x8x8xf32>
    %507 = tpu.matmul %505, %492, %cst_276 {dimension_numbers = #tpu.dot_dimension_numbers<[2], [1], [1], [2], [0, 0, 0, 1, 1, 2], [0], [0]>} : vector<2x8x8xf32>, vector<2x8x8xf32>, vector<2x8x8xf32> -> vector<2x8x8xf32>
    "tpu.trace_stop"() : () -> ()
    %508 = vector.shape_cast %507 : vector<2x8x8xf32> to vector<16x8xf32>
    %c7_277 = arith.constant 7 : index
    %c0_278 = arith.constant 0 : index
    %c0_279 = arith.constant 0 : index
    %509 = vector.load %arg5[%c7_277, %c0_278, %c0_279] : memref<8x8x32xf32, #tpu.memory_space<vmem>>, vector<1x8x32xf32>
    %510 = vector.shape_cast %509 : vector<1x8x32xf32> to vector<8x32xf32>
    %cst_280 = arith.constant dense<0.000000e+00> : vector<16x32xf32>
    %511 = tpu.matmul %508, %510, %cst_280 {dimension_numbers = #tpu.dot_dimension_numbers<[1], [0], [0], [1], [0, 0, 1, 1], [], []>} : vector<16x8xf32>, vector<8x32xf32>, vector<16x32xf32> -> vector<16x32xf32>
    %512 = arith.addf %468, %511 : vector<16x32xf32>
    %513 = arith.addf %310, %512 : vector<16x32xf32>
    %cst_281 = arith.constant dense<0.000000e+00> : vector<16xf32>
    %514 = vector.multi_reduction <add>, %513, %cst_281 [1] : vector<16x32xf32> to vector<16xf32>
    %515 = vector.shape_cast %514 : vector<16xf32> to vector<16x1xf32>
    %cst_282 = arith.constant 3.200000e+01 : f32
    %516 = vector.broadcast %cst_282 : f32 to vector<16x1xf32>
    %517 = arith.divf %515, %516 : vector<16x1xf32>
    %518 = vector.broadcast %517 : vector<16x1xf32> to vector<16x32xf32>
    %519 = arith.subf %513, %518 : vector<16x32xf32>
    %520 = arith.mulf %519, %519 : vector<16x32xf32>
    %cst_283 = arith.constant dense<0.000000e+00> : vector<16xf32>
    %521 = vector.multi_reduction <add>, %520, %cst_283 [1] : vector<16x32xf32> to vector<16xf32>
    %522 = vector.shape_cast %521 : vector<16xf32> to vector<16x1xf32>
    %cst_284 = arith.constant 3.200000e+01 : f32
    %523 = vector.broadcast %cst_284 : f32 to vector<16x1xf32>
    %524 = arith.divf %522, %523 : vector<16x1xf32>
    %525 = vector.broadcast %517 : vector<16x1xf32> to vector<16x32xf32>
    %526 = arith.subf %513, %525 : vector<16x32xf32>
    %cst_285 = arith.constant 9.99999996E-13 : f32
    %527 = vector.broadcast %cst_285 : f32 to vector<16x1xf32>
    %528 = arith.addf %524, %527 : vector<16x1xf32>
    %529 = math.rsqrt %528 : vector<16x1xf32>
    %530 = vector.broadcast %529 : vector<16x1xf32> to vector<16x32xf32>
    %531 = arith.mulf %526, %530 : vector<16x32xf32>
    %532 = vector.broadcast %27 : vector<1x32xf32> to vector<16x32xf32>
    %533 = arith.mulf %531, %532 : vector<16x32xf32>
    %534 = vector.broadcast %28 : vector<1x32xf32> to vector<16x32xf32>
    %535 = arith.addf %533, %534 : vector<16x32xf32>
    %c1_286 = arith.constant 1 : index
    %c0_287 = arith.constant 0 : index
    %c0_288 = arith.constant 0 : index
    %536 = vector.load %arg6[%c1_286, %c0_287, %c0_288] : memref<2x32x128xf32, #tpu.memory_space<vmem>>, vector<1x32x128xf32>
    %537 = vector.shape_cast %536 : vector<1x32x128xf32> to vector<32x128xf32>
    %cst_289 = arith.constant dense<0.000000e+00> : vector<16x128xf32>
    %538 = tpu.matmul %535, %537, %cst_289 {dimension_numbers = #tpu.dot_dimension_numbers<[1], [0], [0], [1], [0, 0, 1, 1], [], []>} : vector<16x32xf32>, vector<32x128xf32>, vector<16x128xf32> -> vector<16x128xf32>
    %539 = vector.broadcast %333 : vector<1x128xf32> to vector<16x128xf32>
    %540 = arith.addf %538, %539 : vector<16x128xf32>
    %cst_290 = arith.constant 5.000000e-01 : f32
    %541 = vector.broadcast %cst_290 : f32 to vector<16x128xf32>
    %542 = arith.mulf %540, %541 : vector<16x128xf32>
    %cst_291 = arith.constant 0.707106769 : f32
    %543 = vector.broadcast %cst_291 : f32 to vector<16x128xf32>
    %544 = arith.mulf %540, %543 : vector<16x128xf32>
    %545 = math.erf %544 : vector<16x128xf32>
    %cst_292 = arith.constant 1.000000e+00 : f32
    %546 = vector.broadcast %cst_292 : f32 to vector<16x128xf32>
    %547 = arith.addf %546, %545 : vector<16x128xf32>
    %548 = arith.mulf %542, %547 : vector<16x128xf32>
    %c1_293 = arith.constant 1 : index
    %c0_294 = arith.constant 0 : index
    %c0_295 = arith.constant 0 : index
    %549 = vector.load %arg7[%c1_293, %c0_294, %c0_295] : memref<2x128x32xf32, #tpu.memory_space<vmem>>, vector<1x128x32xf32>
    %550 = vector.shape_cast %549 : vector<1x128x32xf32> to vector<128x32xf32>
    %cst_296 = arith.constant dense<0.000000e+00> : vector<16x32xf32>
    %551 = tpu.matmul %548, %550, %cst_296 {dimension_numbers = #tpu.dot_dimension_numbers<[1], [0], [0], [1], [0, 0, 1, 1], [], []>} : vector<16x128xf32>, vector<128x32xf32>, vector<16x32xf32> -> vector<16x32xf32>
    %552 = vector.broadcast %335 : vector<1x32xf32> to vector<16x32xf32>
    %553 = arith.addf %551, %552 : vector<16x32xf32>
    %554 = arith.addf %513, %553 : vector<16x32xf32>
    %555 = tpu.concatenate %310, %129, %174, %218, %262, %554, %373, %418, %462, %506 in 1 : vector<16x32xf32>, vector<16x8xf32>, vector<16x8xf32>, vector<16x8xf32>, vector<16x8xf32>, vector<16x32xf32>, vector<16x8xf32>, vector<16x8xf32>, vector<16x8xf32>, vector<16x8xf32> -> vector<16x128xf32>
    %c0_297 = arith.constant 0 : index
    %c0_298 = arith.constant 0 : index
    %556 = vector.load %arg11[%c0_297, %c0_298] : memref<16x128xf32, #tpu.memory_space<vmem>>, vector<16x128xf32>
    tpu.vector_store %arg11[%c0_297, %c0_298], %555 {strides = array<i32>} : memref<16x128xf32, #tpu.memory_space<vmem>>, vector<16x128xf32>,
    return
  }
}

</mosaic_0001>

<bundles_post_ra>
// kernel: transformer_forward.1
= control target key start
LH: loop header
LB: loop body
LE: loop exit
PB: predicated region body
PF: predicated region fallthrough
CT: control target
= control target key end

     0   :  { %vm448_vm0 = vcmask 261120   ;;  %v8680_v0 = vmov 0.0|0.0   ;;  %vm8681_vm1 = vmmov 0   ;;  %v10342_v4 = vmov 0.0   ;;  %s8684_s28 = smov 96   ;;  %s8687_s24 = smov 48   ;;  %s10329_s0 = inlined_call_operand.vmem [shape: f32[2,8,32], index: 0, kind: input, shape index: {}]   ;;  %s10330_s10 = inlined_call_operand.vmem [shape: f32[56,32], index: 10, kind: input, shape index: {}]   ;;  %s10331_s9 = inlined_call_operand.vmem [shape: f32[2,84,56], index: 9, kind: input, shape index: {}]   ;;  %s10332_s2 = inlined_call_operand.vmem [shape: f32[4,32], index: 2, kind: input, shape index: {}]   ;;  %s10333_s3 = inlined_call_operand.vmem [shape: f32[24,32,8], index: 3, kind: input, shape index: {}]   ;;  %s10334_s4 = inlined_call_operand.vmem [shape: f32[24,1,8], index: 4, kind: input, shape index: {}]   ;;  %s10335_s1 = inlined_call_operand.vmem [shape: f32[2,8], index: 1, kind: input, shape index: {}]   ;;  %s10336_s5 = inlined_call_operand.vmem [shape: f32[8,8,32], index: 5, kind: input, shape index: {}]   ;;  %s10337_s8 = inlined_call_operand.vmem [shape: f32[2,192], index: 8, kind: input, shape index: {}]   ;;  %s10338_s6 = inlined_call_operand.vmem [shape: f32[2,32,128], index: 6, kind: input, shape index: {}]   ;;  %s10339_s7 = inlined_call_operand.vmem [shape: f32[2,128,32], index: 7, kind: input, shape index: {}]   ;;  %s10340_s12 = inlined_call_operand.vmem [shape: f32[2,128], index: 12, kind: output, shape index: {1}]   ;;  %s10341_s11 = inlined_call_operand.vmem [shape: f32[16,128], index: 11, kind: output, shape index: {0}]  }
   0x1   :  { %8253 = vmatprep.subr.bf16.mxu0 %v8680_v0  ;;  %v8761_v1 = vld [vmem:[%s10329_s0] sm:$0xff]  ;;  %v105_v3 = vld [vmem:[%s10330_s10 + $0x8] sm:$0xff]  ;;  %7634 = vmatprep.mubr.msk.f32.mxu0 %vm8681_vm1, %v10342_v4  ;;  %v106_v8 = vld [vmem:[%s10330_s10 + $0x10] sm:$0xff]  ;;  %vm132_vm2 = vcmask 457728   ;;  %vm479_vm3 = vcmask 257024   ;;  %vm946_vm4 = vcmask 1040384  }
   0x2   :  { %v104_v2 = vld [vmem:[%s10330_s10] sm:$0xff]  ;;  %v908_v5 = vsel %vm448_vm0, %v8761_v1, 0.0  ;;  %v8776_v7 = vld [vmem:[%s10329_s0 + $0x8] sm:$0xff]  ;;  %v107_v9 = vld [vmem:[%s10330_s10 + $0x18] sm:$0xff]  ;;  %vm949_vm5 = vcmask 1041408   ;;  %vm952_vm6 = vcmask 1042432  }
   0x3   :  { %v8254_v6 = vpack.c.bf16 %v105_v3, %v104_v2  ;;  %909 = vadd.xlane.f32.xlu0 %v908_v5  ;;  %v911_v10 = vsel %vm448_vm0, %v8776_v7, 0.0  ;;  %v8257_v11 = vpack.c.bf16 %v107_v9, %v106_v8  ;;  %v108_v12 = vld [vmem:[%s10330_s10 + $0x20] sm:$0xff]  ;;  %v109_v13 = vld [vmem:[%s10330_s10 + $0x28] sm:$0xff]  ;;  %v110_v18 = vld [vmem:[%s10330_s10 + $0x30] sm:$0xff]  ;;  %vm955_vm7 = vcmask 1043456   ;;  %s8688_s25 = smov 56  }
   0x4   :  { %v40_v14 = vld [vmem:[%s10331_s9] sm:$0xff]  ;;  %v8260_v15 = vpack.c.bf16 %v109_v13, %v108_v12  ;;  %v41_v17 = vld [vmem:[%s10331_s9 + $0x8] sm:$0xff]  ;;  %v42_v21 = vld [vmem:[%s10331_s9 + $0x10] sm:$0xff]  ;;  %vm1292_vm8 = vcmask 64512   ;;  %s8689_s26 = smov 104   ;;  %s8690_s27 = smov 112  }
   0x5   :  { %8255 = vmatpush3.bf16.msra.mxu0 %v8254_v6  ;;  %v84_v16 = vcombine.high %v40_v14, %v40_v14  ;;  %v85_v20 = vcombine.high %v41_v17, %v41_v17  ;;  %v86_v23 = vcombine.high %v42_v21, %v42_v21  ;;  %v43_v24 = vld [vmem:[%s10331_s9 + $0x18] sm:$0xff]  ;;  %v44_v27 = vld [vmem:[%s10331_s9 + $0x20] sm:$0xff]  ;;  %v45_v30 = vld [vmem:[%s10331_s9 + $0x28] sm:$0xff]  ;;  %vm572_vm9 = vcmask 130112  }
   0x6   :  { %8256 = vmatprep.subr.bf16.mxu0 %v8680_v0  ;;  %v87_v26 = vcombine.high %v43_v24, %v43_v24  ;;  %v88_v29 = vcombine.high %v44_v27, %v44_v27  ;;  %v89_v32 = vcombine.high %v45_v30, %v45_v30  ;;  %v46_v33 = vld [vmem:[%s10331_s9 + $0x30] sm:$0xff]  ;;  %v47_v36 = vld [vmem:[%s10331_s9 + $0x38] sm:$0xff]  ;;  %v48_v39 = vld [vmem:[%s10331_s9 + $0x40] sm:$0xff]  ;;  %vm579_vm10 = vcmask 195712  }
   0x7   :  { %912 = vadd.xlane.f32.xlu0 %v911_v10  ;;  %v111_v19 = vcombine.low %v40_v14, %v84_v16  ;;  %v112_v22 = vcombine.low %v41_v17, %v85_v20  ;;  %v113_v25 = vcombine.low %v42_v21, %v86_v23  ;;  %v90_v35 = vcombine.high %v46_v33, %v46_v33  ;;  %v49_v42 = vld [vmem:[%s10331_s9 + $0x48] sm:$0xff]  ;;  %v50_v46 = vld [vmem:[%s10331_s9 + $0x50] sm:$0xf]  ;;  %v51_v47 = vld [vmem:[%s10331_s9 + $0x58] sm:$0xff] }
   0x8   :  { %v114_v28 = vcombine.low %v43_v24, %v87_v26  ;;  %v115_v31 = vcombine.low %v44_v27, %v88_v29  ;;  %v116_v34 = vcombine.low %v45_v30, %v89_v32  ;;  %v91_v38 = vcombine.high %v47_v36, %v47_v36  ;;  %v52_v50 = vld [vmem:[%s10331_s9 + $0x60] sm:$0xff]  ;;  %v53_v53 = vld [vmem:[%s10331_s9 + $0x68] sm:$0xff]  ;;  %v54_v56 = vld [vmem:[%s10331_s9 + $0x70] sm:$0xff] }
   0x9   :  { %8258 = vmatpush3.bf16.msra.mxu0 %v8257_v11  ;;  %v117_v37 = vcombine.low %v46_v33, %v90_v35  ;;  %v92_v41 = vcombine.high %v48_v39, %v48_v39  ;;  %v93_v44 = vcombine.high %v49_v42, %v49_v42  ;;  %v121_v48 = vcombine.low %v50_v46, %v51_v47  ;;  %v55_v59 = vld [vmem:[%s10331_s9 + $0x78] sm:$0xff]  ;;  %v56_v62 = vld [vmem:[%s10331_s9 + $0x80] sm:$0xff]  ;;  %v57_v2 = vld [vmem:[%s10331_s9 + $0x88] sm:$0xff] }
   0xa   :  { %8259 = vmatprep.subr.bf16.mxu0 %v8680_v0  ;;  %v118_v40 = vcombine.low %v47_v36, %v91_v38  ;;  %v94_v49 = vcombine.high %v51_v47, %v51_v47  ;;  %v95_v52 = vcombine.high %v52_v50, %v52_v50  ;;  %v96_v55 = vcombine.high %v53_v53, %v53_v53  ;;  %v58_v6 = vld [vmem:[%s10331_s9 + $0x90] sm:$0xff]  ;;  %v59_v10 = vld [vmem:[%s10331_s9 + $0x98] sm:$0xff]  ;;  %v60_v13 = vld [vmem:[%s10331_s9 + $0xa0] sm:$0xff] }
   0xb   :  { %v119_v43 = vcombine.low %v48_v39, %v92_v41  ;;  %v120_v45 = vcombine.low %v49_v42, %v93_v44  ;;  %v97_v58 = vcombine.high %v54_v56, %v54_v56  ;;  %v98_v61 = vcombine.high %v55_v59, %v55_v59  ;;  %v61_v16 = vld [vmem:[%s10331_s9 + $0xa8] sm:$0xf]  ;;  %s8686_s9 = smov 40  }
   0xc   :  { %v122_v51 = vcombine.low %v94_v49, %v52_v50  ;;  %v123_v54 = vcombine.low %v95_v52, %v53_v53  ;;  %v124_v57 = vcombine.low %v96_v55, %v54_v56  ;;  %v99_v0 = vcombine.high %v56_v62, %v56_v62 }
   0xd   :  { %8261 = vmatpush3.bf16.msra.mxu0 %v8260_v15  ;;  %v125_v60 = vcombine.low %v97_v58, %v55_v59  ;;  %v126_v63 = vcombine.low %v98_v61, %v56_v62  ;;  %v100_v5 = vcombine.high %v57_v2, %v57_v2  ;;  %v101_v9 = vcombine.high %v58_v6, %v58_v6 }
   0xe   :  { %7632 = vmatprep.subr.mxu0 %v10342_v4  ;;  %v127_v3 = vcombine.low %v99_v0, %v57_v2  ;;  %v102_v12 = vcombine.high %v59_v10, %v59_v10  ;;  %v103_v15 = vcombine.high %v60_v13, %v60_v13  ;;  %vm586_vm11 = vcmask 261312  }
   0xf   :  { %v128_v8 = vcombine.low %v100_v5, %v58_v6  ;;  %v129_v11 = vcombine.low %v101_v9, %v59_v10  ;;  %vm593_vm12 = vcmask 326912   ;;  %vm600_vm13 = vcmask 392512  }
  0x10   :  { %v130_v14 = vcombine.low %v102_v12, %v60_v13  ;;  %v131_v17 = vcombine.low %v103_v15, %v61_v16  ;;  %vm607_vm14 = vcmask 458112   ;;  %vm614_vm15 = vcmask 523712  }
  0x11   :  { %7633 = vmatpush3.msra.mxu0 %v110_v18 }
  0x12   :  { %7635 = vmatmul.mubr.msk.f32.vlgmr.msra.gmra.mrb[0].mxu0 %vm132_vm2, %v111_v19 }
  0x13   :  { %7637 = vmatprep.mubr.msk.f32.mxu0 %vm8681_vm1, %v10342_v4 }
  0x16   :  { %7638 = vmatmul.mubr.msk.f32.gmra.mrb[2].mxu0 %vm132_vm2, %v112_v22 }
  0x17   :  { %7640 = vmatprep.mubr.msk.f32.mxu0 %vm8681_vm1, %v10342_v4 }
  0x1a   :  { %7641 = vmatmul.mubr.msk.f32.gmra.mrb[4].mxu0 %vm132_vm2, %v113_v25 }
  0x1b   :  { %7643 = vmatprep.mubr.msk.f32.mxu0 %vm8681_vm1, %v10342_v4 }
  0x1e   :  { %7644 = vmatmul.mubr.msk.f32.gmra.mrb[6].mxu0 %vm132_vm2, %v114_v28 }
  0x1f   :  { %7646 = vmatprep.mubr.msk.f32.mxu0 %vm8681_vm1, %v10342_v4 }
  0x22   :  { %7647 = vmatmul.mubr.msk.f32.gmra.mrb[8].mxu0 %vm132_vm2, %v115_v31 }
  0x23   :  { %7649 = vmatprep.mubr.msk.f32.mxu0 %vm8681_vm1, %v10342_v4 }
  0x26   :  { %7650 = vmatmul.mubr.msk.f32.gmra.mrb[10].mxu0 %vm132_vm2, %v116_v34 }
  0x27   :  { %7652 = vmatprep.mubr.msk.f32.mxu0 %vm8681_vm1, %v10342_v4 }
  0x2a   :  { %7653 = vmatmul.mubr.msk.f32.gmra.mrb[12].mxu0 %vm132_vm2, %v117_v37 }
  0x2b   :  { %7655 = vmatprep.mubr.msk.f32.mxu0 %vm8681_vm1, %v10342_v4 }
  0x2e   :  { %7656 = vmatmul.mubr.msk.f32.gmra.mrb[14].mxu0 %vm132_vm2, %v118_v40 }
  0x2f   :  { %7658 = vmatprep.mubr.msk.f32.mxu0 %vm8681_vm1, %v10342_v4 }
  0x32   :  { %7659 = vmatmul.mubr.msk.f32.gmra.mrb[16].mxu0 %vm132_vm2, %v119_v43 }
  0x33   :  { %7661 = vmatprep.mubr.msk.f32.mxu0 %vm8681_vm1, %v10342_v4 }
  0x36   :  { %7662 = vmatmul.mubr.msk.f32.gmra.mrb[18].mxu0 %vm132_vm2, %v120_v45 }
  0x37   :  { %7664 = vmatprep.mubr.msk.f32.mxu0 %vm8681_vm1, %v10342_v4 }
  0x3a   :  { %7665 = vmatmul.mubr.msk.f32.gmra.mrb[20].mxu0 %vm132_vm2, %v121_v48 }
  0x3b   :  { %7667 = vmatprep.mubr.msk.f32.mxu0 %vm8681_vm1, %v10342_v4 }
  0x3e   :  { %7668 = vmatmul.mubr.msk.f32.gmra.mrb[22].mxu0 %vm132_vm2, %v122_v51 }
  0x3f   :  { %7670 = vmatprep.mubr.msk.f32.mxu0 %vm8681_vm1, %v10342_v4 }
  0x42   :  { %7671 = vmatmul.mubr.msk.f32.gmra.mrb[24].mxu0 %vm132_vm2, %v123_v54 }
  0x43   :  { %7673 = vmatprep.mubr.msk.f32.mxu0 %vm8681_vm1, %v10342_v4 }
  0x46   :  { %7674 = vmatmul.mubr.msk.f32.gmra.mrb[26].mxu0 %vm132_vm2, %v124_v57 }
  0x47   :  { %7676 = vmatprep.mubr.msk.f32.mxu0 %vm8681_vm1, %v10342_v4 }
  0x4a   :  { %7677 = vmatmul.mubr.msk.f32.gmra.mrb[28].mxu0 %vm132_vm2, %v125_v60 }
  0x4b   :  { %7679 = vmatprep.mubr.msk.f32.mxu0 %vm8681_vm1, %v10342_v4 }
  0x4e   :  { %7680 = vmatmul.mubr.msk.f32.gmra.mrb[30].mxu0 %vm132_vm2, %v126_v63 }
  0x4f   :  { %7682 = vmatprep.mubr.msk.f32.mxu0 %vm8681_vm1, %v10342_v4 }
  0x52   :  { %7683 = vmatmul.mubr.msk.f32.gmra.mrb[32].mxu0 %vm132_vm2, %v127_v3 }
  0x53   :  { %7685 = vmatprep.mubr.msk.f32.mxu0 %vm8681_vm1, %v10342_v4 }
  0x56   :  { %7686 = vmatmul.mubr.msk.f32.gmra.mrb[34].mxu0 %vm132_vm2, %v128_v8 }
  0x57   :  { %7688 = vmatprep.mubr.msk.f32.mxu0 %vm8681_vm1, %v10342_v4 }
  0x5a   :  { %7689 = vmatmul.mubr.msk.f32.gmra.mrb[36].mxu0 %vm132_vm2, %v129_v11 }
  0x5b   :  { %7691 = vmatprep.mubr.msk.f32.mxu0 %vm8681_vm1, %v10342_v4 }
  0x5e   :  { %7692 = vmatmul.mubr.msk.f32.gmra.mrb[38].mxu0 %vm132_vm2, %v130_v14 }
  0x5f   :  { %7694 = vmatprep.mubr.msk.f32.mxu0 %vm8681_vm1, %v10342_v4 }
  0x62   :  { %7695 = vmatmul.mubr.msk.f32.gmra.mrb[40].mxu0 %vm132_vm2, %v131_v17 }
  0x90   :  { %v910_v18 = vpop.xlane.xlu0 %909 }
  0x91   :  { %v914_v19 = vmul.f32 0.03125, %v910_v18 }
  0x93   :  { %v8924_v20 = vsub.f32 %v8761_v1, %v914_v19 }
  0x94   :  { %v913_v21 = vpop.xlane.xlu0 %912 }
  0x95   :  { %v915_v22 = vmul.f32 0.03125, %v913_v21  ;;  %v918_v23 = vmul.f32 %v8924_v20, %v8924_v20 }
  0x97   :  { %v8929_v24 = vsub.f32 %v8776_v7, %v915_v22  ;;  %v920_v25 = vsel %vm448_vm0, %v918_v23, 0.0 }
  0x98   :  { %921 = vadd.xlane.f32.xlu1 %v920_v25 }
  0x99   :  { %v919_v26 = vmul.f32 %v8929_v24, %v8929_v24 }
  0x9b   :  { %v923_v27 = vsel %vm448_vm0, %v919_v26, 0.0 }
  0x9c   :  { %924 = vadd.xlane.f32.xlu1 %v923_v27 }
  0xe5   :  { %v8935_v28 = vpop.f32.mrb[0].mxu0 }
  0xe6   :  { %v8939_v1 = vcombine.high %v8935_v28, %v8935_v28  ;;  %v7636_v29 = vpop.f32.mrb[1].mxu0  ;;  %v697_v31 = vmax.f32 %v8935_v28, 0.0 }
  0xe8   :  { %v698_v30 = vmax.f32 %v8939_v1, 0.0 }
  0xe9   :  { %v8945_v32 = vpop.f32.mrb[2].mxu0 }
  0xea   :  { %v8949_v33 = vcombine.high %v8945_v32, %v8945_v32  ;;  %v7639_v34 = vpop.f32.mrb[3].mxu0  ;;  %v771_v35 = vcombine.low %v697_v31, %v698_v30  ;;  %v699_v36 = vmax.f32 %v8945_v32, 0.0 }
  0xec   :  { %v700_v37 = vmax.f32 %v8949_v33, 0.0  ;;  %v803_v43 = vsel %vm448_vm0, %v771_v35, 0.0 }
  0xed   :  { %v8955_v39 = vpop.f32.mrb[4].mxu0 }
  0xee   :  { %v772_v40 = vcombine.low %v699_v36, %v700_v37  ;;  %v8959_v41 = vcombine.high %v8955_v39, %v8955_v39  ;;  %v7642_v42 = vpop.f32.mrb[5].mxu0  ;;  %v701_v45 = vmax.f32 %v8955_v39, 0.0 }
  0xf0   :  { %v804_v44 = vsel %vm448_vm0, %v772_v40, 0.0  ;;  %v702_v46 = vmax.f32 %v8959_v41, 0.0 }
  0xf1   :  { %v805_v48 = vadd.f32 %v804_v44, %v803_v43  ;;  %v8967_v49 = vpop.f32.mrb[6].mxu0 }
  0xf2   :  { %v773_v50 = vcombine.low %v701_v45, %v702_v46  ;;  %v8971_v51 = vcombine.high %v8967_v49, %v8967_v49  ;;  %v7645_v52 = vpop.f32.mrb[7].mxu0  ;;  %v703_v54 = vmax.f32 %v8967_v49, 0.0 }
  0xf4   :  { %v806_v53 = vsel %vm448_vm0, %v773_v50, 0.0  ;;  %v704_v55 = vmax.f32 %v8971_v51, 0.0 }
  0xf5   :  { %v807_v57 = vadd.f32 %v806_v53, %v805_v48  ;;  %v8978_v58 = vpop.f32.mrb[8].mxu0 }
  0xf6   :  { %v774_v59 = vcombine.low %v703_v54, %v704_v55  ;;  %v8982_v60 = vcombine.high %v8978_v58, %v8978_v58  ;;  %v7648_v61 = vpop.f32.mrb[9].mxu0  ;;  %v705_v63 = vmax.f32 %v8978_v58, 0.0 }
  0xf8   :  { %v808_v62 = vsel %vm448_vm0, %v774_v59, 0.0  ;;  %v706_v0 = vmax.f32 %v8982_v60, 0.0 }
  0xf9   :  { %v809_v3 = vadd.f32 %v808_v62, %v807_v57  ;;  %v8989_v5 = vpop.f32.mrb[10].mxu0 }
  0xfa   :  { %v775_v6 = vcombine.low %v705_v63, %v706_v0  ;;  %v8993_v8 = vcombine.high %v8989_v5, %v8989_v5  ;;  %v7651_v9 = vpop.f32.mrb[11].mxu0  ;;  %v707_v11 = vmax.f32 %v8989_v5, 0.0 }
  0xfc   :  { %v810_v10 = vsel %vm448_vm0, %v775_v6, 0.0  ;;  %v708_v12 = vmax.f32 %v8993_v8, 0.0 }
  0xfd   :  { %v811_v14 = vadd.f32 %v810_v10, %v809_v3  ;;  %v9000_v15 = vpop.f32.mrb[12].mxu0 }
  0xfe   :  { %v776_v16 = vcombine.low %v707_v11, %v708_v12  ;;  %v9004_v17 = vcombine.high %v9000_v15, %v9000_v15  ;;  %v7654_v18 = vpop.f32.mrb[13].mxu0  ;;  %v709_v21 = vmax.f32 %v9000_v15, 0.0 }
 0x100   :  { %v812_v19 = vsel %vm448_vm0, %v776_v16, 0.0  ;;  %v710_v22 = vmax.f32 %v9004_v17, 0.0 }
 0x101   :  { %v813_v25 = vadd.f32 %v812_v19, %v811_v14  ;;  %v9011_v26 = vpop.f32.mrb[14].mxu0 }
 0x102   :  { %v777_v27 = vcombine.low %v709_v21, %v710_v22  ;;  %v9015_v29 = vcombine.high %v9011_v26, %v9011_v26  ;;  %v7657_v30 = vpop.f32.mrb[15].mxu0  ;;  %v711_v34 = vmax.f32 %v9011_v26, 0.0 }
 0x104   :  { %v814_v31 = vsel %vm448_vm0, %v777_v27, 0.0  ;;  %v712_v35 = vmax.f32 %v9015_v29, 0.0 }
 0x105   :  { %v815_v37 = vadd.f32 %v814_v31, %v813_v25  ;;  %v9022_v40 = vpop.f32.mrb[16].mxu0 }
 0x106   :  { %v778_v42 = vcombine.low %v711_v34, %v712_v35  ;;  %v9026_v43 = vcombine.high %v9022_v40, %v9022_v40  ;;  %v7660_v44 = vpop.f32.mrb[17].mxu0  ;;  %v713_v53 = vmax.f32 %v9022_v40, 0.0 }
 0x108   :  { %v816_v45 = vsel %vm448_vm0, %v778_v42, 0.0  ;;  %v714_v46 = vmax.f32 %v9026_v43, 0.0 }
 0x109   :  { %v9032_v50 = vadd.f32 %v816_v45, %v815_v37  ;;  %v9034_v52 = vpop.f32.mrb[18].mxu0 }
 0x10a   :  { %10357 = vst [vmem:[#allocation2_spill] sm:$0xff] %v9034_v52  ;;  %v9039_v54 = vcombine.high %v9034_v52, %v9034_v52  ;;  %v7663_v55 = vpop.f32.mrb[19].mxu0  ;;  %v856_v57 = vcombine.low %v713_v53, %v714_v46  ;;  %v715_v59 = vmax.f32 %v9034_v52, 0.0 }
 0x10c   :  { %10358 = vst [vmem:[#allocation3_spill] sm:$0xff] %v9039_v54  ;;  %v716_v61 = vmax.f32 %v9039_v54, 0.0  ;;  %v864_v10 = vsel %vm448_vm0, %v856_v57, 0.0 }
 0x10d   :  { %v291_v63 = vpop.f32.mrb[20].mxu0 }
 0x10e   :  { %v857_v0 = vcombine.low %v715_v59, %v716_v61  ;;  %v9045_v3 = vcombine.high %v291_v63, %v291_v63  ;;  %v7666_v6 = vpop.f32.mrb[21].mxu0  ;;  %v9048_v9 = vsel %vm479_vm3, %v291_v63, 0.0  ;;  %v717_v44 = vmax.f32 %v291_v63, 0.0 }
 0x10f   :  { %10359 = vst [vmem:[#allocation4_spill] sm:$0xff] %v9048_v9 }
 0x110   :  { %v865_v11 = vsel %vm448_vm0, %v857_v0, 0.0  ;;  %v718_v16 = vmax.f32 %v9045_v3, 0.0 }
 0x111   :  { %v866_v12 = vadd.f32 %v865_v11, %v864_v10  ;;  %v9052_v14 = vpop.f32.mrb[22].mxu0  ;;  %v885_v10 = vsel %vm479_vm3, %v717_v44, 0.0  ;;  %v818_v44 = vrot.slane %v9032_v50, 4 }
 0x112   :  { %v9057_v18 = vcombine.high %v9052_v14, %v9052_v14  ;;  %v719_v19 = vmax.f32 %v9052_v14, 0.0  ;;  %v7669_v21 = vpop.f32.mrb[23].mxu0 }
 0x113   :  { %v819_v62 = vadd.f32 %v818_v44, %v9032_v50 }
 0x114   :  { %v779_v25 = vcombine.low %v718_v16, %v719_v19  ;;  %v720_v30 = vmax.f32 %v9057_v18, 0.0 }
 0x115   :  { %v9062_v27 = vpop.f32.mrb[24].mxu0 }
 0x116   :  { %v9067_v31 = vcombine.high %v9062_v27, %v9062_v27  ;;  %v721_v34 = vmax.f32 %v9062_v27, 0.0  ;;  %v7672_v35 = vpop.f32.mrb[25].mxu0  ;;  %v824_v45 = vsel %vm448_vm0, %v779_v25, 0.0 }
 0x118   :  { %v780_v42 = vcombine.low %v720_v30, %v721_v34  ;;  %v722_v46 = vmax.f32 %v9067_v31, 0.0 }
 0x119   :  { %v9074_v53 = vpop.f32.mrb[26].mxu0 }
 0x11a   :  { %v825_v55 = vsel %vm448_vm0, %v780_v42, 0.0  ;;  %v9079_v57 = vcombine.high %v9074_v53, %v9074_v53  ;;  %v723_v59 = vmax.f32 %v9074_v53, 0.0  ;;  %v7675_v61 = vpop.f32.mrb[27].mxu0 }
 0x11b   :  { %v826_v6 = vadd.f32 %v825_v55, %v824_v45  ;;  %v886_v45 = vrot.slane %v885_v10, 4 }
 0x11c   :  { %v781_v63 = vcombine.low %v722_v46, %v723_v59  ;;  %v724_v11 = vmax.f32 %v9079_v57, 0.0 }
 0x11d   :  { %v9086_v16 = vpop.f32.mrb[28].mxu0  ;;  %v887_v48 = vadd.f32 %v886_v45, %v885_v10  ;;  %v820_v45 = vrot.slane %v819_v62, 2 }
 0x11e   :  { %v827_v19 = vsel %vm448_vm0, %v781_v63, 0.0  ;;  %v9091_v21 = vcombine.high %v9086_v16, %v9086_v16  ;;  %v725_v25 = vmax.f32 %v9086_v16, 0.0  ;;  %v7678_v30 = vpop.f32.mrb[29].mxu0 }
 0x11f   :  { %v828_v35 = vadd.f32 %v827_v19, %v826_v6 }
 0x120   :  { %v782_v42 = vcombine.low %v724_v11, %v725_v25  ;;  %v726_v46 = vmax.f32 %v9091_v21, 0.0  ;;  %v867_v11 = vrot.slane %v866_v12, 4 }
 0x121   :  { %v9098_v55 = vpop.f32.mrb[30].mxu0 }
 0x122   :  { %v829_v59 = vsel %vm448_vm0, %v782_v42, 0.0  ;;  %v9103_v61 = vcombine.high %v9098_v55, %v9098_v55  ;;  %v727_v63 = vmax.f32 %v9098_v55, 0.0  ;;  %v7681_v30 = vpop.f32.mrb[31].mxu0 }
 0x123   :  { %v830_v19 = vadd.f32 %v829_v59, %v828_v35  ;;  %v888_v59 = vrot.slane %v887_v48, 2 }
 0x124   :  { %v783_v25 = vcombine.low %v726_v46, %v727_v63  ;;  %v728_v36 = vmax.f32 %v9103_v61, 0.0  ;;  %v868_v46 = vadd.f32 %v867_v11, %v866_v12 }
 0x125   :  { %v9110_v0 = vpop.f32.mrb[32].mxu0  ;;  %v922_v6 = vpop.xlane.xlu1 %921 }
 0x126   :  { %v831_v42 = vsel %vm448_vm0, %v783_v25, 0.0  ;;  %v9115_v23 = vcombine.high %v9110_v0, %v9110_v0  ;;  %v729_v30 = vmax.f32 %v9110_v0, 0.0  ;;  %v7684_v13 = vpop.f32.mrb[33].mxu0  ;;  %v926_v10 = vmul.f32 0.03125, %v922_v6 }
 0x127   :  { %v832_v50 = vadd.f32 %v831_v42, %v830_v19  ;;  %v869_v6 = vrot.slane %v868_v46, 2 }
 0x128   :  { %v784_v44 = vcombine.low %v728_v36, %v729_v30  ;;  %v730_v63 = vmax.f32 %v9115_v23, 0.0  ;;  %v928_v25 = vadd.f32 1e-12, %v926_v10  ;;  %v889_v30 = vadd.f32 %v888_v59, %v887_v48 }
 0x129   :  { %v9121_v2 = vpop.f32.mrb[34].mxu0  ;;  %v925_v12 = vpop.xlane.xlu1 %924  ;;  %v821_v48 = vadd.f32 %v820_v45, %v819_v62 }
 0x12a   :  { %v833_v34 = vsel %vm448_vm0, %v784_v44, 0.0  ;;  %v9126_v13 = vcombine.high %v9121_v2, %v9121_v2  ;;  %v731_v56 = vmax.f32 %v9121_v2, 0.0  ;;  %v7687_v35 = vpop.f32.mrb[35].mxu0  ;;  %8584 = vrsqrt.f32 %v928_v25 }
 0x12b   :  { %v834_v11 = vadd.f32 %v833_v34, %v832_v50  ;;  %v927_v19 = vmul.f32 0.03125, %v925_v12  ;;  %v870_v50 = vadd.f32 %v869_v6, %v868_v46 }
 0x12c   :  { %v785_v42 = vcombine.low %v730_v63, %v731_v56  ;;  %v732_v10 = vmax.f32 %v9126_v13, 0.0  ;;  %v890_v63 = vrot.slane %v889_v30, 1 }
 0x12d   :  { %v929_v44 = vadd.f32 1e-12, %v927_v19  ;;  %v9132_v47 = vpop.f32.mrb[36].mxu0  ;;  %v871_v46 = vrot.slane %v870_v50, 1 }
 0x12e   :  { %v835_v37 = vsel %vm448_vm0, %v785_v42, 0.0  ;;  %v9137_v35 = vcombine.high %v9132_v47, %v9132_v47  ;;  %v733_v22 = vmax.f32 %v9132_v47, 0.0  ;;  %v7690_v36 = vpop.f32.mrb[37].mxu0 }
 0x12f   :  { %v836_v56 = vadd.f32 %v835_v37, %v834_v11  ;;  %8586 = vrsqrt.f32 %v929_v44  ;;  %v891_v11 = vadd.f32 %v890_v63, %v889_v30  ;;  %v872_v30 = vadd.f32 %v871_v46, %v870_v50  ;;  %v7023_v63 = vld [vmem:[%s10332_s2 + $0x1] ss:$0 sm:$0xff] }
 0x130   :  { %v786_v59 = vcombine.low %v732_v10, %v733_v22  ;;  %v734_v25 = vmax.f32 %v9137_v35, 0.0  ;;  %v822_v22 = vrot.slane %v821_v48, 1 }
 0x131   :  { %v9143_v12 = vpop.f32.mrb[38].mxu0 }
 0x132   :  { %10360 = vst [vmem:[#allocation5_spill] sm:$0xff] %v9143_v12  ;;  %v837_v19 = vsel %vm448_vm0, %v786_v59, 0.0  ;;  %v9148_v42 = vcombine.high %v9143_v12, %v9143_v12  ;;  %v735_v36 = vmax.f32 %v9143_v12, 0.0  ;;  %v7693_v38 = vpop.f32.mrb[39].mxu0  ;;  %v7022_v59 = vld [vmem:[%s10332_s2] ss:$0 sm:$0xff] }
 0x133   :  { %v838_v62 = vadd.f32 %v837_v19, %v836_v56  ;;  %v900_v12 = vmul.f32 0.25, %v891_v11 }
 0x134   :  { %v858_v45 = vcombine.low %v734_v25, %v735_v36  ;;  %v8585_v6 = vpop.eup %8584  ;;  %v736_v34 = vmax.f32 %v9148_v42, 0.0  ;;  %v823_v36 = vadd.f32 %v822_v22, %v821_v48 }
 0x135   :  { %v839_v10 = vrot.slane %v838_v62, 4  ;;  %v9153_v44 = vpop.f32.mrb[40].mxu0  ;;  %v932_v19 = vmul.f32 %v8585_v6, %v8924_v20 }
 0x136   :  { %v386_v38 = vcombine.high %v9153_v44, %v9153_v44  ;;  %v737_v37 = vmax.f32 %v9153_v44, 0.0  ;;  %v7696_v56 = vpop.f32.mrb[41].mxu0 }
 0x137   :  { %v840_v25 = vadd.f32 %v839_v10, %v838_v62  ;;  %v938_v54 = vmul.f32 %v7022_v59, %v932_v19  ;;  %v873_v56 = vsel %vm448_vm0, %v858_v45, 0.0  ;;  %v883_v10 = vmul.f32 0.0625, %v872_v30 }
 0x138   :  { %v738_v4 = vmax.f32 %v386_v38, 0.0  ;;  %v859_v9 = vcombine.low %v736_v34, %v737_v37  ;;  %v9169_v52 = vsel %vm479_vm3, %v386_v38, 0.0  ;;  %v846_v34 = vmul.f32 0.015625, %v823_v36 }
 0x139   :  { %10361 = vst [vmem:[#allocation6_spill] sm:$0xff] %v9169_v52  ;;  %v841_v20 = vrot.slane %v840_v25, 2  ;;  %v944_v62 = vadd.f32 %v7023_v63, %v938_v54  ;;  %v8587_v22 = vpop.eup %8586 }
 0x13a   :  { %v874_v50 = vsel %vm448_vm0, %v859_v9, 0.0  ;;  %v892_v48 = vsel %vm479_vm3, %v738_v4, 0.0  ;;  %v933_v54 = vmul.f32 %v8587_v22, %v8929_v24  ;;  %vm628_vm3 = vcmask 654912  }
 0x13b   :  { %v875_v46 = vadd.f32 %v874_v50, %v873_v56  ;;  %v893_v6 = vrot.slane %v892_v48, 4  ;;  %v947_v37 = vsel %vm946_vm4, %v944_v62, %v900_v12  ;;  %v842_v7 = vadd.f32 %v841_v20, %v840_v25 }
 0x13c   :  { %v950_v45 = vsel %vm949_vm5, %v947_v37, %v883_v10 }
 0x13d   :  { %v876_v11 = vrot.slane %v875_v46, 4  ;;  %v894_v38 = vadd.f32 %v893_v6, %v892_v48  ;;  %v953_v19 = vsel %vm952_vm6, %v950_v45, %v846_v34  ;;  %v843_v56 = vrot.slane %v842_v7, 1 }
 0x13e   :  { %v9178_v4 = vsel %vm955_vm7, %v953_v19, %v944_v62  ;;  %v939_v6 = vmul.f32 %v7022_v59, %v933_v54 }
 0x13f   :  { %v877_v9 = vadd.f32 %v876_v11, %v875_v46  ;;  %v895_v52 = vrot.slane %v894_v38, 2  ;;  %v984_v36 = vsel %vm448_vm0, %v9178_v4, 0.0  ;;  %v844_v25 = vadd.f32 %v843_v56, %v842_v7  ;;  %v1024_v7 = vld [vmem:[%s10333_s3] sm:$0xff] }
 0x140   :  { %985 = vadd.xlane.f32.xlu0 %v984_v36  ;;  %v945_v37 = vadd.f32 %v7023_v63, %v939_v6  ;;  %v1025_v63 = vld [vmem:[%s10333_s3 + $0x8] sm:$0xff] }
 0x141   :  { %v878_v30 = vrot.slane %v877_v9, 2  ;;  %v896_v12 = vadd.f32 %v895_v52, %v894_v38  ;;  %v847_v24 = vmul.f32 0.015625, %v844_v25  ;;  %v1026_v38 = vld [vmem:[%s10333_s3 + $0x10] sm:$0xff]  ;;  %v8262_v19 = vpack.c.bf16 %v1025_v63, %v1024_v7 }
 0x142   :  { %v10362_v7 = vmov 0.0  }
 0x143   :  { %v879_v50 = vadd.f32 %v878_v30, %v877_v9  ;;  %v897_v48 = vrot.slane %v896_v12, 1  ;;  %v1027_v9 = vld [vmem:[%s10333_s3 + $0x18] sm:$0xff]  ;;  %8263 = vmatprep.subr.bf16.mxu0 %v8262_v19 }
 0x144   :  { %v8266_v54 = vpack.c.bf16 %v1027_v9, %v1026_v38  ;;  %8265 = vmatpush3.bf16.msra.mxu0 %v8262_v19 }
 0x145   :  { %v898_v10 = vadd.f32 %v897_v48, %v896_v12  ;;  %v880_v34 = vrot.slane %v879_v50, 1 }
 0x146   :  { %8267 = vmatprep.subr.bf16.mxu0 %v8266_v54 }
 0x147   :  { %v901_v20 = vmul.f32 0.25, %v898_v10  ;;  %v881_v46 = vadd.f32 %v880_v34, %v879_v50 }
 0x148   :  { %8269 = vmatpush3.bf16.msra.mxu0 %v8266_v54 }
 0x149   :  { %v884_v62 = vmul.f32 0.0625, %v881_v46  ;;  %v948_v11 = vsel %vm946_vm4, %v945_v37, %v901_v20  ;;  %v7037_v20 = vld [vmem:[%s10333_s3 + $0x100] sm:$0xff]  ;;  %v7038_v46 = vld [vmem:[%s10333_s3 + $0x108] sm:$0xff]  ;;  %vm635_vm4 = vcmask 720512  }
 0x14b   :  { %v951_v22 = vsel %vm949_vm5, %v948_v11, %v884_v62  ;;  %v7039_v62 = vld [vmem:[%s10333_s3 + $0x110] sm:$0xff]  ;;  %v7040_v11 = vld [vmem:[%s10333_s3 + $0x118] sm:$0xff]  ;;  %vm691_vm5 = vcmask 1041409  }
 0x14c   :  { %v954_v45 = vsel %vm952_vm6, %v951_v22, %v847_v24  ;;  %v8282_v24 = vpack.c.bf16 %v7040_v11, %v7039_v62  ;;  %v7029_v22 = vld [vmem:[%s10333_s3 + $0x80] sm:$0xff]  ;;  %vm694_vm6 = vcmask 687104  }
 0x14d   :  { %v9187_v52 = vsel %vm955_vm7, %v954_v45, %v945_v37  ;;  %v8278_v37 = vpack.c.bf16 %v7038_v46, %v7037_v20  ;;  %v7030_v45 = vld [vmem:[%s10333_s3 + $0x88] sm:$0xff]  ;;  %v7031_v20 = vld [vmem:[%s10333_s3 + $0x90] sm:$0xff]  ;;  %v7032_v46 = vld [vmem:[%s10333_s3 + $0x98] sm:$0xff]  ;;  %vm6968_vm7 = vcmask 326656  }
 0x14e   :  { %v987_v59 = vsel %vm448_vm0, %v9187_v52, 0.0  ;;  %v8274_v11 = vpack.c.bf16 %v7032_v46, %v7031_v20 }
 0x14f   :  { %988 = vadd.xlane.f32.xlu1 %v987_v59  ;;  %8279 = vmatprep.subr.bf16.mxu1 %v8278_v37  ;;  %v8270_v59 = vpack.c.bf16 %v7030_v45, %v7029_v22  ;;  %v7097_v45 = vld [vmem:[%s10333_s3 + $0xd0] sm:$0xff] }
 0x150   :  { %8281 = vmatpush3.bf16.msra.mxu1 %v8278_v37 }
 0x151   :  { %8283 = vmatprep.subr.bf16.mxu1 %v8282_v24  ;;  %8271 = vmatprep.subr.bf16.mxu0 %v8270_v59 }
 0x154   :  { %8285 = vmatpush3.bf16.msra.mxu1 %v8282_v24  ;;  %v7095_v24 = vld [vmem:[%s10333_s3 + $0xc0] sm:$0xff] }
 0x155   :  { %7730 = vmatprep.subr.mxu1 %v10362_v7 }
 0x1cd   :  { %v986_v36 = vpop.xlane.xlu0 %985 }
 0x1ce   :  { %v990_v30 = vmul.f32 0.03125, %v986_v36  ;;  %v9229_v36 = vld [vmem:[%s10332_s2 + $0x2] ss:$0 sm:$0xff] }
 0x1d0   :  { %v992_v12 = vsub.f32 %v9178_v4, %v990_v30 }
 0x1d2   :  { %v994_v56 = vmul.f32 %v992_v12, %v992_v12 }
 0x1d4   :  { %v996_v50 = vsel %vm448_vm0, %v994_v56, 0.0 }
 0x1d5   :  { %997 = vadd.xlane.f32.xlu0 %v996_v50  ;;  %v9234_v50 = vld [vmem:[%s10332_s2 + $0x3] ss:$0 sm:$0xff] }
 0x1dc   :  { %v989_v48 = vpop.xlane.xlu1 %988 }
 0x1dd   :  { %v991_v6 = vmul.f32 0.03125, %v989_v48 }
 0x1df   :  { %v993_v10 = vsub.f32 %v9187_v52, %v991_v6 }
 0x1e1   :  { %v995_v34 = vmul.f32 %v993_v10, %v993_v10 }
 0x1e3   :  { %v999_v25 = vsel %vm448_vm0, %v995_v34, 0.0 }
 0x1e4   :  { %1000 = vadd.xlane.f32.xlu1 %v999_v25 }
 0x262   :  { %v998_v63 = vpop.xlane.xlu0 %997 }
 0x263   :  { %v1002_v38 = vmul.f32 0.03125, %v998_v63  ;;  %v7098_v63 = vld [vmem:[%s10333_s3 + $0xd8] sm:$0xff] }
 0x265   :  { %v1004_v19 = vadd.f32 1e-12, %v1002_v38  ;;  %v8322_v38 = vpack.c.bf16 %v7098_v63, %v7097_v45 }
 0x267   :  { %8588 = vrsqrt.f32 %v1004_v19 }
 0x271   :  { %v1001_v9 = vpop.xlane.xlu1 %1000  ;;  %v8589_v54 = vpop.eup %8588 }
 0x272   :  { %v1003_v30 = vmul.f32 0.03125, %v1001_v9  ;;  %v1008_v56 = vmul.f32 %v8589_v54, %v992_v12 }
 0x274   :  { %v1005_v48 = vadd.f32 1e-12, %v1003_v30  ;;  %v1014_v6 = vmul.f32 %v9229_v36, %v1008_v56 }
 0x276   :  { %8590 = vrsqrt.f32 %v1005_v48  ;;  %v9238_v34 = vadd.f32 %v9234_v50, %v1014_v6  ;;  %v7034_v48 = vld [vmem:[%s10334_s4 + $0x4] ss:$0 sm:$0xff] }
 0x278   :  { %7705 = vmatprep.mubr.msk.f32.mxu0 %vm448_vm0, %v9238_v34  ;;  %7727 = vmatprep.mubr.msk.f32.mxu1 %vm448_vm0, %v9238_v34 }
 0x280   :  { %v8591_v25 = vpop.eup %8590 }
 0x281   :  { %v1009_v12 = vmul.f32 %v8591_v25, %v993_v10  ;;  %v7096_v10 = vld [vmem:[%s10333_s3 + $0xc8] sm:$0xff] }
 0x282   :  { %v8318_v22 = vpack.c.bf16 %v7096_v10, %v7095_v24 }
 0x283   :  { %v1015_v37 = vmul.f32 %v9229_v36, %v1009_v12  ;;  %v7026_v12 = vld [vmem:[%s10334_s4] ss:$0 sm:$0xff] }
 0x285   :  { %v9252_v62 = vadd.f32 %v9234_v50, %v1015_v37 }
 0x287   :  { %7706 = vmatmul.mubr.msk.f32.vlgmr.msra.gmra.mrb[42].mxu0 %vm448_vm0, %v9252_v62  ;;  %7728 = vmatmul.mubr.msk.f32.vlgmr.msra.gmra.mrb[0].mxu1 %vm448_vm0, %v9252_v62 }
 0x288   :  { %8273 = vmatpush3.bf16.msra.mxu0 %v8270_v59  ;;  %7716 = vmatprep.mubr.msk.f32.mxu0 %vm448_vm0, %v9238_v34  ;;  %v7042_v59 = vld [vmem:[%s10334_s4 + $0x8] ss:$0 sm:$0xff] }
 0x289   :  { %8275 = vmatprep.subr.bf16.mxu0 %v8274_v11  ;;  %7732 = vmatprep.mubr.msk.f32.mxu1 %vm8681_vm1, %v10362_v7 }
 0x28c   :  { %8277 = vmatpush3.bf16.msra.mxu0 %v8274_v11  ;;  %v7100_v11 = vld [vmem:[%s10334_s4 + $0x6] ss:$0 sm:$0xff] }
 0x28d   :  { %8319 = vmatprep.subr.bf16.mxu0 %v8318_v22 }
 0x28f   :  { %7717 = vmatmul.mubr.msk.f32.vlgmr.msra.gmra.mrb[44].mxu0 %vm448_vm0, %v9252_v62 }
 0x290   :  { %8321 = vmatpush3.bf16.msra.mxu0 %v8318_v22  ;;  %7832 = vmatprep.mubr.msk.f32.mxu0 %vm448_vm0, %v9238_v34 }
 0x291   :  { %8323 = vmatprep.subr.bf16.mxu0 %v8322_v38 }
 0x294   :  { %8325 = vmatpush3.bf16.msra.mxu0 %v8322_v38 }
 0x295   :  { %7846 = vmatprep.subr.mxu0 %v10362_v7 }
 0x297   :  { %7833 = vmatmul.mubr.msk.f32.vlgmr.msra.gmra.mrb[46].mxu0 %vm448_vm0, %v9252_v62 }
 0x298   :  { %7848 = vmatprep.mubr.msk.f32.mxu0 %vm8681_vm1, %v10362_v7 }
 0x35a   :  { %v7707_v19 = vpop.f32.mrb[42].mxu0  ;;  %v7729_v9 = vpop.f32.mrb[0].mxu1 }
 0x35b   :  { %v9286_v54 = vadd.f32 %v7729_v9, %v7042_v59  ;;  %v1107_v30 = vpop.f32.mrb[43].mxu0  ;;  %v1283_v56 = vpop.f32.mrb[1].mxu1  ;;  %v1113_v10 = vadd.f32 %v7707_v19, %v7026_v12  ;;  %v10347_v19 = vlaneseq  ;;  %v8683_v9 = vmov 1966171168  }
 0x35c   :  { %v1108_v46 = vadd.f32 %v7026_v12, %v1107_v30  ;;  %v1284_v63 = vadd.f32 %v7042_v59, %v1283_v56  ;;  %v963_v30 = vunpack.c.l.s4 %v8683_v9  ;;  %v958_v59 = vld [vmem:[%s10335_s1] sm:$0x3] }
 0x35d   :  { %v9316_v56 = vshrl.u32 %v10347_v19, 7 }
 0x35f   :  { %10363 = vst [vmem:[#allocation7_spill] sm:$0xff] %v9316_v56 }
 0x362   :  { %v7718_v6 = vpop.f32.mrb[44].mxu0 }
 0x363   :  { %v1195_v25 = vpop.f32.mrb[45].mxu0  ;;  %v1201_v37 = vadd.f32 %v7718_v6, %v7034_v48  ;;  %v964_v6 = vunpack.c.0.s8 %v963_v30 }
 0x364   :  { %v1196_v20 = vadd.f32 %v7034_v48, %v1195_v25  ;;  %v959_v48 = vsub.f32 1.0, %v958_v59 }
 0x365   :  { %v967_v12 = vsub.s32 %v964_v6, %v9316_v56 }
 0x366   :  { %7731 = vmatpush3.xpose.msk.msra.mxu1 %vm1292_vm8, %v1196_v20  ;;  %v960_v25 = vmul.f32 10000.0, %v959_v48 }
 0x367   :  { %7735 = vmatprep.subr.mxu1 %v10362_v7 }
 0x368   :  { %v968_v20 = vrot.slane %v960_v25, %v967_v12 }
 0x369   :  { %7733 = vmatmul.mubr.msk.f32.vlgmr.msra.gmra.mrb[2].mxu1 %vm1292_vm8, %v1108_v46 }
 0x36a   :  { %7736 = vmatpush3.xpose.msk.msra.mxu1 %vm1292_vm8, %v1201_v37  ;;  %v7834_v24 = vpop.f32.mrb[46].mxu0  ;;  %7737 = vmatprep.mubr.msk.f32.mxu1 %vm8681_vm1, %v10362_v7  ;;  %v976_v46 = vrot.slane %v968_v20, %v967_v12  ;;  %v1447_v37 = vsub.s32 0, %v9316_v56 }
 0x36b   :  { %v9303_v22 = vadd.f32 %v7834_v24, %v7100_v11  ;;  %v2551_v45 = vpop.f32.mrb[47].mxu0  ;;  %7740 = vmatprep.subr.mxu1 %v10362_v7 }
 0x36c   :  { %v2552_v38 = vadd.f32 %v7100_v11, %v2551_v45  ;;  %v969_v11 = vcombine.high %v968_v20, %v968_v20  ;;  %v9320_v24 = vrot.slane %v976_v46, %v1447_v37 }
 0x36d   :  { %7738 = vmatmul.mubr.msk.f32.vlgmr.msra.gmra.mrb[4].mxu1 %vm1292_vm8, %v1113_v10 }
 0x36e   :  { %7741 = vmatpush3.msra.mxu1 %v1284_v63  ;;  %7847 = vmatpush3.xpose.msk.msra.mxu0 %vm1292_vm8, %v2552_v38  ;;  %v983_v10 = vrot.slane %v969_v11, %v967_v12 }
 0x36f   :  { %7742 = vmatprep.mubr.msk.f32.mxu1 %vm8681_vm1, %v10362_v7  ;;  %7745 = vmatprep.subr.mxu1 %v10362_v7 }
 0x370   :  { %7851 = vmatprep.subr.mxu0 %v10362_v7  ;;  %v9323_v9 = vrot.slane %v983_v10, %v1447_v37 }
 0x43c   :  { %v1365_v45 = vpop.f32.mrb[2].mxu1 }
 0x43d   :  { %v1455_v63 = vsub.f32 %v1365_v45, %v9320_v24  ;;  %v7734_v38 = vpop.f32.mrb[3].mxu1 }
 0x43f   :  { %v1457_v59 = vsel %vm1292_vm8, %v1455_v63, -inf }
 0x440   :  { %1458 = vmax.xlane.f32.xlu0 %v1457_v59  ;;  %v1441_v30 = vpop.f32.mrb[4].mxu1 }
 0x441   :  { %v1456_v48 = vsub.f32 %v1441_v30, %v9323_v9  ;;  %v7739_v6 = vpop.f32.mrb[5].mxu1 }
 0x443   :  { %v1460_v25 = vsel %vm1292_vm8, %v1456_v48, -inf }
 0x444   :  { %1461 = vmax.xlane.f32.xlu1 %v1460_v25 }
 0x4cd   :  { %v1459_v20 = vpop.xlane.xlu0 %1458 }
 0x4ce   :  { %v1463_v46 = vsub.f32 %v1455_v63, %v1459_v20  ;;  %v1625_v20 = vld [vmem:[%s10336_s5] sm:$0xff] }
 0x4d0   :  { %v1465_v19 = vmul.f32 1.442695, %v1463_v46  ;;  %v7054_v46 = vld [vmem:[%s10333_s3 + $0x20] sm:$0xff] }
 0x4d1   :  { %v1462_v12 = vpop.xlane.xlu1 %1461 }
 0x4d2   :  { %8592 = vpow2.f32 %v1465_v19  ;;  %v1464_v11 = vsub.f32 %v1456_v48, %v1462_v12 }
 0x4d4   :  { %v1467_v45 = vmul.f32 1.442695, %v1464_v11 }
 0x4d6   :  { %8594 = vpow2.f32 %v1467_v45  ;;  %v7056_v45 = vld [vmem:[%s10333_s3 + $0x30] sm:$0xff] }
 0x4dc   :  { %v8593_v37 = vpop.eup %8592 }
 0x4dd   :  { %v1469_v10 = vsel %vm1292_vm8, %v8593_v37, 0.0 }
 0x4de   :  { %1470 = vadd.xlane.f32.xlu0 %v1469_v10 }
 0x4e0   :  { %v8595_v38 = vpop.eup %8594 }
 0x4e1   :  { %v1472_v59 = vsel %vm1292_vm8, %v8595_v38, 0.0 }
 0x4e2   :  { %1473 = vadd.xlane.f32.xlu1 %v1472_v59 }
 0x56b   :  { %v1471_v30 = vpop.xlane.xlu0 %1470 }
 0x56c   :  { %8596 = vrcp.f32 %v1471_v30  ;;  %v7062_v30 = vld [vmem:[%s10333_s3 + $0xa0] sm:$0xff] }
 0x56f   :  { %v1474_v6 = vpop.xlane.xlu1 %1473 }
 0x570   :  { %8598 = vrcp.f32 %v1474_v6  ;;  %v7063_v6 = vld [vmem:[%s10333_s3 + $0xa8] sm:$0xff] }
 0x576   :  { %v8597_v25 = vpop.eup %8596 }
 0x577   :  { %v9330_v63 = vmul.f32 %v8597_v25, %v8593_v37  ;;  %v7057_v37 = vld [vmem:[%s10333_s3 + $0x38] sm:$0xff] }
 0x579   :  { %10364 = vst [vmem:[#allocation8_spill] sm:$0xff] %v9330_v63  ;;  %7743 = vmatmul.mubr.msk.f32.vlgmr.msra.gmra.mrb[6].mxu1 %vm1292_vm8, %v9330_v63 }
 0x57a   :  { %v8599_v19 = vpop.eup %8598  ;;  %7746 = vmatpush3.msra.mxu1 %v9286_v54  ;;  %7747 = vmatprep.mubr.msk.f32.mxu1 %vm8681_vm1, %v10362_v7  ;;  %v7055_v54 = vld [vmem:[%s10333_s3 + $0x28] sm:$0xff] }
 0x57b   :  { %v9337_v48 = vmul.f32 %v8599_v19, %v8595_v38  ;;  %7750 = vmatprep.subr.mxu1 %v1625_v20  ;;  %v8286_v12 = vpack.c.bf16 %v7055_v54, %v7054_v46  ;;  %v8290_v38 = vpack.c.bf16 %v7057_v37, %v7056_v45  ;;  %v8294_v19 = vpack.c.bf16 %v7063_v6, %v7062_v30  ;;  %v7065_v46 = vld [vmem:[%s10333_s3 + $0xb8] sm:$0xff]  ;;  %v7072_v37 = vld [vmem:[%s10333_s3 + $0x130] sm:$0xff]  ;;  %v7067_v6 = vld [vmem:[%s10334_s4 + $0x5] ss:$0 sm:$0xff] }
 0x57d   :  { %7748 = vmatmul.mubr.msk.f32.vlgmr.msra.gmra.mrb[8].mxu1 %vm1292_vm8, %v9337_v48 }
 0x57e   :  { %7751 = vmatpush3.msra.mxu1 %v1625_v20  ;;  %v7064_v20 = vld [vmem:[%s10333_s3 + $0xb0] sm:$0xff] }
 0x57f   :  { %8287 = vmatprep.subr.bf16.mxu1 %v8286_v12  ;;  %v8298_v54 = vpack.c.bf16 %v7065_v46, %v7064_v20  ;;  %v7059_v20 = vld [vmem:[%s10334_s4 + $0x1] ss:$0 sm:$0xff] }
 0x64c   :  { %v1548_v11 = vpop.f32.mrb[6].mxu1 }
 0x64d   :  { %v7744_v10 = vpop.f32.mrb[7].mxu1  ;;  %7752 = vmatprep.mubr.msk.f32.mxu1 %vm1292_vm8, %v1548_v11  ;;  %v7071_v11 = vld [vmem:[%s10333_s3 + $0x128] sm:$0xff] }
 0x64e   :  { %v7073_v10 = vld [vmem:[%s10333_s3 + $0x138] sm:$0xff] }
 0x650   :  { %v1621_v59 = vpop.f32.mrb[8].mxu1 }
 0x651   :  { %v7749_v25 = vpop.f32.mrb[9].mxu1  ;;  %7753 = vmatmul.mubr.msk.f32.vlgmr.msra.gmra.mrb[10].mxu1 %vm1292_vm8, %v1621_v59 }
 0x652   :  { %8289 = vmatpush3.bf16.msra.mxu1 %v8286_v12  ;;  %7763 = vmatprep.mubr.msk.f32.mxu1 %vm448_vm0, %v9238_v34  ;;  %v7070_v12 = vld [vmem:[%s10333_s3 + $0x120] sm:$0xff] }
 0x653   :  { %8291 = vmatprep.subr.bf16.mxu1 %v8290_v38  ;;  %v8302_v45 = vpack.c.bf16 %v7071_v11, %v7070_v12  ;;  %v7075_v11 = vld [vmem:[%s10334_s4 + $0x9] ss:$0 sm:$0xff] }
 0x656   :  { %8293 = vmatpush3.bf16.msra.mxu1 %v8290_v38  ;;  %v8306_v38 = vpack.c.bf16 %v7073_v10, %v7072_v37 }
 0x657   :  { %8295 = vmatprep.subr.bf16.mxu1 %v8294_v19 }
 0x659   :  { %7764 = vmatmul.mubr.msk.f32.vlgmr.msra.gmra.mrb[12].mxu1 %vm448_vm0, %v9252_v62 }
 0x65a   :  { %8297 = vmatpush3.bf16.msra.mxu1 %v8294_v19  ;;  %7774 = vmatprep.mubr.msk.f32.mxu1 %vm448_vm0, %v9238_v34 }
 0x65b   :  { %8299 = vmatprep.subr.bf16.mxu1 %v8298_v54 }
 0x65e   :  { %8301 = vmatpush3.bf16.msra.mxu1 %v8298_v54 }
 0x65f   :  { %8303 = vmatprep.subr.bf16.mxu1 %v8302_v45 }
 0x661   :  { %7775 = vmatmul.mubr.msk.f32.vlgmr.msra.gmra.mrb[14].mxu1 %vm448_vm0, %v9252_v62 }
 0x662   :  { %8305 = vmatpush3.bf16.msra.mxu1 %v8302_v45  ;;  %7785 = vmatprep.mubr.msk.f32.mxu1 %vm448_vm0, %v9238_v34 }
 0x663   :  { %8307 = vmatprep.subr.bf16.mxu1 %v8306_v38 }
 0x666   :  { %8309 = vmatpush3.bf16.msra.mxu1 %v8306_v38 }
 0x667   :  { %7788 = vmatprep.subr.mxu1 %v10362_v7 }
 0x669   :  { %7786 = vmatmul.mubr.msk.f32.vlgmr.msra.gmra.mrb[16].mxu1 %vm448_vm0, %v9252_v62 }
 0x66a   :  { %7790 = vmatprep.mubr.msk.f32.mxu1 %vm8681_vm1, %v10362_v7 }
 0x72c   :  { %v7765_v59 = vpop.f32.mrb[12].mxu1 }
 0x72d   :  { %v1792_v30 = vpop.f32.mrb[13].mxu1  ;;  %v1798_v37 = vadd.f32 %v7765_v59, %v7059_v20 }
 0x72e   :  { %v1793_v54 = vadd.f32 %v7059_v20, %v1792_v30 }
 0x734   :  { %v7776_v25 = vpop.f32.mrb[14].mxu1 }
 0x735   :  { %v1880_v19 = vpop.f32.mrb[15].mxu1  ;;  %v1886_v12 = vadd.f32 %v7776_v25, %v7067_v6 }
 0x736   :  { %v1881_v46 = vadd.f32 %v7067_v6, %v1880_v19 }
 0x738   :  { %7789 = vmatpush3.xpose.msk.msra.mxu1 %vm1292_vm8, %v1881_v46 }
 0x739   :  { %7793 = vmatprep.subr.mxu1 %v10362_v7 }
 0x73b   :  { %7791 = vmatmul.mubr.msk.f32.vlgmr.msra.gmra.mrb[18].mxu1 %vm1292_vm8, %v1793_v54 }
 0x73c   :  { %v7787_v45 = vpop.f32.mrb[16].mxu1  ;;  %7794 = vmatpush3.xpose.msk.msra.mxu1 %vm1292_vm8, %v1886_v12  ;;  %7795 = vmatprep.mubr.msk.f32.mxu1 %vm8681_vm1, %v10362_v7 }
 0x73d   :  { %v1974_v10 = vadd.f32 %v7787_v45, %v7075_v11  ;;  %v1968_v38 = vpop.f32.mrb[17].mxu1  ;;  %7798 = vmatprep.subr.mxu1 %v10362_v7 }
 0x73e   :  { %v1969_v30 = vadd.f32 %v7075_v11, %v1968_v38 }
 0x73f   :  { %7796 = vmatmul.mubr.msk.f32.vlgmr.msra.gmra.mrb[20].mxu1 %vm1292_vm8, %v1798_v37 }
 0x740   :  { %7799 = vmatpush3.msra.mxu1 %v1969_v30  ;;  %7800 = vmatprep.mubr.msk.f32.mxu1 %vm8681_vm1, %v10362_v7 }
 0x741   :  { %7803 = vmatprep.subr.mxu1 %v10362_v7 }
 0x80e   :  { %v2049_v6 = vpop.f32.mrb[18].mxu1 }
 0x80f   :  { %v2129_v25 = vsub.f32 %v2049_v6, %v9320_v24  ;;  %v7792_v19 = vpop.f32.mrb[19].mxu1 }
 0x811   :  { %v2131_v46 = vsel %vm1292_vm8, %v2129_v25, -inf }
 0x812   :  { %2132 = vmax.xlane.f32.xlu0 %v2131_v46  ;;  %v2125_v59 = vpop.f32.mrb[20].mxu1 }
 0x813   :  { %v2130_v20 = vsub.f32 %v2125_v59, %v9323_v9  ;;  %v7797_v54 = vpop.f32.mrb[21].mxu1 }
 0x815   :  { %v2134_v12 = vsel %vm1292_vm8, %v2130_v20, -inf }
 0x816   :  { %2135 = vmax.xlane.f32.xlu1 %v2134_v12 }
 0x89f   :  { %v2133_v11 = vpop.xlane.xlu0 %2132 }
 0x8a0   :  { %v2137_v45 = vsub.f32 %v2129_v25, %v2133_v11  ;;  %v7087_v11 = vld [vmem:[%s10333_s3 + $0x40] sm:$0xff] }
 0x8a2   :  { %v2139_v37 = vmul.f32 1.442695, %v2137_v45 }
 0x8a3   :  { %v2136_v38 = vpop.xlane.xlu1 %2135 }
 0x8a4   :  { %8600 = vpow2.f32 %v2139_v37  ;;  %v2138_v30 = vsub.f32 %v2130_v20, %v2136_v38  ;;  %v7089_v38 = vld [vmem:[%s10333_s3 + $0x50] sm:$0xff] }
 0x8a6   :  { %v2141_v56 = vmul.f32 1.442695, %v2138_v30  ;;  %v7090_v30 = vld [vmem:[%s10333_s3 + $0x58] sm:$0xff] }
 0x8a8   :  { %8602 = vpow2.f32 %v2141_v56 }
 0x8ae   :  { %v8601_v6 = vpop.eup %8600 }
 0x8af   :  { %v2143_v19 = vsel %vm1292_vm8, %v8601_v6, 0.0 }
 0x8b0   :  { %2144 = vadd.xlane.f32.xlu0 %v2143_v19  ;;  %v8314_v19 = vpack.c.bf16 %v7090_v30, %v7089_v38 }
 0x8b2   :  { %v8603_v46 = vpop.eup %8602 }
 0x8b3   :  { %v2146_v63 = vsel %vm1292_vm8, %v8603_v46, 0.0 }
 0x8b4   :  { %2147 = vadd.xlane.f32.xlu1 %v2146_v63  ;;  %v7084_v63 = vld [vmem:[%s10336_s5 + $0x8] sm:$0xff] }
 0x93d   :  { %v2145_v59 = vpop.xlane.xlu0 %2144 }
 0x93e   :  { %8604 = vrcp.f32 %v2145_v59  ;;  %v7103_v59 = vld [vmem:[%s10333_s3 + $0x140] sm:$0xff] }
 0x941   :  { %v2148_v54 = vpop.xlane.xlu1 %2147 }
 0x942   :  { %8606 = vrcp.f32 %v2148_v54  ;;  %v7104_v54 = vld [vmem:[%s10333_s3 + $0x148] sm:$0xff] }
 0x948   :  { %v8605_v12 = vpop.eup %8604 }
 0x949   :  { %v9423_v25 = vmul.f32 %v8605_v12, %v8601_v6 }
 0x94b   :  { %10365 = vst [vmem:[#allocation9_spill] sm:$0xff] %v9423_v25  ;;  %7801 = vmatmul.mubr.msk.f32.vlgmr.msra.gmra.mrb[22].mxu1 %vm1292_vm8, %v9423_v25 }
 0x94c   :  { %v8607_v20 = vpop.eup %8606  ;;  %7804 = vmatpush3.msra.mxu1 %v1974_v10  ;;  %7805 = vmatprep.mubr.msk.f32.mxu1 %vm8681_vm1, %v10362_v7  ;;  %v7088_v10 = vld [vmem:[%s10333_s3 + $0x48] sm:$0xff] }
 0x94d   :  { %v9429_v56 = vmul.f32 %v8607_v20, %v8603_v46  ;;  %7808 = vmatprep.subr.mxu1 %v7084_v63  ;;  %v8310_v45 = vpack.c.bf16 %v7088_v10, %v7087_v11  ;;  %v8326_v20 = vpack.c.bf16 %v7104_v54, %v7103_v59  ;;  %v7106_v11 = vld [vmem:[%s10333_s3 + $0x158] sm:$0xff] }
 0x94f   :  { %10366 = vst [vmem:[#allocation10_spill] sm:$0xff] %v9429_v56  ;;  %7806 = vmatmul.mubr.msk.f32.vlgmr.msra.gmra.mrb[24].mxu1 %vm1292_vm8, %v9429_v56 }
 0x950   :  { %7809 = vmatpush3.msra.mxu1 %v7084_v63  ;;  %v7105_v63 = vld [vmem:[%s10333_s3 + $0x150] sm:$0xff] }
 0x951   :  { %8311 = vmatprep.subr.bf16.mxu1 %v8310_v45  ;;  %v8330_v10 = vpack.c.bf16 %v7106_v11, %v7105_v63 }
 0xa1e   :  { %v2222_v37 = vpop.f32.mrb[22].mxu1 }
 0xa1f   :  { %v7802_v6 = vpop.f32.mrb[23].mxu1  ;;  %7810 = vmatprep.mubr.msk.f32.mxu1 %vm1292_vm8, %v2222_v37 }
 0xa22   :  { %v2295_v46 = vpop.f32.mrb[24].mxu1 }
 0xa23   :  { %v7807_v12 = vpop.f32.mrb[25].mxu1  ;;  %7811 = vmatmul.mubr.msk.f32.vlgmr.msra.gmra.mrb[10].mxu1 %vm1292_vm8, %v2295_v46 }
 0xa24   :  { %8313 = vmatpush3.bf16.msra.mxu1 %v8310_v45  ;;  %7821 = vmatprep.mubr.msk.f32.mxu1 %vm448_vm0, %v9238_v34  ;;  %v7092_v45 = vld [vmem:[%s10334_s4 + $0x2] ss:$0 sm:$0xff] }
 0xa25   :  { %8315 = vmatprep.subr.bf16.mxu1 %v8314_v19 }
 0xa28   :  { %8317 = vmatpush3.bf16.msra.mxu1 %v8314_v19  ;;  %v7108_v19 = vld [vmem:[%s10334_s4 + $0xa] ss:$0 sm:$0xff] }
 0xa29   :  { %8327 = vmatprep.subr.bf16.mxu1 %v8326_v20 }
 0xa2b   :  { %7822 = vmatmul.mubr.msk.f32.vlgmr.msra.gmra.mrb[26].mxu1 %vm448_vm0, %v9252_v62 }
 0xa2c   :  { %8329 = vmatpush3.bf16.msra.mxu1 %v8326_v20  ;;  %7843 = vmatprep.mubr.msk.f32.mxu1 %vm448_vm0, %v9238_v34 }
 0xa2d   :  { %8331 = vmatprep.subr.bf16.mxu1 %v8330_v10 }
 0xa30   :  { %8333 = vmatpush3.bf16.msra.mxu1 %v8330_v10 }
 0xa31   :  { %7856 = vmatprep.subr.mxu1 %v10362_v7 }
 0xa33   :  { %7844 = vmatmul.mubr.msk.f32.vlgmr.msra.gmra.mrb[28].mxu1 %vm448_vm0, %v9252_v62 }
 0xa34   :  { %7858 = vmatprep.mubr.msk.f32.mxu1 %vm8681_vm1, %v10362_v7 }
 0xafe   :  { %v7823_v37 = vpop.f32.mrb[26].mxu1 }
 0xaff   :  { %v2463_v38 = vpop.f32.mrb[27].mxu1  ;;  %v2469_v6 = vadd.f32 %v7823_v37, %v7092_v45 }
 0xb00   :  { %v2464_v30 = vadd.f32 %v7092_v45, %v2463_v38 }
 0xb02   :  { %7849 = vmatmul.mubr.msk.f32.vlgmr.msra.gmra.mrb[48].mxu0 %vm1292_vm8, %v2464_v30 }
 0xb03   :  { %7852 = vmatpush3.xpose.msk.msra.mxu0 %vm1292_vm8, %v9303_v22  ;;  %7853 = vmatprep.mubr.msk.f32.mxu0 %vm8681_vm1, %v10362_v7 }
 0xb04   :  { %7861 = vmatprep.subr.mxu0 %v10362_v7 }
 0xb06   :  { %v7845_v46 = vpop.f32.mrb[28].mxu1  ;;  %7854 = vmatmul.mubr.msk.f32.vlgmr.msra.gmra.mrb[50].mxu0 %vm1292_vm8, %v2469_v6 }
 0xb07   :  { %v2645_v59 = vadd.f32 %v7845_v46, %v7108_v19  ;;  %v2639_v54 = vpop.f32.mrb[29].mxu1  ;;  %7863 = vmatprep.mubr.msk.f32.mxu0 %vm8681_vm1, %v10362_v7 }
 0xb08   :  { %v2640_v12 = vadd.f32 %v7108_v19, %v2639_v54 }
 0xb09   :  { %7862 = vmatpush3.msra.mxu0 %v2645_v59 }
 0xb0a   :  { %7857 = vmatpush3.msra.mxu1 %v2640_v12 }
 0xbd5   :  { %v2720_v22 = vpop.f32.mrb[48].mxu0 }
 0xbd6   :  { %v2800_v20 = vsub.f32 %v2720_v22, %v9320_v24  ;;  %v7850_v63 = vpop.f32.mrb[49].mxu0 }
 0xbd8   :  { %v2802_v11 = vsel %vm1292_vm8, %v2800_v20, -inf }
 0xbd9   :  { %2803 = vmax.xlane.f32.xlu0 %v2802_v11  ;;  %v2796_v10 = vpop.f32.mrb[50].mxu0 }
 0xbda   :  { %v2801_v45 = vsub.f32 %v2796_v10, %v9323_v9  ;;  %v7855_v37 = vpop.f32.mrb[51].mxu0  ;;  %v7120_v10 = vld [vmem:[%s10333_s3 + $0x60] sm:$0xff] }
 0xbdc   :  { %v2805_v38 = vsel %vm1292_vm8, %v2801_v45, -inf }
 0xbdd   :  { %2806 = vmax.xlane.f32.xlu1 %v2805_v38 }
 0xc66   :  { %v2804_v30 = vpop.xlane.xlu0 %2803 }
 0xc67   :  { %v2808_v6 = vsub.f32 %v2800_v20, %v2804_v30  ;;  %v7121_v20 = vld [vmem:[%s10333_s3 + $0x68] sm:$0xff] }
 0xc68   :  { %v8334_v37 = vpack.c.bf16 %v7121_v20, %v7120_v10  ;;  %v7139_v20 = vld [vmem:[%s10333_s3 + $0x178] sm:$0xff] }
 0xc69   :  { %v2810_v46 = vmul.f32 1.442695, %v2808_v6 }
 0xc6a   :  { %v2807_v19 = vpop.xlane.xlu1 %2806  ;;  %8335 = vmatprep.subr.bf16.mxu0 %v8334_v37 }
 0xc6b   :  { %8608 = vpow2.f32 %v2810_v46  ;;  %v2809_v59 = vsub.f32 %v2801_v45, %v2807_v19  ;;  %v7122_v46 = vld [vmem:[%s10333_s3 + $0x70] sm:$0xff]  ;;  %v7123_v19 = vld [vmem:[%s10333_s3 + $0x78] sm:$0xff] }
 0xc6d   :  { %v2812_v54 = vmul.f32 1.442695, %v2809_v59 }
 0xc6f   :  { %8610 = vpow2.f32 %v2812_v54 }
 0xc75   :  { %v8609_v12 = vpop.eup %8608 }
 0xc76   :  { %v2814_v22 = vsel %vm1292_vm8, %v8609_v12, 0.0 }
 0xc77   :  { %2815 = vadd.xlane.f32.xlu0 %v2814_v22  ;;  %v8338_v22 = vpack.c.bf16 %v7123_v19, %v7122_v46 }
 0xc79   :  { %v8611_v63 = vpop.eup %8610 }
 0xc7a   :  { %v2817_v11 = vsel %vm1292_vm8, %v8611_v63, 0.0 }
 0xc7b   :  { %2818 = vadd.xlane.f32.xlu1 %v2817_v11  ;;  %v7137_v11 = vld [vmem:[%s10333_s3 + $0x168] sm:$0xff] }
 0xd04   :  { %v2816_v45 = vpop.xlane.xlu0 %2815 }
 0xd05   :  { %8612 = vrcp.f32 %v2816_v45 }
 0xd08   :  { %v2819_v38 = vpop.xlane.xlu1 %2818 }
 0xd09   :  { %8614 = vrcp.f32 %v2819_v38  ;;  %v7128_v38 = vld [vmem:[%s10333_s3 + $0xe0] sm:$0xff] }
 0xd0f   :  { %v8613_v30 = vpop.eup %8612 }
 0xd10   :  { %v9500_v6 = vmul.f32 %v8613_v30, %v8609_v12  ;;  %v7136_v12 = vld [vmem:[%s10333_s3 + $0x160] sm:$0xff]  ;;  %v7129_v30 = vld [vmem:[%s10333_s3 + $0xe8] sm:$0xff] }
 0xd11   :  { %v8350_v10 = vpack.c.bf16 %v7137_v11, %v7136_v12  ;;  %v8342_v46 = vpack.c.bf16 %v7129_v30, %v7128_v38 }
 0xd12   :  { %10367 = vst [vmem:[#allocation11_spill] sm:$0xff] %v9500_v6  ;;  %7859 = vmatmul.mubr.msk.f32.vlgmr.msra.gmra.mrb[30].mxu1 %vm1292_vm8, %v9500_v6 }
 0xd13   :  { %v8615_v59 = vpop.eup %8614 }
 0xd14   :  { %v9510_v54 = vmul.f32 %v8615_v59, %v8611_v63  ;;  %v7138_v63 = vld [vmem:[%s10333_s3 + $0x170] sm:$0xff] }
 0xd15   :  { %v8354_v45 = vpack.c.bf16 %v7139_v20, %v7138_v63  ;;  %v7130_v59 = vld [vmem:[%s10333_s3 + $0xf0] sm:$0xff] }
 0xd16   :  { %10368 = vst [vmem:[#allocation12_spill] sm:$0xff] %v9510_v54  ;;  %7864 = vmatmul.mubr.msk.f32.vlgmr.msra.gmra.mrb[52].mxu0 %vm1292_vm8, %v9510_v54 }
 0xd17   :  { %8337 = vmatpush3.bf16.msra.mxu0 %v8334_v37  ;;  %7879 = vmatprep.mubr.msk.f32.mxu0 %vm448_vm0, %v9238_v34  ;;  %v7117_v37 = vld [vmem:[%s10336_s5 + $0x10] sm:$0xff] }
 0xd18   :  { %8339 = vmatprep.subr.bf16.mxu0 %v8338_v22  ;;  %7866 = vmatprep.subr.mxu1 %v7117_v37 }
 0xd19   :  { %7867 = vmatpush3.msra.mxu1 %v7117_v37  ;;  %v7141_v37 = vld [vmem:[%s10334_s4 + $0xb] ss:$0 sm:$0xff] }
 0xd1a   :  { %8343 = vmatprep.subr.bf16.mxu1 %v8342_v46 }
 0xd1b   :  { %8341 = vmatpush3.bf16.msra.mxu0 %v8338_v22  ;;  %v7131_v22 = vld [vmem:[%s10333_s3 + $0xf8] sm:$0xff] }
 0xd1c   :  { %8351 = vmatprep.subr.bf16.mxu0 %v8350_v10  ;;  %v8346_v11 = vpack.c.bf16 %v7131_v22, %v7130_v59 }
 0xd1e   :  { %7880 = vmatmul.mubr.msk.f32.vlgmr.msra.gmra.mrb[54].mxu0 %vm448_vm0, %v9252_v62 }
 0xd1f   :  { %8353 = vmatpush3.bf16.msra.mxu0 %v8350_v10  ;;  %7901 = vmatprep.mubr.msk.f32.mxu0 %vm448_vm0, %v9238_v34 }
 0xd20   :  { %8355 = vmatprep.subr.bf16.mxu0 %v8354_v45 }
 0xd23   :  { %8357 = vmatpush3.bf16.msra.mxu0 %v8354_v45 }
 0xd24   :  { %7914 = vmatprep.subr.mxu0 %v10362_v7 }
 0xd26   :  { %7902 = vmatmul.mubr.msk.f32.vlgmr.msra.gmra.mrb[56].mxu0 %vm448_vm0, %v9252_v62 }
 0xd27   :  { %7916 = vmatprep.mubr.msk.f32.mxu0 %vm8681_vm1, %v10362_v7 }
 0xde5   :  { %v2893_v19 = vpop.f32.mrb[30].mxu1 }
 0xde6   :  { %v7860_v12 = vpop.f32.mrb[31].mxu1  ;;  %7868 = vmatprep.mubr.msk.f32.mxu1 %vm1292_vm8, %v2893_v19  ;;  %v7133_v19 = vld [vmem:[%s10334_s4 + $0x7] ss:$0 sm:$0xff] }
 0xde9   :  { %v2966_v10 = vpop.f32.mrb[52].mxu0 }
 0xdea   :  { %v7865_v63 = vpop.f32.mrb[53].mxu0  ;;  %7869 = vmatmul.mubr.msk.f32.vlgmr.msra.gmra.mrb[10].mxu1 %vm1292_vm8, %v2966_v10 }
 0xdeb   :  { %8345 = vmatpush3.bf16.msra.mxu1 %v8342_v46  ;;  %7890 = vmatprep.mubr.msk.f32.mxu1 %vm448_vm0, %v9238_v34 }
 0xdec   :  { %8347 = vmatprep.subr.bf16.mxu1 %v8346_v11 }
 0xdef   :  { %8349 = vmatpush3.bf16.msra.mxu1 %v8346_v11 }
 0xdf0   :  { %7904 = vmatprep.subr.mxu1 %v10362_v7 }
 0xdf1   :  { %v7881_v20 = vpop.f32.mrb[54].mxu0 }
 0xdf2   :  { %v3134_v45 = vpop.f32.mrb[55].mxu0  ;;  %7891 = vmatmul.mubr.msk.f32.vlgmr.msra.gmra.mrb[32].mxu1 %vm448_vm0, %v9252_v62  ;;  %v7125_v62 = vld [vmem:[%s10334_s4 + $0x3] ss:$0 sm:$0xff] }
 0xdf3   :  { %7906 = vmatprep.mubr.msk.f32.mxu1 %vm8681_vm1, %v10362_v7  ;;  %v3135_v11 = vadd.f32 %v7125_v62, %v3134_v45  ;;  %v3140_v63 = vadd.f32 %v7881_v20, %v7125_v62 }
 0xdf9   :  { %v7903_v38 = vpop.f32.mrb[56].mxu0 }
 0xdfa   :  { %v3316_v30 = vadd.f32 %v7903_v38, %v7141_v37  ;;  %v3310_v46 = vpop.f32.mrb[57].mxu0 }
 0xdfb   :  { %v3311_v34 = vadd.f32 %v7141_v37, %v3310_v46 }
 0xdfd   :  { %7915 = vmatpush3.msra.mxu0 %v3311_v34 }
 0xec5   :  { %v7892_v59 = vpop.f32.mrb[32].mxu1 }
 0xec6   :  { %v3222_v22 = vpop.f32.mrb[33].mxu1  ;;  %v3228_v10 = vadd.f32 %v7892_v59, %v7133_v19 }
 0xec7   :  { %v3223_v12 = vadd.f32 %v7133_v19, %v3222_v22 }
 0xec9   :  { %7905 = vmatpush3.xpose.msk.msra.mxu1 %vm1292_vm8, %v3223_v12 }
 0xeca   :  { %7909 = vmatprep.subr.mxu1 %v10362_v7 }
 0xecc   :  { %7907 = vmatmul.mubr.msk.f32.vlgmr.msra.gmra.mrb[34].mxu1 %vm1292_vm8, %v3135_v11 }
 0xecd   :  { %7910 = vmatpush3.xpose.msk.msra.mxu1 %vm1292_vm8, %v3228_v10  ;;  %7911 = vmatprep.mubr.msk.f32.mxu1 %vm8681_vm1, %v10362_v7 }
 0xece   :  { %7919 = vmatprep.subr.mxu1 %v10362_v7 }
 0xed0   :  { %7912 = vmatmul.mubr.msk.f32.vlgmr.msra.gmra.mrb[36].mxu1 %vm1292_vm8, %v3140_v63 }
 0xed1   :  { %7920 = vmatpush3.msra.mxu1 %v3316_v30  ;;  %7921 = vmatprep.mubr.msk.f32.mxu1 %vm8681_vm1, %v10362_v7 }
 0xf9f   :  { %v3391_v45 = vpop.f32.mrb[34].mxu1 }
 0xfa0   :  { %v3471_v37 = vsub.f32 %v3391_v45, %v9320_v24  ;;  %v7908_v38 = vpop.f32.mrb[35].mxu1 }
 0xfa2   :  { %v3473_v46 = vsel %vm1292_vm8, %v3471_v37, -inf }
 0xfa3   :  { %3474 = vmax.xlane.f32.xlu0 %v3473_v46  ;;  %v3467_v34 = vpop.f32.mrb[36].mxu1 }
 0xfa4   :  { %v3472_v19 = vsub.f32 %v3467_v34, %v9323_v9  ;;  %v7913_v59 = vpop.f32.mrb[37].mxu1 }
 0xfa6   :  { %v3476_v20 = vsel %vm1292_vm8, %v3472_v19, -inf }
 0xfa7   :  { %3477 = vmax.xlane.f32.xlu1 %v3476_v20 }
0x1030   :  { %v3475_v22 = vpop.xlane.xlu0 %3474 }
0x1031   :  { %v3479_v62 = vsub.f32 %v3471_v37, %v3475_v22 }
0x1033   :  { %v3481_v30 = vmul.f32 1.442695, %v3479_v62  ;;  %v7150_v62 = vld [vmem:[%s10336_s5 + $0x18] sm:$0xff] }
0x1034   :  { %v3478_v12 = vpop.xlane.xlu1 %3477  ;;  %7924 = vmatprep.subr.mxu1 %v7150_v62 }
0x1035   :  { %8616 = vpow2.f32 %v3481_v30  ;;  %v3480_v11 = vsub.f32 %v3472_v19, %v3478_v12 }
0x1037   :  { %v3483_v10 = vmul.f32 1.442695, %v3480_v11 }
0x1039   :  { %8618 = vpow2.f32 %v3483_v10 }
0x103f   :  { %v8617_v63 = vpop.eup %8616 }
0x1040   :  { %v3485_v45 = vsel %vm1292_vm8, %v8617_v63, 0.0 }
0x1041   :  { %3486 = vadd.xlane.f32.xlu0 %v3485_v45 }
0x1043   :  { %v8619_v38 = vpop.eup %8618 }
0x1044   :  { %v3488_v46 = vsel %vm1292_vm8, %v8619_v38, 0.0 }
0x1045   :  { %3489 = vadd.xlane.f32.xlu1 %v3488_v46 }
0x10ce   :  { %v3487_v34 = vpop.xlane.xlu0 %3486 }
0x10cf   :  { %8620 = vrcp.f32 %v3487_v34 }
0x10d2   :  { %v3490_v59 = vpop.xlane.xlu1 %3489 }
0x10d3   :  { %8622 = vrcp.f32 %v3490_v59 }
0x10d9   :  { %v8621_v20 = vpop.eup %8620 }
0x10da   :  { %v9586_v37 = vmul.f32 %v8621_v20, %v8617_v63  ;;  %v9602_v63 = vld [vmem:[%s10337_s8 + $0x2] ss:$0 sm:$0xff] }
0x10dc   :  { %10369 = vst [vmem:[#allocation13_spill] sm:$0xff] %v9586_v37  ;;  %7917 = vmatmul.mubr.msk.f32.vlgmr.msra.gmra.mrb[58].mxu0 %vm1292_vm8, %v9586_v37 }
0x10dd   :  { %v8623_v19 = vpop.eup %8622 }
0x10de   :  { %v9590_v22 = vmul.f32 %v8623_v19, %v8619_v38 }
0x10e0   :  { %10370 = vst [vmem:[#allocation14_spill] sm:$0xff] %v9590_v22  ;;  %7922 = vmatmul.mubr.msk.f32.vlgmr.msra.gmra.mrb[38].mxu1 %vm1292_vm8, %v9590_v22 }
0x10e1   :  { %7925 = vmatpush3.msra.mxu1 %v7150_v62 }
0x11af   :  { %v3564_v30 = vpop.f32.mrb[58].mxu0 }
0x11b0   :  { %v7918_v12 = vpop.f32.mrb[59].mxu0  ;;  %7926 = vmatprep.mubr.msk.f32.mxu1 %vm1292_vm8, %v3564_v30 }
0x11b3   :  { %v3637_v11 = vpop.f32.mrb[38].mxu1 }
0x11b4   :  { %v7923_v10 = vpop.f32.mrb[39].mxu1  ;;  %7927 = vmatmul.mubr.msk.f32.vlgmr.msra.gmra.mrb[10].mxu1 %vm1292_vm8, %v3637_v11 }
0x1287   :  { %v7928_v45 = vpop.f32.mrb[10].mxu1 }
0x1288   :  { %v8534_v38 = vadd.f32 %v7928_v45, %v9602_v63  ;;  %v3715_v46 = vpop.f32.mrb[11].mxu1 }
0x1289   :  { %v8535_v34 = vadd.f32 %v9602_v63, %v3715_v46 }
0x128a   :  { %v9607_v59 = vadd.f32 %v8534_v38, %v9187_v52 }
0x128b   :  { %v9610_v20 = vadd.f32 %v8535_v34, %v9178_v4 }
0x128c   :  { %v3731_v19 = vsel %vm448_vm0, %v9607_v59, 0.0 }
0x128d   :  { %3732 = vadd.xlane.f32.xlu1 %v3731_v19  ;;  %v3728_v62 = vsel %vm448_vm0, %v9610_v20, 0.0  ;;  %v3758_v19 = vld [vmem:[%s10338_s6] sm:$0xff] }
0x128e   :  { %3729 = vadd.xlane.f32.xlu0 %v3728_v62  ;;  %v3759_v62 = vld [vmem:[%s10338_s6 + $0x8] sm:$0xff] }
0x131a   :  { %v3733_v30 = vpop.xlane.xlu1 %3732 }
0x131b   :  { %v3735_v12 = vmul.f32 0.03125, %v3733_v30  ;;  %v3730_v11 = vpop.xlane.xlu0 %3729  ;;  %v8358_v30 = vpack.c.bf16 %v3759_v62, %v3758_v19  ;;  %v3860_v19 = vld [vmem:[%s10339_s7 + $0x18] sm:$0xff] }
0x131c   :  { %v3734_v10 = vmul.f32 0.03125, %v3730_v11  ;;  %v3761_v11 = vld [vmem:[%s10338_s6 + $0x18] sm:$0xff] }
0x131d   :  { %v3737_v45 = vsub.f32 %v9607_v59, %v3735_v12  ;;  %8359 = vmatprep.subr.bf16.mxu0 %v8358_v30  ;;  %v3760_v12 = vld [vmem:[%s10338_s6 + $0x10] sm:$0xff] }
0x131e   :  { %v3736_v52 = vsub.f32 %v9610_v20, %v3734_v10  ;;  %8361 = vmatpush3.bf16.msra.mxu0 %v8358_v30  ;;  %v8362_v10 = vpack.c.bf16 %v3761_v11, %v3760_v12  ;;  %v3861_v30 = vld [vmem:[%s10339_s7 + $0x20] sm:$0xff]  ;;  %v3862_v12 = vld [vmem:[%s10339_s7 + $0x28] sm:$0xff] }
0x131f   :  { %v3739_v38 = vmul.f32 %v3737_v45, %v3737_v45  ;;  %v8374_v11 = vpack.c.bf16 %v3862_v12, %v3861_v30  ;;  %v3870_v12 = vld [vmem:[%s10339_s7 + $0x68] sm:$0xff] }
0x1320   :  { %v3738_v46 = vmul.f32 %v3736_v52, %v3736_v52  ;;  %8363 = vmatprep.subr.bf16.mxu0 %v8362_v10 }
0x1321   :  { %v3743_v4 = vsel %vm448_vm0, %v3739_v38, 0.0  ;;  %v3857_v38 = vld [vmem:[%s10339_s7] sm:$0xff] }
0x1322   :  { %3744 = vadd.xlane.f32.xlu1 %v3743_v4  ;;  %v3740_v34 = vsel %vm448_vm0, %v3738_v46, 0.0  ;;  %8365 = vmatpush3.bf16.msra.mxu0 %v8362_v10  ;;  %v3858_v46 = vld [vmem:[%s10339_s7 + $0x8] sm:$0xff]  ;;  %v3859_v4 = vld [vmem:[%s10339_s7 + $0x10] sm:$0xff] }
0x1323   :  { %3741 = vadd.xlane.f32.xlu0 %v3740_v34  ;;  %v8366_v34 = vpack.c.bf16 %v3858_v46, %v3857_v38  ;;  %v8370_v62 = vpack.c.bf16 %v3860_v19, %v3859_v4 }
0x1325   :  { %8367 = vmatprep.subr.bf16.mxu1 %v8366_v34 }
0x1326   :  { %8369 = vmatpush3.bf16.msra.mxu1 %v8366_v34 }
0x1327   :  { %8371 = vmatprep.subr.bf16.mxu1 %v8370_v62 }
0x132a   :  { %8373 = vmatpush3.bf16.msra.mxu1 %v8370_v62 }
0x132b   :  { %8375 = vmatprep.subr.bf16.mxu1 %v8374_v11 }
0x132e   :  { %8377 = vmatpush3.bf16.msra.mxu1 %v8374_v11 }
0x1339   :  { %3874 = vrot.lane.b32.xlu0 %v9602_v63, %s8684_s28 }
0x13af   :  { %v3745_v10 = vpop.xlane.xlu1 %3744 }
0x13b0   :  { %v3747_v38 = vmul.f32 0.03125, %v3745_v10  ;;  %v3742_v46 = vpop.xlane.xlu0 %3741  ;;  %v3871_v10 = vld [vmem:[%s10339_s7 + $0x70] sm:$0xff] }
0x13b1   :  { %v3746_v22 = vmul.f32 0.03125, %v3742_v46 }
0x13b2   :  { %v3749_v4 = vadd.f32 1e-12, %v3747_v38  ;;  %v3872_v38 = vld [vmem:[%s10339_s7 + $0x78] sm:$0xff] }
0x13b3   :  { %v3748_v19 = vadd.f32 1e-12, %v3746_v22  ;;  %v3863_v22 = vld [vmem:[%s10339_s7 + $0x30] sm:$0xff]  ;;  %v8394_v46 = vpack.c.bf16 %v3872_v38, %v3871_v10 }
0x13b4   :  { %8624 = vrsqrt.f32 %v3749_v4  ;;  %v7153_v4 = vld [vmem:[%s10337_s8] ss:$0 sm:$0xff] }
0x13b5   :  { %8626 = vrsqrt.f32 %v3748_v19 }
0x13be   :  { %v8625_v54 = vpop.eup %8624 }
0x13bf   :  { %v8627_v37 = vpop.eup %8626  ;;  %v3753_v56 = vmul.f32 %v8625_v54, %v3737_v45  ;;  %v3864_v54 = vld [vmem:[%s10339_s7 + $0x38] sm:$0xff] }
0x13c0   :  { %v3752_v6 = vmul.f32 %v8627_v37, %v3736_v52  ;;  %v8378_v37 = vpack.c.bf16 %v3864_v54, %v3863_v22  ;;  %v3869_v52 = vld [vmem:[%s10339_s7 + $0x60] sm:$0xff] }
0x13c1   :  { %v3755_v25 = vmul.f32 %v9229_v36, %v3753_v56  ;;  %v3867_v56 = vld [vmem:[%s10339_s7 + $0x50] sm:$0xff]  ;;  %v8390_v11 = vpack.c.bf16 %v3870_v12, %v3869_v52  ;;  %v3875_v52 = vpop.permute.xlu0 %3874 }
0x13c2   :  { %v3754_v34 = vmul.f32 %v9229_v36, %v3752_v6  ;;  %8379 = vmatprep.subr.bf16.mxu1 %v8378_v37  ;;  %v3865_v36 = vld [vmem:[%s10339_s7 + $0x40] sm:$0xff]  ;;  %v3868_v6 = vld [vmem:[%s10339_s7 + $0x58] sm:$0xff] }
0x13c3   :  { %v3757_v30 = vadd.f32 %v9234_v50, %v3755_v25  ;;  %8381 = vmatpush3.bf16.msra.mxu1 %v8378_v37  ;;  %v8386_v45 = vpack.c.bf16 %v3868_v6, %v3867_v56 }
0x13c4   :  { %v3756_v62 = vadd.f32 %v9234_v50, %v3754_v34  ;;  %v3866_v50 = vld [vmem:[%s10339_s7 + $0x48] sm:$0xff] }
0x13c5   :  { %v8382_v25 = vpack.c.bf16 %v3866_v50, %v3865_v36 }
0x13c6   :  { %7937 = vmatprep.mubr.msk.f32.mxu0 %vm448_vm0, %v3756_v62 }
0x13c7   :  { %7938 = vmatmul.mubr.msk.f32.vlgmr.msra.gmra.mrb[60].mxu0 %vm448_vm0, %v3757_v30  ;;  %8383 = vmatprep.subr.bf16.mxu1 %v8382_v25 }
0x13c8   :  { %8385 = vmatpush3.bf16.msra.mxu1 %v8382_v25 }
0x13c9   :  { %8387 = vmatprep.subr.bf16.mxu1 %v8386_v45 }
0x13cc   :  { %8389 = vmatpush3.bf16.msra.mxu1 %v8386_v45 }
0x13cd   :  { %8391 = vmatprep.subr.bf16.mxu1 %v8390_v11 }
0x13d0   :  { %8393 = vmatpush3.bf16.msra.mxu1 %v8390_v11 }
0x13d1   :  { %8395 = vmatprep.subr.bf16.mxu1 %v8394_v46 }
0x13d4   :  { %8397 = vmatpush3.bf16.msra.mxu1 %v8394_v46 }
0x13d5   :  { %8018 = vmatprep.subr.mxu1 %v10362_v7 }
0x149a   :  { %v7939_v19 = vpop.f32.mrb[60].mxu0 }
0x149b   :  { %v3844_v34 = vadd.f32 %v7939_v19, %v7153_v4  ;;  %v3838_v62 = vpop.f32.mrb[61].mxu0 }
0x149c   :  { %v3839_v30 = vadd.f32 %v7153_v4, %v3838_v62 }
0x149d   :  { %v3850_v22 = vmul.f32 0.70710677, %v3844_v34  ;;  %v3848_v6 = vmul.f32 0.5, %v3844_v34 }
0x149e   :  { %v3849_v54 = vmul.f32 0.70710677, %v3839_v30  ;;  %v3847_v25 = vmul.f32 0.5, %v3839_v30 }
0x149f   :  { %8628 = verf.f32 %v3850_v22 }
0x14a0   :  { %8630 = verf.f32 %v3849_v54 }
0x14a9   :  { %v8629_v37 = vpop.eup %8628 }
0x14aa   :  { %v8631_v36 = vpop.eup %8630  ;;  %v3854_v50 = vadd.f32 1.0, %v8629_v37 }
0x14ab   :  { %v3853_v56 = vadd.f32 1.0, %v8631_v36 }
0x14ac   :  { %v3856_v63 = vmul.f32 %v3854_v50, %v3848_v6  ;;  %v7157_v6 = vld [vmem:[%s10333_s3 + $0x188] sm:$0xff] }
0x14ad   :  { %v3855_v45 = vmul.f32 %v3853_v56, %v3847_v25  ;;  %v7156_v56 = vld [vmem:[%s10333_s3 + $0x180] sm:$0xff] }
0x14af   :  { %7972 = vmatprep.mubr.f32.mxu1 %v3855_v45  ;;  %v8398_v45 = vpack.c.bf16 %v7157_v6, %v7156_v56  ;;  %v8677_v6 = vld [vmem:[%s10332_s2 + $0x3] ss:$0 sm:$0xff] }
0x14b0   :  { %7973 = vmatmul.mubr.f32.vlgmr.msra.gmra.mrb[40].mxu1 %v3856_v63  ;;  %v7158_v63 = vld [vmem:[%s10333_s3 + $0x190] sm:$0xff] }
0x14b1   :  { %8020 = vmatprep.mubr.msk.f32.mxu1 %vm8681_vm1, %v10362_v7  ;;  %8399 = vmatprep.subr.bf16.mxu0 %v8398_v45 }
0x14b2   :  { %8401 = vmatpush3.bf16.msra.mxu0 %v8398_v45 }
0x1583   :  { %v7974_v12 = vpop.f32.mrb[40].mxu1 }
0x1584   :  { %v3943_v11 = vpop.f32.mrb[41].mxu1  ;;  %v3949_v10 = vadd.f32 %v7974_v12, %v3875_v52 }
0x1585   :  { %v3944_v38 = vadd.f32 %v3943_v11, %v3875_v52  ;;  %v7159_v52 = vld [vmem:[%s10333_s3 + $0x198] sm:$0xff]  ;;  %v7164_v11 = vld [vmem:[%s10333_s3 + $0x200] sm:$0xff] }
0x1586   :  { %v9698_v4 = vadd.f32 %v3949_v10, %v9607_v59  ;;  %v8402_v12 = vpack.c.bf16 %v7159_v52, %v7158_v63  ;;  %v7165_v10 = vld [vmem:[%s10333_s3 + $0x208] sm:$0xff]  ;;  %v7166_v52 = vld [vmem:[%s10333_s3 + $0x210] sm:$0xff] }
0x1587   :  { %v9695_v46 = vadd.f32 %v3944_v38, %v9610_v20  ;;  %v8406_v38 = vpack.c.bf16 %v7165_v10, %v7164_v11 }
0x1588   :  { %v3957_v34 = vsel %vm448_vm0, %v9698_v4, 0.0  ;;  %8403 = vmatprep.subr.bf16.mxu0 %v8402_v12 }
0x1589   :  { %v3954_v19 = vsel %vm448_vm0, %v9695_v46, 0.0  ;;  %8405 = vmatpush3.bf16.msra.mxu0 %v8402_v12 }
0x158a   :  { %3955 = vadd.xlane.f32.xlu1 %v3954_v19  ;;  %8407 = vmatprep.subr.bf16.mxu0 %v8406_v38 }
0x158e   :  { %3958 = vadd.xlane.f32.xlu1 %v3957_v34 }
0x1617   :  { %v3956_v62 = vpop.xlane.xlu1 %3955 }
0x1618   :  { %v3960_v30 = vmul.f32 0.03125, %v3956_v62 }
0x161a   :  { %v3962_v22 = vsub.f32 %v9695_v46, %v3960_v30 }
0x161b   :  { %v3959_v54 = vpop.xlane.xlu1 %3958 }
0x161c   :  { %v3961_v37 = vmul.f32 0.03125, %v3959_v54  ;;  %v3964_v36 = vmul.f32 %v3962_v22, %v3962_v22 }
0x161e   :  { %v3963_v20 = vsub.f32 %v9698_v4, %v3961_v37  ;;  %v3966_v59 = vsel %vm448_vm0, %v3964_v36, 0.0 }
0x161f   :  { %3967 = vadd.xlane.f32.xlu1 %v3966_v59 }
0x1620   :  { %v3965_v50 = vmul.f32 %v3963_v20, %v3963_v20 }
0x1622   :  { %v3969_v25 = vsel %vm448_vm0, %v3965_v50, 0.0  ;;  %v8676_v50 = vld [vmem:[%s10332_s2 + $0x2] ss:$0 sm:$0xff] }
0x1623   :  { %3970 = vadd.xlane.f32.xlu1 %v3969_v25 }
0x16ac   :  { %v3968_v19 = vpop.xlane.xlu1 %3967 }
0x16ad   :  { %v3972_v34 = vmul.f32 0.03125, %v3968_v19  ;;  %v7172_v19 = vld [vmem:[%s10333_s3 + $0x280] sm:$0xff] }
0x16af   :  { %v3974_v62 = vadd.f32 1e-12, %v3972_v34 }
0x16b0   :  { %v3971_v30 = vpop.xlane.xlu1 %3970 }
0x16b1   :  { %8632 = vrsqrt.f32 %v3974_v62  ;;  %v3973_v54 = vmul.f32 0.03125, %v3971_v30  ;;  %v7174_v62 = vld [vmem:[%s10333_s3 + $0x290] sm:$0xff]  ;;  %v7175_v30 = vld [vmem:[%s10333_s3 + $0x298] sm:$0xff] }
0x16b3   :  { %v3975_v37 = vadd.f32 1e-12, %v3973_v54  ;;  %v8418_v54 = vpack.c.bf16 %v7175_v30, %v7174_v62 }
0x16b5   :  { %8634 = vrsqrt.f32 %v3975_v37 }
0x16bb   :  { %v8633_v36 = vpop.eup %8632 }
0x16bc   :  { %v3978_v59 = vmul.f32 %v8633_v36, %v3962_v22  ;;  %v7167_v22 = vld [vmem:[%s10333_s3 + $0x218] sm:$0xff]  ;;  %v7169_v36 = vld [vmem:[%s10334_s4 + $0x10] ss:$0 sm:$0xff] }
0x16bd   :  { %v8410_v10 = vpack.c.bf16 %v7167_v22, %v7166_v52  ;;  %v7177_v52 = vld [vmem:[%s10334_s4 + $0x14] ss:$0 sm:$0xff] }
0x16be   :  { %v3980_v25 = vmul.f32 %v8676_v50, %v3978_v59 }
0x16bf   :  { %v8635_v56 = vpop.eup %8634 }
0x16c0   :  { %v9732_v45 = vadd.f32 %v8677_v6, %v3980_v25  ;;  %v3979_v63 = vmul.f32 %v8635_v56, %v3963_v20  ;;  %v7173_v20 = vld [vmem:[%s10333_s3 + $0x288] sm:$0xff] }
0x16c1   :  { %v8414_v34 = vpack.c.bf16 %v7173_v20, %v7172_v19  ;;  %v7161_v25 = vld [vmem:[%s10334_s4 + $0xc] ss:$0 sm:$0xff] }
0x16c2   :  { %v3981_v12 = vmul.f32 %v8676_v50, %v3979_v63  ;;  %7983 = vmatprep.mubr.msk.f32.mxu0 %vm448_vm0, %v9732_v45 }
0x16c4   :  { %v9742_v11 = vadd.f32 %v8677_v6, %v3981_v12 }
0x16c6   :  { %7984 = vmatmul.mubr.msk.f32.vlgmr.msra.gmra.mrb[62].mxu0 %vm448_vm0, %v9742_v11 }
0x16c7   :  { %8409 = vmatpush3.bf16.msra.mxu0 %v8406_v38  ;;  %7994 = vmatprep.mubr.msk.f32.mxu0 %vm448_vm0, %v9732_v45 }
0x16c8   :  { %8411 = vmatprep.subr.bf16.mxu0 %v8410_v10 }
0x16cb   :  { %8413 = vmatpush3.bf16.msra.mxu0 %v8410_v10 }
0x16cc   :  { %8415 = vmatprep.subr.bf16.mxu0 %v8414_v34 }
0x16ce   :  { %7995 = vmatmul.mubr.msk.f32.vlgmr.msra.gmra.mrb[64].mxu0 %vm448_vm0, %v9742_v11 }
0x16cf   :  { %8417 = vmatpush3.bf16.msra.mxu0 %v8414_v34  ;;  %8005 = vmatprep.mubr.msk.f32.mxu0 %vm448_vm0, %v9732_v45 }
0x16d0   :  { %8419 = vmatprep.subr.bf16.mxu0 %v8418_v54 }
0x16d3   :  { %8421 = vmatpush3.bf16.msra.mxu0 %v8418_v54 }
0x16d4   :  { %8008 = vmatprep.subr.mxu0 %v10362_v7 }
0x16d6   :  { %8006 = vmatmul.mubr.msk.f32.vlgmr.msra.gmra.mrb[66].mxu0 %vm448_vm0, %v9742_v11 }
0x16d7   :  { %8010 = vmatprep.mubr.msk.f32.mxu0 %vm8681_vm1, %v10362_v7 }
0x1799   :  { %v7985_v38 = vpop.f32.mrb[62].mxu0 }
0x179a   :  { %v4071_v37 = vpop.f32.mrb[63].mxu0  ;;  %v4077_v12 = vadd.f32 %v7985_v38, %v7161_v25 }
0x179b   :  { %v4072_v6 = vadd.f32 %v7161_v25, %v4071_v37 }
0x17a1   :  { %v7996_v59 = vpop.f32.mrb[64].mxu0 }
0x17a2   :  { %v4159_v50 = vpop.f32.mrb[65].mxu0  ;;  %v4165_v63 = vadd.f32 %v7996_v59, %v7169_v36 }
0x17a3   :  { %v4160_v56 = vadd.f32 %v7169_v36, %v4159_v50 }
0x17a5   :  { %8009 = vmatpush3.xpose.msk.msra.mxu0 %vm1292_vm8, %v4160_v56 }
0x17a6   :  { %8013 = vmatprep.subr.mxu0 %v10362_v7 }
0x17a8   :  { %8011 = vmatmul.mubr.msk.f32.vlgmr.msra.gmra.mrb[68].mxu0 %vm1292_vm8, %v4072_v6 }
0x17a9   :  { %v8007_v22 = vpop.f32.mrb[66].mxu0  ;;  %8014 = vmatpush3.xpose.msk.msra.mxu0 %vm1292_vm8, %v4165_v63  ;;  %8015 = vmatprep.mubr.msk.f32.mxu0 %vm8681_vm1, %v10362_v7 }
0x17aa   :  { %v4253_v10 = vadd.f32 %v8007_v22, %v7177_v52  ;;  %v4247_v19 = vpop.f32.mrb[67].mxu0  ;;  %8023 = vmatprep.subr.mxu0 %v10362_v7 }
0x17ab   :  { %v4248_v20 = vadd.f32 %v7177_v52, %v4247_v19 }
0x17ac   :  { %8016 = vmatmul.mubr.msk.f32.vlgmr.msra.gmra.mrb[70].mxu0 %vm1292_vm8, %v4077_v12 }
0x17ad   :  { %8019 = vmatpush3.msra.mxu1 %v4248_v20  ;;  %8024 = vmatpush3.msra.mxu0 %v4253_v10  ;;  %v7190_v20 = vld [vmem:[%s10333_s3 + $0x1a0] sm:$0xff] }
0x17ae   :  { %8025 = vmatprep.mubr.msk.f32.mxu0 %vm8681_vm1, %v10362_v7 }
0x187b   :  { %v4328_v34 = vpop.f32.mrb[68].mxu0 }
0x187c   :  { %v4408_v62 = vsub.f32 %v4328_v34, %v9320_v24  ;;  %v8012_v30 = vpop.f32.mrb[69].mxu0  ;;  %v7191_v34 = vld [vmem:[%s10333_s3 + $0x1a8] sm:$0xff] }
0x187e   :  { %v4410_v54 = vsel %vm1292_vm8, %v4408_v62, -inf }
0x187f   :  { %4411 = vmax.xlane.f32.xlu1 %v4410_v54  ;;  %v4404_v38 = vpop.f32.mrb[70].mxu0 }
0x1880   :  { %v4409_v37 = vsub.f32 %v4404_v38, %v9323_v9  ;;  %v8017_v36 = vpop.f32.mrb[71].mxu0 }
0x1881   :  { %v7192_v36 = vld [vmem:[%s10333_s3 + $0x1b0] sm:$0xff] }
0x1882   :  { %v4413_v59 = vsel %vm1292_vm8, %v4409_v37, -inf }
0x1883   :  { %4414 = vmax.xlane.f32.xlu1 %v4413_v59  ;;  %v7193_v59 = vld [vmem:[%s10333_s3 + $0x1b8] sm:$0xff] }
0x190c   :  { %v4412_v50 = vpop.xlane.xlu1 %4411 }
0x190d   :  { %v4416_v25 = vsub.f32 %v4408_v62, %v4412_v50  ;;  %v8422_v62 = vpack.c.bf16 %v7191_v34, %v7190_v20  ;;  %v7198_v20 = vld [vmem:[%s10333_s3 + $0x220] sm:$0xff]  ;;  %v7199_v34 = vld [vmem:[%s10333_s3 + $0x228] sm:$0xff] }
0x190f   :  { %v4418_v56 = vmul.f32 1.442695, %v4416_v25  ;;  %8423 = vmatprep.subr.bf16.mxu0 %v8422_v62 }
0x1910   :  { %v4415_v6 = vpop.xlane.xlu1 %4414 }
0x1911   :  { %8636 = vpow2.f32 %v4418_v56  ;;  %v4417_v63 = vsub.f32 %v4409_v37, %v4415_v6  ;;  %v8426_v56 = vpack.c.bf16 %v7193_v59, %v7192_v36  ;;  %v7206_v6 = vld [vmem:[%s10333_s3 + $0x2a0] sm:$0xff] }
0x1913   :  { %v4420_v52 = vmul.f32 1.442695, %v4417_v63  ;;  %v7207_v63 = vld [vmem:[%s10333_s3 + $0x2a8] sm:$0xff] }
0x1915   :  { %8638 = vpow2.f32 %v4420_v52  ;;  %v8438_v52 = vpack.c.bf16 %v7207_v63, %v7206_v6 }
0x191b   :  { %v8637_v22 = vpop.eup %8636 }
0x191c   :  { %v4422_v12 = vsel %vm1292_vm8, %v8637_v22, 0.0 }
0x191d   :  { %4423 = vadd.xlane.f32.xlu0 %v4422_v12  ;;  %v7209_v12 = vld [vmem:[%s10333_s3 + $0x2b8] sm:$0xff] }
0x191f   :  { %v8639_v10 = vpop.eup %8638 }
0x1920   :  { %v4425_v19 = vsel %vm1292_vm8, %v8639_v10, 0.0 }
0x1921   :  { %4426 = vadd.xlane.f32.xlu1 %v4425_v19  ;;  %v7186_v19 = vld [vmem:[%s10336_s5 + $0x20] sm:$0xff] }
0x1922   :  { %8028 = vmatprep.subr.mxu1 %v7186_v19 }
0x19aa   :  { %v4424_v30 = vpop.xlane.xlu0 %4423 }
0x19ab   :  { %8640 = vrcp.f32 %v4424_v30 }
0x19ae   :  { %v4427_v54 = vpop.xlane.xlu1 %4426 }
0x19af   :  { %8642 = vrcp.f32 %v4427_v54  ;;  %v7200_v54 = vld [vmem:[%s10333_s3 + $0x230] sm:$0xff] }
0x19b5   :  { %v8641_v38 = vpop.eup %8640 }
0x19b6   :  { %v9800_v37 = vmul.f32 %v8641_v38, %v8637_v22  ;;  %v7208_v22 = vld [vmem:[%s10333_s3 + $0x2b0] sm:$0xff]  ;;  %v7201_v38 = vld [vmem:[%s10333_s3 + $0x238] sm:$0xff] }
0x19b7   :  { %v8434_v59 = vpack.c.bf16 %v7201_v38, %v7200_v54 }
0x19b8   :  { %8021 = vmatmul.mubr.msk.f32.vlgmr.msra.gmra.mrb[42].mxu1 %vm1292_vm8, %v9800_v37 }
0x19b9   :  { %v8643_v50 = vpop.eup %8642  ;;  %8029 = vmatpush3.msra.mxu1 %v7186_v19 }
0x19ba   :  { %v9810_v25 = vmul.f32 %v8643_v50, %v8639_v10  ;;  %v8442_v10 = vpack.c.bf16 %v7209_v12, %v7208_v22 }
0x19bc   :  { %8026 = vmatmul.mubr.msk.f32.vlgmr.msra.gmra.mrb[72].mxu0 %vm1292_vm8, %v9810_v25 }
0x19bd   :  { %8425 = vmatpush3.bf16.msra.mxu0 %v8422_v62  ;;  %8041 = vmatprep.mubr.msk.f32.mxu0 %vm448_vm0, %v9732_v45  ;;  %v8430_v62 = vpack.c.bf16 %v7199_v34, %v7198_v20  ;;  %v7203_v20 = vld [vmem:[%s10334_s4 + $0x11] ss:$0 sm:$0xff] }
0x19be   :  { %8427 = vmatprep.subr.bf16.mxu0 %v8426_v56 }
0x19bf   :  { %8431 = vmatprep.subr.bf16.mxu1 %v8430_v62 }
0x19c1   :  { %8429 = vmatpush3.bf16.msra.mxu0 %v8426_v56 }
0x19c2   :  { %8439 = vmatprep.subr.bf16.mxu0 %v8438_v52 }
0x19c4   :  { %8042 = vmatmul.mubr.msk.f32.vlgmr.msra.gmra.mrb[74].mxu0 %vm448_vm0, %v9742_v11 }
0x19c5   :  { %8441 = vmatpush3.bf16.msra.mxu0 %v8438_v52  ;;  %8063 = vmatprep.mubr.msk.f32.mxu0 %vm448_vm0, %v9732_v45  ;;  %v7211_v52 = vld [vmem:[%s10334_s4 + $0x15] ss:$0 sm:$0xff] }
0x19c6   :  { %8443 = vmatprep.subr.bf16.mxu0 %v8442_v10 }
0x19c9   :  { %8445 = vmatpush3.bf16.msra.mxu0 %v8442_v10 }
0x19ca   :  { %8076 = vmatprep.subr.mxu0 %v10362_v7 }
0x19cc   :  { %8064 = vmatmul.mubr.msk.f32.vlgmr.msra.gmra.mrb[76].mxu0 %vm448_vm0, %v9742_v11 }
0x19cd   :  { %8078 = vmatprep.mubr.msk.f32.mxu0 %vm8681_vm1, %v10362_v7 }
0x1a8b   :  { %v4501_v30 = vpop.f32.mrb[42].mxu1 }
0x1a8c   :  { %v8022_v36 = vpop.f32.mrb[43].mxu1  ;;  %8030 = vmatprep.mubr.msk.f32.mxu1 %vm1292_vm8, %v4501_v30  ;;  %v7195_v30 = vld [vmem:[%s10334_s4 + $0xd] ss:$0 sm:$0xff] }
0x1a8f   :  { %v4574_v50 = vpop.f32.mrb[72].mxu0 }
0x1a90   :  { %v8027_v56 = vpop.f32.mrb[73].mxu0  ;;  %8031 = vmatmul.mubr.msk.f32.vlgmr.msra.gmra.mrb[44].mxu1 %vm1292_vm8, %v4574_v50 }
0x1a91   :  { %8433 = vmatpush3.bf16.msra.mxu1 %v8430_v62  ;;  %8052 = vmatprep.mubr.msk.f32.mxu1 %vm448_vm0, %v9732_v45 }
0x1a92   :  { %8435 = vmatprep.subr.bf16.mxu1 %v8434_v59 }
0x1a95   :  { %8437 = vmatpush3.bf16.msra.mxu1 %v8434_v59 }
0x1a96   :  { %8066 = vmatprep.subr.mxu1 %v10362_v7 }
0x1a97   :  { %v8043_v6 = vpop.f32.mrb[74].mxu0 }
0x1a98   :  { %v4746_v63 = vpop.f32.mrb[75].mxu0  ;;  %8053 = vmatmul.mubr.msk.f32.vlgmr.msra.gmra.mrb[46].mxu1 %vm448_vm0, %v9742_v11  ;;  %v4752_v59 = vadd.f32 %v8043_v6, %v7195_v30 }
0x1a99   :  { %8068 = vmatprep.mubr.msk.f32.mxu1 %vm8681_vm1, %v10362_v7  ;;  %v4747_v38 = vadd.f32 %v7195_v30, %v4746_v63 }
0x1a9f   :  { %v8065_v22 = vpop.f32.mrb[76].mxu0 }
0x1aa0   :  { %v4928_v12 = vadd.f32 %v8065_v22, %v7211_v52  ;;  %v4922_v10 = vpop.f32.mrb[77].mxu0 }
0x1aa1   :  { %v4923_v19 = vadd.f32 %v7211_v52, %v4922_v10 }
0x1aa3   :  { %8077 = vmatpush3.msra.mxu0 %v4923_v19 }
0x1b6b   :  { %v8054_v34 = vpop.f32.mrb[46].mxu1 }
0x1b6c   :  { %v4834_v62 = vpop.f32.mrb[47].mxu1  ;;  %v4840_v36 = vadd.f32 %v8054_v34, %v7203_v20 }
0x1b6d   :  { %v4835_v54 = vadd.f32 %v7203_v20, %v4834_v62 }
0x1b6f   :  { %8067 = vmatpush3.xpose.msk.msra.mxu1 %vm1292_vm8, %v4835_v54 }
0x1b70   :  { %8071 = vmatprep.subr.mxu1 %v10362_v7 }
0x1b72   :  { %8069 = vmatmul.mubr.msk.f32.vlgmr.msra.gmra.mrb[48].mxu1 %vm1292_vm8, %v4747_v38 }
0x1b73   :  { %8072 = vmatpush3.xpose.msk.msra.mxu1 %vm1292_vm8, %v4840_v36  ;;  %8073 = vmatprep.mubr.msk.f32.mxu1 %vm8681_vm1, %v10362_v7 }
0x1b74   :  { %8081 = vmatprep.subr.mxu1 %v10362_v7 }
0x1b76   :  { %8074 = vmatmul.mubr.msk.f32.vlgmr.msra.gmra.mrb[50].mxu1 %vm1292_vm8, %v4752_v59 }
0x1b77   :  { %8082 = vmatpush3.msra.mxu1 %v4928_v12  ;;  %8083 = vmatprep.mubr.msk.f32.mxu1 %vm8681_vm1, %v10362_v7 }
0x1c45   :  { %v5003_v50 = vpop.f32.mrb[48].mxu1 }
0x1c46   :  { %v5083_v56 = vsub.f32 %v5003_v50, %v9320_v24  ;;  %v8070_v63 = vpop.f32.mrb[49].mxu1 }
0x1c47   :  { %v7223_v63 = vld [vmem:[%s10333_s3 + $0x1c0] sm:$0xff] }
0x1c48   :  { %v5085_v52 = vsel %vm1292_vm8, %v5083_v56, -inf }
0x1c49   :  { %5086 = vmax.xlane.f32.xlu1 %v5085_v52  ;;  %v5079_v22 = vpop.f32.mrb[50].mxu1 }
0x1c4a   :  { %v5084_v10 = vsub.f32 %v5079_v22, %v9323_v9  ;;  %v8075_v19 = vpop.f32.mrb[51].mxu1 }
0x1c4b   :  { %v7225_v19 = vld [vmem:[%s10333_s3 + $0x1d0] sm:$0xff] }
0x1c4c   :  { %v5088_v6 = vsel %vm1292_vm8, %v5084_v10, -inf }
0x1c4d   :  { %5089 = vmax.xlane.f32.xlu1 %v5088_v6  ;;  %v7226_v6 = vld [vmem:[%s10333_s3 + $0x1d8] sm:$0xff] }
0x1cd6   :  { %v5087_v20 = vpop.xlane.xlu1 %5086 }
0x1cd7   :  { %v5091_v34 = vsub.f32 %v5083_v56, %v5087_v20  ;;  %v7224_v56 = vld [vmem:[%s10333_s3 + $0x1c8] sm:$0xff] }
0x1cd8   :  { %v8446_v52 = vpack.c.bf16 %v7224_v56, %v7223_v63  ;;  %v7242_v63 = vld [vmem:[%s10333_s3 + $0x2d8] sm:$0xff] }
0x1cd9   :  { %v5093_v12 = vmul.f32 1.442695, %v5091_v34 }
0x1cda   :  { %v5090_v62 = vpop.xlane.xlu1 %5089  ;;  %8447 = vmatprep.subr.bf16.mxu0 %v8446_v52 }
0x1cdb   :  { %8644 = vpow2.f32 %v5093_v12  ;;  %v5092_v30 = vsub.f32 %v5084_v10, %v5090_v62  ;;  %v8450_v12 = vpack.c.bf16 %v7226_v6, %v7225_v19  ;;  %v7239_v62 = vld [vmem:[%s10333_s3 + $0x2c0] sm:$0xff]  ;;  %v7233_v6 = vld [vmem:[%s10333_s3 + $0x250] sm:$0xff] }
0x1cdd   :  { %v5095_v54 = vmul.f32 1.442695, %v5092_v30  ;;  %v7240_v30 = vld [vmem:[%s10333_s3 + $0x2c8] sm:$0xff] }
0x1cdf   :  { %8646 = vpow2.f32 %v5095_v54 }
0x1ce5   :  { %v8645_v38 = vpop.eup %8644 }
0x1ce6   :  { %v5097_v36 = vsel %vm1292_vm8, %v8645_v38, 0.0 }
0x1ce7   :  { %5098 = vadd.xlane.f32.xlu1 %v5097_v36 }
0x1ce9   :  { %v8647_v59 = vpop.eup %8646 }
0x1cea   :  { %v5100_v50 = vsel %vm1292_vm8, %v8647_v59, 0.0 }
0x1ceb   :  { %5101 = vadd.xlane.f32.xlu1 %v5100_v50  ;;  %v7241_v50 = vld [vmem:[%s10333_s3 + $0x2d0] sm:$0xff] }
0x1cec   :  { %v8466_v56 = vpack.c.bf16 %v7242_v63, %v7241_v50 }
0x1d74   :  { %v5099_v22 = vpop.xlane.xlu1 %5098 }
0x1d75   :  { %8648 = vrcp.f32 %v5099_v22  ;;  %v7232_v22 = vld [vmem:[%s10333_s3 + $0x248] sm:$0xff] }
0x1d78   :  { %v5102_v10 = vpop.xlane.xlu1 %5101 }
0x1d79   :  { %8650 = vrcp.f32 %v5102_v10 }
0x1d7f   :  { %v8649_v20 = vpop.eup %8648 }
0x1d80   :  { %v9898_v34 = vmul.f32 %v8649_v20, %v8645_v38  ;;  %v8462_v38 = vpack.c.bf16 %v7240_v30, %v7239_v62  ;;  %v7234_v20 = vld [vmem:[%s10333_s3 + $0x258] sm:$0xff] }
0x1d81   :  { %v8458_v62 = vpack.c.bf16 %v7234_v20, %v7233_v6  ;;  %v7244_v6 = vld [vmem:[%s10334_s4 + $0x16] ss:$0 sm:$0xff] }
0x1d82   :  { %8079 = vmatmul.mubr.msk.f32.vlgmr.msra.gmra.mrb[78].mxu0 %vm1292_vm8, %v9898_v34 }
0x1d83   :  { %v8651_v54 = vpop.eup %8650  ;;  %8449 = vmatpush3.bf16.msra.mxu0 %v8446_v52  ;;  %8099 = vmatprep.mubr.msk.f32.mxu0 %vm448_vm0, %v9732_v45  ;;  %v7231_v52 = vld [vmem:[%s10333_s3 + $0x240] sm:$0xff] }
0x1d84   :  { %v9910_v36 = vmul.f32 %v8651_v54, %v8647_v59  ;;  %8451 = vmatprep.subr.bf16.mxu0 %v8450_v12  ;;  %v7220_v59 = vld [vmem:[%s10336_s5 + $0x28] sm:$0xff]  ;;  %v8454_v10 = vpack.c.bf16 %v7232_v22, %v7231_v52 }
0x1d85   :  { %8086 = vmatprep.subr.mxu1 %v7220_v59  ;;  %v7228_v22 = vld [vmem:[%s10334_s4 + $0xe] ss:$0 sm:$0xff] }
0x1d86   :  { %8084 = vmatmul.mubr.msk.f32.vlgmr.msra.gmra.mrb[52].mxu1 %vm1292_vm8, %v9910_v36 }
0x1d87   :  { %8453 = vmatpush3.bf16.msra.mxu0 %v8450_v12  ;;  %8087 = vmatpush3.msra.mxu1 %v7220_v59  ;;  %v7236_v59 = vld [vmem:[%s10334_s4 + $0x12] ss:$0 sm:$0xff] }
0x1d88   :  { %8463 = vmatprep.subr.bf16.mxu0 %v8462_v38  ;;  %8455 = vmatprep.subr.bf16.mxu1 %v8454_v10 }
0x1d8a   :  { %8100 = vmatmul.mubr.msk.f32.vlgmr.msra.gmra.mrb[80].mxu0 %vm448_vm0, %v9742_v11 }
0x1d8b   :  { %8465 = vmatpush3.bf16.msra.mxu0 %v8462_v38  ;;  %8121 = vmatprep.mubr.msk.f32.mxu0 %vm448_vm0, %v9732_v45 }
0x1d8c   :  { %8467 = vmatprep.subr.bf16.mxu0 %v8466_v56 }
0x1d8f   :  { %8469 = vmatpush3.bf16.msra.mxu0 %v8466_v56 }
0x1d90   :  { %8129 = vmatprep.subr.mxu0 %v10362_v7 }
0x1d92   :  { %8122 = vmatmul.mubr.msk.f32.vlgmr.msra.gmra.mrb[82].mxu0 %vm448_vm0, %v9742_v11 }
0x1d93   :  { %8131 = vmatprep.mubr.msk.f32.mxu0 %vm8681_vm1, %v10362_v7 }
0x1e55   :  { %v5176_v19 = vpop.f32.mrb[78].mxu0 }
0x1e56   :  { %v8080_v12 = vpop.f32.mrb[79].mxu0  ;;  %8088 = vmatprep.mubr.msk.f32.mxu1 %vm1292_vm8, %v5176_v19 }
0x1e59   :  { %v5249_v30 = vpop.f32.mrb[52].mxu1 }
0x1e5a   :  { %v8085_v54 = vpop.f32.mrb[53].mxu1  ;;  %8089 = vmatmul.mubr.msk.f32.vlgmr.msra.gmra.mrb[44].mxu1 %vm1292_vm8, %v5249_v30 }
0x1e5b   :  { %8457 = vmatpush3.bf16.msra.mxu1 %v8454_v10  ;;  %8110 = vmatprep.mubr.msk.f32.mxu1 %vm448_vm0, %v9732_v45 }
0x1e5c   :  { %8459 = vmatprep.subr.bf16.mxu1 %v8458_v62 }
0x1e5d   :  { %v8101_v38 = vpop.f32.mrb[80].mxu0 }
0x1e5e   :  { %v5417_v50 = vpop.f32.mrb[81].mxu0  ;;  %v5423_v12 = vadd.f32 %v8101_v38, %v7228_v22 }
0x1e5f   :  { %8461 = vmatpush3.bf16.msra.mxu1 %v8458_v62  ;;  %v5418_v62 = vadd.f32 %v7228_v22, %v5417_v50 }
0x1e60   :  { %8124 = vmatprep.subr.mxu1 %v10362_v7 }
0x1e62   :  { %8111 = vmatmul.mubr.msk.f32.vlgmr.msra.gmra.mrb[54].mxu1 %vm448_vm0, %v9742_v11 }
0x1e63   :  { %8126 = vmatprep.mubr.msk.f32.mxu1 %vm8681_vm1, %v10362_v7 }
0x1e65   :  { %v8123_v63 = vpop.f32.mrb[82].mxu0 }
0x1e66   :  { %v5593_v56 = vpop.f32.mrb[83].mxu0  ;;  %v5599_v30 = vadd.f32 %v8123_v63, %v7244_v6 }
0x1e67   :  { %v5594_v54 = vadd.f32 %v7244_v6, %v5593_v56 }
0x1f35   :  { %v8112_v52 = vpop.f32.mrb[54].mxu1 }
0x1f36   :  { %v5511_v10 = vadd.f32 %v8112_v52, %v7236_v59  ;;  %v5505_v19 = vpop.f32.mrb[55].mxu1 }
0x1f37   :  { %v5506_v20 = vadd.f32 %v7236_v59, %v5505_v19 }
0x1f38   :  { %8130 = vmatpush3.xpose.msk.msra.mxu0 %vm1292_vm8, %v5511_v10 }
0x1f39   :  { %8125 = vmatpush3.xpose.msk.msra.mxu1 %vm1292_vm8, %v5506_v20  ;;  %8139 = vmatprep.subr.mxu0 %v10362_v7 }
0x1f3a   :  { %8134 = vmatprep.subr.mxu1 %v10362_v7 }
0x1f3b   :  { %8132 = vmatmul.mubr.msk.f32.vlgmr.msra.gmra.mrb[84].mxu0 %vm1292_vm8, %v5423_v12 }
0x1f3c   :  { %8127 = vmatmul.mubr.msk.f32.vlgmr.msra.gmra.mrb[56].mxu1 %vm1292_vm8, %v5418_v62  ;;  %8140 = vmatpush3.msra.mxu0 %v5599_v30 }
0x1f3d   :  { %8135 = vmatpush3.msra.mxu1 %v5594_v54  ;;  %8136 = vmatprep.mubr.msk.f32.mxu1 %vm8681_vm1, %v10362_v7 }
0x1f3e   :  { %8141 = vmatprep.mubr.msk.f32.mxu0 %vm8681_vm1, %v10362_v7 }
0x200e   :  { %v5750_v38 = vpop.f32.mrb[84].mxu0 }
0x200f   :  { %v5674_v59 = vpop.f32.mrb[56].mxu1  ;;  %v8133_v52 = vpop.f32.mrb[85].mxu0  ;;  %v5755_v56 = vsub.f32 %v5750_v38, %v9323_v9 }
0x2010   :  { %v5754_v50 = vsub.f32 %v5674_v59, %v9320_v24  ;;  %v8128_v63 = vpop.f32.mrb[57].mxu1 }
0x2011   :  { %v5759_v10 = vsel %vm1292_vm8, %v5755_v56, -inf  ;;  %v7256_v63 = vld [vmem:[%s10333_s3 + $0x1e0] sm:$0xff] }
0x2012   :  { %v5756_v22 = vsel %vm1292_vm8, %v5754_v50, -inf }
0x2013   :  { %5757 = vmax.xlane.f32.xlu1 %v5756_v22 }
0x2017   :  { %5760 = vmax.xlane.f32.xlu1 %v5759_v10 }
0x20a0   :  { %v5758_v19 = vpop.xlane.xlu1 %5757 }
0x20a1   :  { %v5762_v6 = vsub.f32 %v5754_v50, %v5758_v19  ;;  %v7257_v50 = vld [vmem:[%s10333_s3 + $0x1e8] sm:$0xff] }
0x20a2   :  { %v8470_v22 = vpack.c.bf16 %v7257_v50, %v7256_v63  ;;  %v7275_v50 = vld [vmem:[%s10333_s3 + $0x2f8] sm:$0xff] }
0x20a3   :  { %v5764_v20 = vmul.f32 1.442695, %v5762_v6 }
0x20a4   :  { %v5761_v12 = vpop.xlane.xlu1 %5760  ;;  %8471 = vmatprep.subr.bf16.mxu0 %v8470_v22 }
0x20a5   :  { %8652 = vpow2.f32 %v5764_v20  ;;  %v5763_v62 = vsub.f32 %v5755_v56, %v5761_v12  ;;  %v7258_v20 = vld [vmem:[%s10333_s3 + $0x1f0] sm:$0xff]  ;;  %v7259_v12 = vld [vmem:[%s10333_s3 + $0x1f8] sm:$0xff] }
0x20a7   :  { %v5766_v30 = vmul.f32 1.442695, %v5763_v62 }
0x20a9   :  { %8654 = vpow2.f32 %v5766_v30 }
0x20af   :  { %v8653_v54 = vpop.eup %8652 }
0x20b0   :  { %v5768_v59 = vsel %vm1292_vm8, %v8653_v54, 0.0 }
0x20b1   :  { %5769 = vadd.xlane.f32.xlu1 %v5768_v59  ;;  %v8474_v59 = vpack.c.bf16 %v7259_v12, %v7258_v20 }
0x20b3   :  { %v8655_v52 = vpop.eup %8654 }
0x20b4   :  { %v5771_v38 = vsel %vm1292_vm8, %v8655_v52, 0.0 }
0x20b5   :  { %5772 = vadd.xlane.f32.xlu0 %v5771_v38  ;;  %v7273_v38 = vld [vmem:[%s10333_s3 + $0x2e8] sm:$0xff] }
0x213e   :  { %v5770_v56 = vpop.xlane.xlu1 %5769 }
0x213f   :  { %8656 = vrcp.f32 %v5770_v56 }
0x2142   :  { %v5773_v10 = vpop.xlane.xlu0 %5772 }
0x2143   :  { %8658 = vrcp.f32 %v5773_v10  ;;  %v7264_v10 = vld [vmem:[%s10333_s3 + $0x260] sm:$0xff] }
0x2149   :  { %v8657_v19 = vpop.eup %8656 }
0x214a   :  { %v9984_v6 = vmul.f32 %v8657_v19, %v8653_v54  ;;  %v7272_v54 = vld [vmem:[%s10333_s3 + $0x2e0] sm:$0xff]  ;;  %v7265_v19 = vld [vmem:[%s10333_s3 + $0x268] sm:$0xff] }
0x214b   :  { %v8486_v63 = vpack.c.bf16 %v7273_v38, %v7272_v54  ;;  %v8478_v20 = vpack.c.bf16 %v7265_v19, %v7264_v10 }
0x214c   :  { %8137 = vmatmul.mubr.msk.f32.vlgmr.msra.gmra.mrb[58].mxu1 %vm1292_vm8, %v9984_v6 }
0x214d   :  { %v8659_v62 = vpop.eup %8658 }
0x214e   :  { %v9994_v30 = vmul.f32 %v8659_v62, %v8655_v52  ;;  %v7274_v52 = vld [vmem:[%s10333_s3 + $0x2f0] sm:$0xff] }
0x214f   :  { %v8490_v56 = vpack.c.bf16 %v7275_v50, %v7274_v52  ;;  %v7266_v62 = vld [vmem:[%s10333_s3 + $0x270] sm:$0xff] }
0x2150   :  { %8142 = vmatmul.mubr.msk.f32.vlgmr.msra.gmra.mrb[86].mxu0 %vm1292_vm8, %v9994_v30 }
0x2151   :  { %8473 = vmatpush3.bf16.msra.mxu0 %v8470_v22  ;;  %8157 = vmatprep.mubr.msk.f32.mxu0 %vm448_vm0, %v9732_v45  ;;  %v7253_v22 = vld [vmem:[%s10336_s5 + $0x30] sm:$0xff] }
0x2152   :  { %8475 = vmatprep.subr.bf16.mxu0 %v8474_v59  ;;  %8144 = vmatprep.subr.mxu1 %v7253_v22 }
0x2153   :  { %8145 = vmatpush3.msra.mxu1 %v7253_v22  ;;  %v7277_v22 = vld [vmem:[%s10334_s4 + $0x17] ss:$0 sm:$0xff] }
0x2154   :  { %8479 = vmatprep.subr.bf16.mxu1 %v8478_v20 }
0x2155   :  { %8477 = vmatpush3.bf16.msra.mxu0 %v8474_v59  ;;  %v7267_v59 = vld [vmem:[%s10333_s3 + $0x278] sm:$0xff] }
0x2156   :  { %8487 = vmatprep.subr.bf16.mxu0 %v8486_v63  ;;  %v8482_v38 = vpack.c.bf16 %v7267_v59, %v7266_v62 }
0x2158   :  { %8158 = vmatmul.mubr.msk.f32.vlgmr.msra.gmra.mrb[88].mxu0 %vm448_vm0, %v9742_v11 }
0x2159   :  { %8489 = vmatpush3.bf16.msra.mxu0 %v8486_v63  ;;  %8179 = vmatprep.mubr.msk.f32.mxu0 %vm448_vm0, %v9732_v45 }
0x215a   :  { %8491 = vmatprep.subr.bf16.mxu0 %v8490_v56 }
0x215d   :  { %8493 = vmatpush3.bf16.msra.mxu0 %v8490_v56 }
0x215e   :  { %8192 = vmatprep.subr.mxu0 %v10362_v7 }
0x2160   :  { %8180 = vmatmul.mubr.msk.f32.vlgmr.msra.gmra.mrb[90].mxu0 %vm448_vm0, %v9742_v11 }
0x2161   :  { %8194 = vmatprep.mubr.msk.f32.mxu0 %vm8681_vm1, %v10362_v7 }
0x221f   :  { %v5847_v12 = vpop.f32.mrb[58].mxu1 }
0x2220   :  { %v8138_v54 = vpop.f32.mrb[59].mxu1  ;;  %8146 = vmatprep.mubr.msk.f32.mxu1 %vm1292_vm8, %v5847_v12  ;;  %v7269_v12 = vld [vmem:[%s10334_s4 + $0x13] ss:$0 sm:$0xff] }
0x2223   :  { %v5920_v63 = vpop.f32.mrb[86].mxu0 }
0x2224   :  { %v8143_v52 = vpop.f32.mrb[87].mxu0  ;;  %8147 = vmatmul.mubr.msk.f32.vlgmr.msra.gmra.mrb[44].mxu1 %vm1292_vm8, %v5920_v63 }
0x2225   :  { %8481 = vmatpush3.bf16.msra.mxu1 %v8478_v20  ;;  %8168 = vmatprep.mubr.msk.f32.mxu1 %vm448_vm0, %v9732_v45 }
0x2226   :  { %8483 = vmatprep.subr.bf16.mxu1 %v8482_v38 }
0x2229   :  { %8485 = vmatpush3.bf16.msra.mxu1 %v8482_v38 }
0x222a   :  { %8182 = vmatprep.subr.mxu1 %v10362_v7 }
0x222b   :  { %v8159_v50 = vpop.f32.mrb[88].mxu0 }
0x222c   :  { %v6088_v56 = vpop.f32.mrb[89].mxu0  ;;  %8169 = vmatmul.mubr.msk.f32.vlgmr.msra.gmra.mrb[60].mxu1 %vm448_vm0, %v9742_v11  ;;  %v7261_v11 = vld [vmem:[%s10334_s4 + $0xf] ss:$0 sm:$0xff] }
0x222d   :  { %8184 = vmatprep.mubr.msk.f32.mxu1 %vm8681_vm1, %v10362_v7  ;;  %v6089_v38 = vadd.f32 %v7261_v11, %v6088_v56  ;;  %v6094_v52 = vadd.f32 %v8159_v50, %v7261_v11 }
0x2233   :  { %v8181_v10 = vpop.f32.mrb[90].mxu0 }
0x2234   :  { %v6270_v19 = vadd.f32 %v8181_v10, %v7277_v22  ;;  %v6264_v20 = vpop.f32.mrb[91].mxu0 }
0x2235   :  { %v6265_v45 = vadd.f32 %v7277_v22, %v6264_v20 }
0x2237   :  { %8193 = vmatpush3.msra.mxu0 %v6265_v45 }
0x22ff   :  { %v8170_v62 = vpop.f32.mrb[60].mxu1 }
0x2300   :  { %v6176_v59 = vpop.f32.mrb[61].mxu1  ;;  %v6182_v63 = vadd.f32 %v8170_v62, %v7269_v12 }
0x2301   :  { %v6177_v54 = vadd.f32 %v7269_v12, %v6176_v59 }
0x2303   :  { %8183 = vmatpush3.xpose.msk.msra.mxu1 %vm1292_vm8, %v6177_v54 }
0x2304   :  { %8187 = vmatprep.subr.mxu1 %v10362_v7 }
0x2306   :  { %8185 = vmatmul.mubr.msk.f32.vlgmr.msra.gmra.mrb[62].mxu1 %vm1292_vm8, %v6089_v38 }
0x2307   :  { %8188 = vmatpush3.xpose.msk.msra.mxu1 %vm1292_vm8, %v6182_v63  ;;  %8189 = vmatprep.mubr.msk.f32.mxu1 %vm8681_vm1, %v10362_v7 }
0x2308   :  { %8197 = vmatprep.subr.mxu1 %v10362_v7 }
0x230a   :  { %8190 = vmatmul.mubr.msk.f32.vlgmr.msra.gmra.mrb[64].mxu1 %vm1292_vm8, %v6094_v52 }
0x230b   :  { %8198 = vmatpush3.msra.mxu1 %v6270_v19  ;;  %8199 = vmatprep.mubr.msk.f32.mxu1 %vm8681_vm1, %v10362_v7  ;;  %vm621_vm1 = vcmask 589312  }
0x23d9   :  { %v6345_v56 = vpop.f32.mrb[62].mxu1 }
0x23da   :  { %v6425_v22 = vsub.f32 %v6345_v56, %v9320_v24  ;;  %v8186_v10 = vpop.f32.mrb[63].mxu1 }
0x23dc   :  { %v6427_v20 = vsel %vm1292_vm8, %v6425_v22, -inf }
0x23dd   :  { %6428 = vmax.xlane.f32.xlu1 %v6427_v20  ;;  %v6421_v45 = vpop.f32.mrb[64].mxu1 }
0x23de   :  { %v6426_v12 = vsub.f32 %v6421_v45, %v9323_v9  ;;  %v8191_v62 = vpop.f32.mrb[65].mxu1 }
0x23df   :  { %v7286_v62 = vld [vmem:[%s10336_s5 + $0x38] sm:$0xff] }
0x23e0   :  { %v6430_v50 = vsel %vm1292_vm8, %v6426_v12, -inf  ;;  %8202 = vmatprep.subr.mxu1 %v7286_v62 }
0x23e1   :  { %6431 = vmax.xlane.f32.xlu0 %v6430_v50 }
0x246a   :  { %v6429_v59 = vpop.xlane.xlu1 %6428 }
0x246b   :  { %v6433_v11 = vsub.f32 %v6425_v22, %v6429_v59 }
0x246d   :  { %v6435_v19 = vmul.f32 1.442695, %v6433_v11 }
0x246e   :  { %v6432_v54 = vpop.xlane.xlu0 %6431 }
0x246f   :  { %8660 = vpow2.f32 %v6435_v19  ;;  %v6434_v7 = vsub.f32 %v6426_v12, %v6432_v54  ;;  %v7189_v54 = vld [vmem:[%s10337_s8 + $0x3] ss:$0 sm:$0xff] }
0x2471   :  { %v6437_v38 = vmul.f32 1.442695, %v6434_v7 }
0x2473   :  { %8662 = vpow2.f32 %v6437_v38 }
0x2479   :  { %v8661_v24 = vpop.eup %8660 }
0x247a   :  { %v6439_v63 = vsel %vm1292_vm8, %v8661_v24, 0.0 }
0x247b   :  { %6440 = vadd.xlane.f32.xlu1 %v6439_v63 }
0x247d   :  { %v8663_v52 = vpop.eup %8662 }
0x247e   :  { %v6442_v56 = vsel %vm1292_vm8, %v8663_v52, 0.0 }
0x247f   :  { %6443 = vadd.xlane.f32.xlu0 %v6442_v56 }
0x2508   :  { %v6441_v9 = vpop.xlane.xlu1 %6440 }
0x2509   :  { %8664 = vrcp.f32 %v6441_v9 }
0x250c   :  { %v6444_v10 = vpop.xlane.xlu0 %6443 }
0x250d   :  { %8666 = vrcp.f32 %v6444_v10 }
0x2513   :  { %v8665_v20 = vpop.eup %8664 }
0x2514   :  { %v10070_v22 = vmul.f32 %v8665_v20, %v8661_v24 }
0x2516   :  { %8195 = vmatmul.mubr.msk.f32.vlgmr.msra.gmra.mrb[92].mxu0 %vm1292_vm8, %v10070_v22 }
0x2517   :  { %v8667_v45 = vpop.eup %8666 }
0x2518   :  { %v10074_v12 = vmul.f32 %v8667_v45, %v8663_v52 }
0x251a   :  { %8200 = vmatmul.mubr.msk.f32.vlgmr.msra.gmra.mrb[66].mxu1 %vm1292_vm8, %v10074_v12 }
0x251b   :  { %8203 = vmatpush3.msra.mxu1 %v7286_v62 }
0x25e9   :  { %v6518_v50 = vpop.f32.mrb[92].mxu0 }
0x25ea   :  { %v8196_v59 = vpop.f32.mrb[93].mxu0  ;;  %8204 = vmatprep.mubr.msk.f32.mxu1 %vm1292_vm8, %v6518_v50 }
0x25ed   :  { %v6591_v11 = vpop.f32.mrb[66].mxu1 }
0x25ee   :  { %v8201_v19 = vpop.f32.mrb[67].mxu1  ;;  %8205 = vmatmul.mubr.msk.f32.vlgmr.msra.gmra.mrb[44].mxu1 %vm1292_vm8, %v6591_v11  ;;  %vm6971_vm8 = vcmask 392192  }
0x26c1   :  { %v8206_v7 = vpop.f32.mrb[44].mxu1 }
0x26c2   :  { %v8536_v38 = vadd.f32 %v8206_v7, %v7189_v54  ;;  %v6669_v24 = vpop.f32.mrb[45].mxu1 }
0x26c3   :  { %v8537_v63 = vadd.f32 %v7189_v54, %v6669_v24 }
0x26c4   :  { %v10087_v52 = vadd.f32 %v8536_v38, %v9698_v4 }
0x26c5   :  { %v10090_v56 = vadd.f32 %v8537_v63, %v9695_v46  ;;  %v10371_v63 = vcombine.low %v8935_v28, %v8939_v1  ;;  %v10375_v1 = vcombine.low %v8955_v39, %v8959_v41  ;;  %v10377_v39 = vcombine.low %v9079_v57, %v9086_v16 }
0x26c6   :  { %v6685_v9 = vsel %vm448_vm0, %v10087_v52, 0.0  ;;  %v10379_v16 = vcombine.low %v9091_v21, %v9098_v55  ;;  %v10383_v55 = vcombine.low %v9115_v23, %v9121_v2  ;;  %v10387_v23 = vcombine.low %v9022_v40, %v9026_v43  ;;  %v10394_v43 = vld [vmem:[#allocation4_spill] sm:$0xff] }
0x26c7   :  { %6686 = vadd.xlane.f32.xlu0 %v6685_v9  ;;  %v6682_v10 = vsel %vm448_vm0, %v10090_v56, 0.0  ;;  %v449_v9 = vsel %vm448_vm0, %v10371_v63, 0.0  ;;  %v492_v41 = vsel %vm448_vm0, %v10377_v39, 0.0  ;;  %v10382_v63 = vcombine.low %v9000_v15, %v9004_v17 }
0x26c8   :  { %6683 = vadd.xlane.f32.xlu1 %v6682_v10  ;;  %v10372_v10 = vcombine.low %v8945_v32, %v8949_v33  ;;  %v455_v32 = vsel %vm448_vm0, %v10375_v1, 0.0  ;;  %v10376_v33 = vcombine.low %v8967_v49, %v8971_v51  ;;  %v7291_v49 = vld [vmem:[%s10338_s6 + $0x30] sm:$0xff]  ;;  %v7292_v51 = vld [vmem:[%s10338_s6 + $0x38] sm:$0xff]  ;;  %v10386_v17 = vcombine.low %v9126_v13, %v9132_v47  ;;  %v10402_v1 = vld [vmem:[#allocation14_spill] sm:$0xff] }
0x26c9   :  { %v8498_v57 = vpack.c.bf16 %v7292_v51, %v7291_v49  ;;  %v467_v21 = vsel %vm448_vm0, %v10382_v63, 0.0  ;;  %v10393_v13 = vcombine.low %v9148_v42, %v9153_v44  ;;  %v10400_v42 = vld [vmem:[#allocation13_spill] sm:$0xff]  ;;  %v10401_v44 = vld [vmem:[#allocation12_spill] sm:$0xff] }
0x26ca   :  { %v504_v2 = vsel %vm448_vm0, %v10386_v17, 0.0  ;;  %v10403_v17 = vlaneseq }
0x26cb   :  { %v510_v40 = vsel %vm448_vm0, %v10393_v13, 0.0 }
0x2754   :  { %v6687_v20 = vpop.xlane.xlu0 %6686 }
0x2755   :  { %v6689_v45 = vmul.f32 0.03125, %v6687_v20  ;;  %v6684_v62 = vpop.xlane.xlu1 %6683  ;;  %v452_v20 = vsel %vm448_vm0, %v10372_v10, 0.0  ;;  %v10391_v10 = vld [vmem:[#allocation3_spill] sm:$0xff] }
0x2756   :  { %v6688_v50 = vmul.f32 0.03125, %v6684_v62 }
0x2757   :  { %v10097_v59 = vsub.f32 %v10087_v52, %v6689_v45  ;;  %v10373_v45 = vcombine.low %v9045_v3, %v9052_v14  ;;  %v458_v3 = vsel %vm448_vm0, %v10376_v33, 0.0  ;;  %v7289_v14 = vld [vmem:[%s10338_s6 + $0x20] sm:$0xff] }
0x2758   :  { %v10100_v11 = vsub.f32 %v10090_v56, %v6688_v50  ;;  %v10374_v50 = vcombine.low %v9057_v18, %v9062_v27  ;;  %v7290_v18 = vld [vmem:[%s10338_s6 + $0x28] sm:$0xff]  ;;  %s8685_s6 = smov 32  }
0x2759   :  { %v6693_v19 = vmul.f32 %v10097_v59, %v10097_v59  ;;  %v483_v62 = vsel %vm448_vm0, %v10373_v45, 0.0  ;;  %v8494_v27 = vpack.c.bf16 %v7290_v18, %v7289_v14  ;;  %v10395_v45 = vld [vmem:[#allocation6_spill] sm:$0xff] }
0x275a   :  { %v6692_v7 = vmul.f32 %v10100_v11, %v10100_v11  ;;  %v486_v28 = vsel %vm448_vm0, %v10374_v50, 0.0  ;;  %v10398_v50 = vld [vmem:[#allocation11_spill] sm:$0xff] }
0x275b   :  { %v6697_v38 = vsel %vm448_vm0, %v6693_v19, 0.0  ;;  %8495 = vmatprep.subr.bf16.mxu0 %v8494_v27 }
0x275c   :  { %6698 = vadd.xlane.f32.xlu0 %v6697_v38  ;;  %v6694_v24 = vsel %vm448_vm0, %v6692_v7, 0.0  ;;  %8497 = vmatpush3.bf16.msra.mxu0 %v8494_v27  ;;  %v495_v7 = vsel %vm448_vm0, %v10379_v16, 0.0  ;;  %v10380_v38 = vcombine.low %v8989_v5, %v8993_v8  ;;  %v501_v5 = vsel %vm448_vm0, %v10383_v55, 0.0 }
0x275d   :  { %6695 = vadd.xlane.f32.xlu1 %v6694_v24  ;;  %8499 = vmatprep.subr.bf16.mxu0 %v8498_v57  ;;  %v10384_v8 = vcombine.low %v9067_v31, %v9074_v53  ;;  %v473_v31 = vsel %vm448_vm0, %v10387_v23, 0.0  ;;  %v10388_v53 = vld [vmem:[#allocation5_spill] sm:$0xff] }
0x275e   :  { %v464_v24 = vsel %vm448_vm0, %v10380_v38, 0.0 }
0x2760   :  { %450 = vadd.xlane.f32.xlu0 %v449_v9  ;;  %8501 = vmatpush3.bf16.msra.mxu0 %v8498_v57  ;;  %v10389_v9 = vcombine.low %v9137_v35, %v10388_v53  ;;  %v10396_v35 = vld [vmem:[#allocation8_spill] sm:$0xff] }
0x2764   :  { %453 = vadd.xlane.f32.xlu0 %v452_v20 }
0x2768   :  { %484 = vadd.xlane.f32.xlu0 %v483_v62  ;;  %v10397_v62 = vld [vmem:[#allocation9_spill] sm:$0xff] }
0x276c   :  { %487 = vadd.xlane.f32.xlu0 %v486_v28  ;;  %v10399_v28 = vld [vmem:[#allocation10_spill] sm:$0xff] }
0x276e   :  { %6830 = vrot.lane.b32.xlu1 %v7189_v54, %s8684_s28  ;;  %v10378_v54 = vcombine.low %v8978_v58, %v8982_v60  ;;  %v10381_v58 = vcombine.low %v9103_v61, %v9110_v0  ;;  %v489_v0 = vsel %vm448_vm0, %v10384_v8, 0.0  ;;  %v10385_v61 = vcombine.low %v9011_v26, %v9015_v29  ;;  %v10390_v29 = vld [vmem:[#allocation2_spill] sm:$0xff] }
0x276f   :  { %v507_v26 = vsel %vm448_vm0, %v10389_v9, 0.0  ;;  %v10392_v20 = vcombine.low %v10390_v29, %v10391_v10  ;;  %v10404_v10 = vld [vmem:[#allocation7_spill] sm:$0xff] }
0x2770   :  { %456 = vadd.xlane.f32.xlu0 %v455_v32  ;;  %v461_v19 = vsel %vm448_vm0, %v10378_v54, 0.0  ;;  %v498_v60 = vsel %vm448_vm0, %v10381_v58, 0.0  ;;  %v470_v15 = vsel %vm448_vm0, %v10385_v61, 0.0  ;;  %v7301_v32 = vld [vmem:[%s10339_s7 + $0xa8] sm:$0xff] }
0x2771   :  { %v476_v47 = vsel %vm448_vm0, %v10392_v20, 0.0 }
0x2774   :  { %459 = vadd.xlane.f32.xlu0 %v458_v3 }
0x2778   :  { %493 = vadd.xlane.f32.xlu0 %v492_v41 }
0x277c   :  { %462 = vadd.xlane.f32.xlu0 %v461_v19 }
0x2780   :  { %496 = vadd.xlane.f32.xlu0 %v495_v7 }
0x2784   :  { %465 = vadd.xlane.f32.xlu0 %v464_v24  ;;  %v8678_v24 = vld [vmem:[%s10332_s2 + $0x2] ss:$0 sm:$0xff] }
0x2788   :  { %499 = vadd.xlane.f32.xlu0 %v498_v60 }
0x278c   :  { %468 = vadd.xlane.f32.xlu0 %v467_v21  ;;  %v8679_v21 = vld [vmem:[%s10332_s2 + $0x3] ss:$0 sm:$0xff] }
0x2790   :  { %502 = vadd.xlane.f32.xlu0 %v501_v5 }
0x2792   :  { %490 = vadd.xlane.f32.xlu1 %v489_v0 }
0x2794   :  { %471 = vadd.xlane.f32.xlu0 %v470_v15 }
0x2796   :  { %505 = vadd.xlane.f32.xlu1 %v504_v2  ;;  %v562_v2 = vand.u32 127, %v10403_v17 }
0x2798   :  { %474 = vadd.xlane.f32.xlu0 %v473_v31  ;;  %v567_v23 = vadd.s32 4294967288, %v562_v2  ;;  %v574_v9 = vadd.s32 4294967280, %v562_v2  ;;  %v581_v29 = vadd.s32 4294967272, %v562_v2  ;;  %v588_v13 = vadd.s32 4294967264, %v562_v2 }
0x279a   :  { %508 = vadd.xlane.f32.xlu1 %v507_v26  ;;  %v570_v20 = vsub.s32 %v567_v23, %v10404_v10 }
0x279c   :  { %477 = vadd.xlane.f32.xlu0 %v476_v47 }
0x279e   :  { %511 = vadd.xlane.f32.xlu1 %v510_v40 }
0x27a0   :  { %481 = vadd.xlane.f32.xlu0 %v10394_v43  ;;  %v565_v43 = vsub.s32 %v562_v2, %v10404_v10 }
0x27a2   :  { %514 = vadd.xlane.f32.xlu1 %v10395_v45  ;;  %v577_v45 = vsub.s32 %v574_v9, %v10404_v10 }
0x27b3   :  { %6912 = vrot.lane.b32.xlu1 %v9337_v48, %s8685_s6  ;;  %v7296_v48 = vld [vmem:[%s10339_s7 + $0x80] sm:$0xff] }
0x27b6   :  { %6910 = vrot.lane.b32.xlu0 %v10396_v35, %s8685_s6 }
0x27b7   :  { %6916 = vrot.lane.b32.xlu1 %v10397_v62, %s8686_s9  ;;  %v584_v62 = vsub.s32 %v581_v29, %v10404_v10 }
0x27ba   :  { %6922 = vrot.lane.b32.xlu0 %v10398_v50, %s8687_s24 }
0x27bb   :  { %6918 = vrot.lane.b32.xlu1 %v10399_v28, %s8686_s9 }
0x27be   :  { %6928 = vrot.lane.b32.xlu0 %v10400_v42, %s8688_s25  ;;  %v595_v42 = vadd.s32 4294967256, %v562_v2 }
0x27bf   :  { %6924 = vrot.lane.b32.xlu1 %v10401_v44, %s8687_s24  ;;  %v602_v44 = vadd.s32 4294967248, %v562_v2 }
0x27c2   :  { %6942 = vrot.lane.b32.xlu0 %v9800_v37, %s8684_s28  ;;  %v7297_v37 = vld [vmem:[%s10339_s7 + $0x88] sm:$0xff] }
0x27c3   :  { %6930 = vrot.lane.b32.xlu1 %v10402_v1, %s8688_s25 }
0x27c6   :  { %6948 = vrot.lane.b32.xlu0 %v9898_v34, %s8689_s26  ;;  %v7298_v34 = vld [vmem:[%s10339_s7 + $0x90] sm:$0xff] }
0x27c7   :  { %6944 = vrot.lane.b32.xlu1 %v9810_v25, %s8684_s28  ;;  %v8502_v25 = vpack.c.bf16 %v7297_v37, %v7296_v48  ;;  %v591_v37 = vsub.s32 %v588_v13, %v10404_v10 }
0x27c9   :  { %8503 = vmatprep.subr.bf16.mxu1 %v8502_v25 }
0x27ca   :  { %6954 = vrot.lane.b32.xlu0 %v9984_v6, %s8690_s27  ;;  %v7299_v6 = vld [vmem:[%s10339_s7 + $0x98] sm:$0xff]  ;;  %8505 = vmatpush3.bf16.msra.mxu1 %v8502_v25 }
0x27cb   :  { %6950 = vrot.lane.b32.xlu1 %v9910_v36, %s8689_s26  ;;  %v8506_v36 = vpack.c.bf16 %v7299_v6, %v7298_v34  ;;  %v609_v34 = vadd.s32 4294967240, %v562_v2  ;;  %v616_v6 = vadd.s32 4294967232, %v562_v2 }
0x27cd   :  { %8507 = vmatprep.subr.bf16.mxu1 %v8506_v36 }
0x27ce   :  { %8509 = vmatpush3.bf16.msra.mxu1 %v8506_v36 }
0x27cf   :  { %6956 = vrot.lane.b32.xlu1 %v9994_v30, %s8690_s27  ;;  %v7300_v30 = vld [vmem:[%s10339_s7 + $0xa0] sm:$0xff] }
0x27d0   :  { %v8510_v33 = vpack.c.bf16 %v7301_v32, %v7300_v30 }
0x27d2   :  { %8511 = vmatprep.subr.bf16.mxu1 %v8510_v33 }
0x27d3   :  { %8513 = vmatpush3.bf16.msra.mxu1 %v8510_v33  ;;  %v623_v33 = vadd.s32 4294967224, %v562_v2 }
0x27e9   :  { %v6699_v3 = vpop.xlane.xlu0 %6698 }
0x27ea   :  { %v6701_v14 = vmul.f32 0.03125, %v6699_v3  ;;  %v6696_v18 = vpop.xlane.xlu1 %6695 }
0x27eb   :  { %v6700_v39 = vmul.f32 0.03125, %v6696_v18 }
0x27ec   :  { %v6703_v41 = vadd.f32 1e-12, %v6701_v14 }
0x27ed   :  { %v6702_v27 = vadd.f32 1e-12, %v6700_v39  ;;  %v451_v49 = vpop.xlane.xlu0 %450 }
0x27ee   :  { %8668 = vrsqrt.f32 %v6703_v41  ;;  %v10248_v53 = vpop.permute.xlu1 %6830  ;;  %v517_v3 = vmul.f32 0.03125, %v451_v49 }
0x27ef   :  { %8670 = vrsqrt.f32 %v6702_v27 }
0x27f1   :  { %v454_v51 = vpop.xlane.xlu0 %453 }
0x27f2   :  { %v518_v36 = vmul.f32 0.03125, %v454_v51 }
0x27f5   :  { %v485_v54 = vpop.xlane.xlu0 %484 }
0x27f6   :  { %v528_v47 = vmul.f32 0.03125, %v485_v54  ;;  %v598_v54 = vsub.s32 %v595_v42, %v10404_v10 }
0x27f8   :  { %v8669_v19 = vpop.eup %8668  ;;  %v640_v48 = vrot.slane %v528_v47, %v565_v43 }
0x27f9   :  { %v8671_v57 = vpop.eup %8670  ;;  %v6707_v16 = vmul.f32 %v8669_v19, %v10097_v59  ;;  %v488_v7 = vpop.xlane.xlu0 %487  ;;  %v605_v19 = vsub.s32 %v602_v44, %v10404_v10 }
0x27fa   :  { %v6706_v38 = vmul.f32 %v8671_v57, %v10100_v11  ;;  %v529_v26 = vmul.f32 0.03125, %v488_v7 }
0x27fb   :  { %v6709_v58 = vmul.f32 %v8678_v24, %v6707_v16 }
0x27fc   :  { %v6708_v60 = vmul.f32 %v8678_v24, %v6706_v38  ;;  %v644_v35 = vrot.slane %v529_v26, %v570_v20  ;;  %v612_v38 = vsub.s32 %v609_v34, %v10404_v10  ;;  %v571_v24 = vrot.slane %v518_v36, %v570_v20 }
0x27fd   :  { %v457_v63 = vpop.xlane.xlu0 %456  ;;  %v6711_v5 = vadd.f32 %v8679_v21, %v6709_v58 }
0x27fe   :  { %v6710_v55 = vadd.f32 %v8679_v21, %v6708_v60  ;;  %v645_v14 = vsel %vm572_vm9, %v644_v35, %v640_v48  ;;  %v519_v18 = vmul.f32 0.03125, %v457_v63  ;;  %v619_v60 = vsub.s32 %v616_v6, %v10404_v10 }
0x27ff   :  { %v630_v63 = vadd.s32 4294967216, %v562_v2  ;;  %v566_v21 = vrot.slane %v517_v3, %v565_v43 }
0x2800   :  { %8215 = vmatprep.mubr.msk.f32.mxu0 %vm448_vm0, %v6710_v55  ;;  %v578_v55 = vrot.slane %v519_v18, %v577_v45 }
0x2801   :  { %v460_v8 = vpop.xlane.xlu0 %459  ;;  %8216 = vmatmul.mubr.msk.f32.vlgmr.msra.gmra.mrb[94].mxu0 %vm448_vm0, %v6711_v5  ;;  %v573_v47 = vsel %vm572_vm9, %v571_v24, %v566_v21  ;;  %v633_v43 = vsub.s32 %v630_v63, %v10404_v10  ;;  %v7302_v24 = vld [vmem:[%s10339_s7 + $0xb0] sm:$0xff]  ;;  %v7304_v63 = vld [vmem:[%s10339_s7 + $0xc0] sm:$0xff]  ;;  %v7305_v21 = vld [vmem:[%s10339_s7 + $0xc8] sm:$0xff]  ;;  %vm6976_vm9 = vcmask 523264  }
0x2802   :  { %v520_v27 = vmul.f32 0.03125, %v460_v8 }
0x2805   :  { %v494_v59 = vpop.xlane.xlu0 %493 }
0x2806   :  { %v531_v50 = vmul.f32 0.03125, %v494_v59  ;;  %v626_v59 = vsub.s32 %v623_v33, %v10404_v10 }
0x2808   :  { %v654_v39 = vrot.slane %v531_v50, %v584_v62 }
0x2809   :  { %v463_v11 = vpop.xlane.xlu0 %462 }
0x280a   :  { %v521_v16 = vmul.f32 0.03125, %v463_v11 }
0x280c   :  { %v592_v23 = vrot.slane %v521_v16, %v591_v37 }
0x280d   :  { %v497_v0 = vpop.xlane.xlu0 %496 }
0x280e   :  { %v532_v30 = vmul.f32 0.03125, %v497_v0  ;;  %v585_v0 = vrot.slane %v520_v27, %v584_v62 }
0x2810   :  { %v659_v58 = vrot.slane %v532_v30, %v591_v37 }
0x2811   :  { %v466_v61 = vpop.xlane.xlu0 %465 }
0x2812   :  { %v522_v5 = vmul.f32 0.03125, %v466_v61  ;;  %v580_v61 = vsel %vm579_vm10, %v578_v55, %v573_v47  ;;  %v8518_v55 = vpack.c.bf16 %v7305_v21, %v7304_v63 }
0x2813   :  { %v587_v62 = vsel %vm586_vm11, %v585_v0, %v580_v61  ;;  %v7308_v0 = vld [vmem:[%s10339_s7 + $0xe0] sm:$0xff] }
0x2814   :  { %v594_v44 = vsel %vm593_vm12, %v592_v23, %v587_v62  ;;  %v7311_v23 = vld [vmem:[%s10339_s7 + $0xf8] sm:$0xff] }
0x2815   :  { %v500_v15 = vpop.xlane.xlu0 %499 }
0x2816   :  { %v533_v7 = vmul.f32 0.03125, %v500_v15 }
0x2818   :  { %v664_v9 = vrot.slane %v533_v7, %v598_v54 }
0x2819   :  { %v469_v31 = vpop.xlane.xlu0 %468 }
0x281a   :  { %v523_v11 = vmul.f32 0.03125, %v469_v31 }
0x281c   :  { %v606_v50 = vrot.slane %v523_v11, %v605_v19  ;;  %v7309_v11 = vld [vmem:[%s10339_s7 + $0xe8] sm:$0xff] }
0x281d   :  { %v503_v40 = vpop.xlane.xlu0 %502 }
0x281e   :  { %v534_v15 = vmul.f32 0.03125, %v503_v40 }
0x281f   :  { %v491_v28 = vpop.xlane.xlu1 %490 }
0x2820   :  { %v530_v1 = vmul.f32 0.03125, %v491_v28  ;;  %v669_v28 = vrot.slane %v534_v15, %v605_v19  ;;  %v8526_v15 = vpack.c.bf16 %v7309_v11, %v7308_v0 }
0x2821   :  { %v472_v25 = vpop.xlane.xlu0 %471 }
0x2822   :  { %v649_v32 = vrot.slane %v530_v1, %v577_v45  ;;  %v524_v26 = vmul.f32 0.03125, %v472_v25  ;;  %v599_v45 = vrot.slane %v522_v5, %v598_v54  ;;  %v7306_v5 = vld [vmem:[%s10339_s7 + $0xd0] sm:$0xff] }
0x2823   :  { %v506_v41 = vpop.xlane.xlu1 %505 }
0x2824   :  { %v650_v57 = vsel %vm579_vm10, %v649_v32, %v645_v14  ;;  %v535_v29 = vmul.f32 0.03125, %v506_v41  ;;  %v613_v1 = vrot.slane %v524_v26, %v612_v38  ;;  %v601_v36 = vsel %vm600_vm13, %v599_v45, %v594_v44  ;;  %v7293_v26 = vld [vmem:[%s10337_s8 + $0x1] ss:$0 sm:$0xff]  ;;  %s8692_s8 = smov 120  }
0x2825   :  { %v655_v51 = vsel %vm586_vm11, %v654_v39, %v650_v57  ;;  %v475_v49 = vpop.xlane.xlu0 %474  ;;  %v608_v3 = vsel %vm607_vm14, %v606_v50, %v601_v36  ;;  %vm6979_vm10 = vcmask 785408   ;;  %vm6982_vm11 = vcmask 850944  }
0x2826   :  { %v660_v17 = vsel %vm593_vm12, %v659_v58, %v655_v51  ;;  %v525_v13 = vmul.f32 0.03125, %v475_v49  ;;  %v674_v48 = vrot.slane %v535_v29, %v612_v38  ;;  %v615_v39 = vsel %vm614_vm15, %v613_v1, %v608_v3  ;;  %v7303_v58 = vld [vmem:[%s10339_s7 + $0xb8] sm:$0xff] }
0x2827   :  { %v509_v8 = vpop.xlane.xlu1 %508  ;;  %v665_v35 = vsel %vm600_vm13, %v664_v9, %v660_v17  ;;  %v7310_v17 = vld [vmem:[%s10339_s7 + $0xf0] sm:$0xff]  ;;  %vm6985_vm12 = vcmask 916480   ;;  %vm6988_vm13 = vcmask 982016  }
0x2828   :  { %v536_v2 = vmul.f32 0.03125, %v509_v8  ;;  %v670_v10 = vsel %vm607_vm14, %v669_v28, %v665_v35  ;;  %v620_v34 = vrot.slane %v525_v13, %v619_v60  ;;  %v7307_v8 = vld [vmem:[%s10339_s7 + $0xd8] sm:$0xff]  ;;  %v8530_v9 = vpack.c.bf16 %v7311_v23, %v7310_v17  ;;  %s8691_s7 = smov 64  }
0x2829   :  { %v478_v20 = vpop.xlane.xlu0 %477  ;;  %v675_v41 = vsel %vm614_vm15, %v674_v48, %v670_v10 }
0x282a   :  { %v526_v31 = vmul.f32 0.03125, %v478_v20  ;;  %v679_v25 = vrot.slane %v536_v2, %v619_v60  ;;  %v622_v27 = vsel %vm621_vm1, %v620_v34, %v615_v39  ;;  %v8514_v60 = vpack.c.bf16 %v7303_v58, %v7302_v24 }
0x282b   :  { %v512_v40 = vpop.xlane.xlu1 %511 }
0x282c   :  { %v537_v42 = vmul.f32 0.03125, %v512_v40  ;;  %v627_v30 = vrot.slane %v526_v31, %v626_v59  ;;  %v680_v54 = vsel %vm621_vm1, %v679_v25, %v675_v41  ;;  %8515 = vmatprep.subr.bf16.mxu1 %v8514_v60 }
0x282d   :  { %v482_v37 = vpop.xlane.xlu0 %481  ;;  %8517 = vmatpush3.bf16.msra.mxu1 %v8514_v60 }
0x282e   :  { %v527_v6 = vmul.f32 0.03125, %v482_v37  ;;  %v684_v32 = vrot.slane %v537_v42, %v626_v59  ;;  %v629_v57 = vsel %vm628_vm3, %v627_v30, %v622_v27  ;;  %8519 = vmatprep.subr.bf16.mxu1 %v8518_v55  ;;  %v8522_v59 = vpack.c.bf16 %v7307_v8, %v7306_v5 }
0x282f   :  { %v515_v33 = vpop.xlane.xlu1 %514 }
0x2830   :  { %v634_v14 = vrot.slane %v527_v6, %v633_v43  ;;  %v538_v18 = vmul.f32 0.03125, %v515_v33  ;;  %v685_v16 = vsel %vm628_vm3, %v684_v32, %v680_v54 }
0x2831   :  { %8521 = vmatpush3.bf16.msra.mxu1 %v8518_v55  ;;  %v6911_v36 = vpop.permute.xlu0 %6910 }
0x2832   :  { %v689_v19 = vrot.slane %v538_v18, %v633_v43  ;;  %v636_v7 = vsel %vm635_vm4, %v634_v14, %v629_v57  ;;  %8523 = vmatprep.subr.bf16.mxu1 %v8522_v59  ;;  %v6966_v18 = vsel %vm448_vm0, %v9695_v46, %v6911_v36 }
0x2833   :  { %v6913_v34 = vpop.permute.xlu1 %6912 }
0x2834   :  { %v690_v51 = vsel %vm635_vm4, %v689_v19, %v685_v16 }
0x2835   :  { %v692_v38 = vsel %vm691_vm5, %v690_v51, %v636_v7  ;;  %8525 = vmatpush3.bf16.msra.mxu1 %v8522_v59  ;;  %v6923_v32 = vpop.permute.xlu0 %6922 }
0x2836   :  { %v695_v49 = vsel %vm694_vm6, %v692_v38, 0.0  ;;  %8527 = vmatprep.subr.bf16.mxu1 %v8526_v15 }
0x2837   :  { %696 = vst [vmem:[%s10340_s12] sm:$0x3] %v695_v49  ;;  %v6917_v25 = vpop.permute.xlu1 %6916 }
0x2838   :  { %v6969_v39 = vsel %vm6968_vm7, %v6966_v18, %v6917_v25 }
0x2839   :  { %8529 = vmatpush3.bf16.msra.mxu1 %v8526_v15  ;;  %v6972_v27 = vsel %vm6971_vm8, %v6969_v39, %v6923_v32 }
0x283a   :  { %8531 = vmatprep.subr.bf16.mxu1 %v8530_v9 }
0x283b   :  { %v6919_v6 = vpop.permute.xlu1 %6918 }
0x283d   :  { %8533 = vmatpush3.bf16.msra.mxu1 %v8530_v9 }
0x283f   :  { %v6925_v30 = vpop.permute.xlu1 %6924 }
0x2843   :  { %v6931_v33 = vpop.permute.xlu1 %6930 }
0x2847   :  { %v6945_v3 = vpop.permute.xlu1 %6944 }
0x284b   :  { %v6951_v14 = vpop.permute.xlu1 %6950 }
0x28d4   :  { %v8217_v29 = vpop.f32.mrb[94].mxu0 }
0x28d5   :  { %v6799_v20 = vadd.f32 %v8217_v29, %v7293_v26  ;;  %v6793_v47 = vpop.f32.mrb[95].mxu0 }
0x28d6   :  { %v6794_v13 = vadd.f32 %v7293_v26, %v6793_v47 }
0x28d7   :  { %v6805_v2 = vmul.f32 0.70710677, %v6799_v20  ;;  %v6803_v62 = vmul.f32 0.5, %v6799_v20 }
0x28d8   :  { %v6804_v43 = vmul.f32 0.70710677, %v6794_v13  ;;  %v6802_v31 = vmul.f32 0.5, %v6794_v13 }
0x28d9   :  { %8672 = verf.f32 %v6805_v2 }
0x28da   :  { %8674 = verf.f32 %v6804_v43 }
0x28e3   :  { %v8673_v61 = vpop.eup %8672 }
0x28e4   :  { %v8675_v45 = vpop.eup %8674  ;;  %v6809_v35 = vadd.f32 1.0, %v8673_v61 }
0x28e5   :  { %v6808_v40 = vadd.f32 1.0, %v8675_v45 }
0x28e6   :  { %v6811_v28 = vmul.f32 %v6809_v35, %v6803_v62 }
0x28e7   :  { %v6810_v50 = vmul.f32 %v6808_v40, %v6802_v31 }
0x28e9   :  { %8250 = vmatprep.mubr.f32.mxu1 %v6810_v50 }
0x28ea   :  { %8251 = vmatmul.mubr.f32.vlgmr.msra.gmra.mrb[68].mxu1 %v6811_v28 }
0x29bd   :  { %v8252_v42 = vpop.f32.mrb[68].mxu1 }
0x29be   :  { %v6905_v44 = vadd.f32 %v8252_v42, %v10248_v53  ;;  %v6899_v1 = vpop.f32.mrb[69].mxu1 }
0x29bf   :  { %v6900_v48 = vadd.f32 %v6899_v1, %v10248_v53  ;;  %v6929_v53 = vpop.permute.xlu0 %6928 }
0x29c0   :  { %v6909_v37 = vadd.f32 %v6905_v44, %v10087_v52  ;;  %v6974_v7 = vsel %vm132_vm2, %v6972_v27, %v6929_v53 }
0x29c1   :  { %v6908_v10 = vadd.f32 %v6900_v48, %v10090_v56 }
0x29c2   :  { %6938 = vrot.lane.b32.xlu1 %v6909_v37, %s8691_s7 }
0x29c3   :  { %6936 = vrot.lane.b32.xlu0 %v6908_v10, %s8691_s7  ;;  %v6943_v52 = vpop.permute.xlu0 %6942 }
0x29c6   :  { %6962 = vrot.lane.b32.xlu1 %v10074_v12, %s8692_s8  ;;  %v6957_v12 = vpop.permute.xlu1 %6956 }
0x29c7   :  { %6960 = vrot.lane.b32.xlu0 %v10070_v22, %s8692_s8  ;;  %v6949_v56 = vpop.permute.xlu0 %6948  ;;  %v6967_v22 = vsel %vm448_vm0, %v9698_v4, %v6913_v34 }
0x29c8   :  { %v6970_v54 = vsel %vm6968_vm7, %v6967_v22, %v6919_v6 }
0x29c9   :  { %v6973_v19 = vsel %vm6971_vm8, %v6970_v54, %v6925_v30 }
0x29ca   :  { %v6975_v57 = vsel %vm132_vm2, %v6973_v19, %v6931_v33 }
0x29cb   :  { %v6955_v41 = vpop.permute.xlu0 %6954 }
0x2a34   :  { %v6939_v16 = vpop.permute.xlu1 %6938 }
0x2a35   :  { %v6978_v51 = vsel %vm6976_vm9, %v6975_v57, %v6939_v16  ;;  %v6937_v46 = vpop.permute.xlu0 %6936 }
0x2a36   :  { %v6981_v38 = vsel %vm6979_vm10, %v6978_v51, %v6945_v3  ;;  %v6977_v49 = vsel %vm6976_vm9, %v6974_v7, %v6937_v46 }
0x2a37   :  { %v6980_v24 = vsel %vm6979_vm10, %v6977_v49, %v6943_v52  ;;  %v6984_v4 = vsel %vm6982_vm11, %v6981_v38, %v6951_v14 }
0x2a38   :  { %v6987_v58 = vsel %vm6985_vm12, %v6984_v4, %v6957_v12  ;;  %v6963_v60 = vpop.permute.xlu1 %6962  ;;  %v6983_v63 = vsel %vm6982_vm11, %v6980_v24, %v6949_v56 }
0x2a39   :  { %v6990_v21 = vsel %vm6988_vm13, %v6987_v58, %v6963_v60  ;;  %v6961_v55 = vpop.permute.xlu0 %6960  ;;  %v6986_v5 = vsel %vm6985_vm12, %v6983_v63, %v6955_v41 }
0x2a3a   :  { %6992 = vst [vmem:[%s10341_s11 + $0x8] sm:$0xff] %v6990_v21  ;;  %v6989_v8 = vsel %vm6988_vm13, %v6986_v5, %v6961_v55 }
0x2a3b   :  { %6991 = vst [vmem:[%s10341_s11] sm:$0xff] %v6989_v8 }

</bundles_post_ra>
